<compile_context>
chip_gen: v7x
topology: tpu7x:2x2x1
jax: 0.10.0
libtpu: 0.0.40
codegen_flags: <defaults>
</compile_context>

<pallas_src>
import functools

import jax
import jax.numpy as jnp
from jax.experimental import pallas as pl
from jax.experimental.pallas import tpu as pltpu


def _rcab_kernel(x_ref, w1_ref, b1_ref, w2_ref, b2_ref,
                 caw1t_ref, cab1_ref, caw2_ref, cab2_ref,
                 o_ref, *, H, W, Cp):
    HW = H * W

    x = x_ref[0].reshape(HW, Cp)                       # (HW, Cp) f32, lane-dense

    # Per-pixel masks built once (hoisted out of the tap loops).  Row validity
    # is a pure range test on the flat index (no integer division); column
    # index uses a power-of-two AND when possible.
    pidx = jax.lax.broadcasted_iota(jnp.int32, (HW, 1), 0)
    if (W & (W - 1)) == 0:
        w_idx = jnp.bitwise_and(pidx, W - 1)
    else:
        w_idx = pidx % W

    def im2col_3x3(img):
        # (HW, Cp) f32 -> (HW, 9*Cp) bf16 patch matrix for a 3x3 "same" conv.
        # Each tap is a sublane roll (XLU) of the flat image + a border mask;
        # no padded scratch buffer, no non-contiguous slice relayouts.
        taps = []
        for ky in range(3):
            for kx in range(3):
                dy, dx = ky - 1, kx - 1
                s = dy * W + dx
                shifted = img if s == 0 else pltpu.roll(
                    img, shift=(-s) % HW, axis=0)
                row_ok = (pidx >= -dy * W) & (pidx < HW - dy * W)
                col_ok = (w_idx >= -dx) & (w_idx < W - dx)
                valid = row_ok & col_ok
                taps.append(jnp.where(valid, shifted, 0.0).astype(jnp.bfloat16))
        return jnp.concatenate(taps, axis=-1)          # (HW, 9*Cp) bf16

    # ---- conv1 (3x3 same) + ReLU: one deep-K bf16 MXU matmul ----------------
    h1 = jnp.dot(im2col_3x3(x), w1_ref[...],
                 preferred_element_type=jnp.float32)
    h1 = jnp.maximum(h1 + b1_ref[...], 0.0)            # (HW, Cp) f32

    # ---- conv2 (3x3 same): one deep-K bf16 MXU matmul ------------------------
    h2 = jnp.dot(im2col_3x3(h1), w2_ref[...],
                 preferred_element_type=jnp.float32)
    h2 = h2 + b2_ref[...]                              # (HW, Cp) f32

    # ---- channel attention (global avg pool -> 1x1 -> relu -> 1x1 -> sigmoid)
    # Cr is tiny, so keep these on the VPU/XLU instead of the MXU.
    avg = jnp.mean(h2, axis=0, keepdims=True)                    # (1, Cp)
    t = jnp.sum(avg * caw1t_ref[...], axis=1, keepdims=True)     # (Cr, 1)
    t = jnp.maximum(t + cab1_ref[...], 0.0)
    y = jnp.sum(t * caw2_ref[...], axis=0, keepdims=True)        # (1, Cp)
    y = jax.nn.sigmoid(y + cab2_ref[...])

    # ---- scale + residual (res_scale = 1) ------------------------------------
    out = h2 * y + x
    o_ref[...] = out.reshape(1, H, W, Cp).astype(o_ref.dtype)


def rcab_pallas(x_nchw, params):
    """x_nchw: (B, C, H, W) float32. Returns (B, C, H, W) float32."""
    B, C, H, W = x_nchw.shape
    Cr = params["caw1"].shape[1]
    Cp = max(128, ((C + 127) // 128) * 128)            # lane-dense channel dim
    pc = Cp - C

    x = jnp.transpose(x_nchw, (0, 2, 3, 1))                       # NHWC
    x = jnp.pad(x, ((0, 0), (0, 0), (0, 0), (0, pc)))             # (B, H, W, Cp)

    def conv_w(w):                                     # (3,3,C,C) -> (9*Cp, Cp) bf16
        wp = jnp.pad(w, ((0, 0), (0, 0), (0, pc), (0, pc)))
        return wp.reshape(9 * Cp, Cp).astype(jnp.bfloat16)

    w1 = conv_w(params["w1"])
    w2 = conv_w(params["w2"])
    b1 = jnp.pad(params["b1"], ((0, 0), (0, pc)))                 # (1, Cp)
    b2 = jnp.pad(params["b2"], ((0, 0), (0, pc)))                 # (1, Cp)
    caw1t = jnp.pad(params["caw1"].T, ((0, 0), (0, pc)))          # (Cr, Cp)
    cab1 = params["cab1"].reshape(Cr, 1)                          # (Cr, 1)
    caw2 = jnp.pad(params["caw2"], ((0, 0), (0, pc)))             # (Cr, Cp)
    cab2 = jnp.pad(params["cab2"], ((0, 0), (0, pc)))             # (1, Cp)

    const = lambda n: (lambda b: (0,) * n)
    kern = functools.partial(_rcab_kernel, H=H, W=W, Cp=Cp)

    out = pl.pallas_call(
        kern,
        out_shape=jax.ShapeDtypeStruct((B, H, W, Cp), jnp.float32),
        grid_spec=pltpu.PrefetchScalarGridSpec(
            num_scalar_prefetch=0,
            grid=(B,),
            in_specs=[
                pl.BlockSpec((1, H, W, Cp), lambda b: (b, 0, 0, 0)),  # x
                pl.BlockSpec((9 * Cp, Cp), const(2)),   # w1 (im2col layout, bf16)
                pl.BlockSpec((1, Cp), const(2)),        # b1
                pl.BlockSpec((9 * Cp, Cp), const(2)),   # w2 (im2col layout, bf16)
                pl.BlockSpec((1, Cp), const(2)),        # b2
                pl.BlockSpec((Cr, Cp), const(2)),       # CA w1^T
                pl.BlockSpec((Cr, 1), const(2)),        # CA b1
                pl.BlockSpec((Cr, Cp), const(2)),       # CA w2
                pl.BlockSpec((1, Cp), const(2)),        # CA b2
            ],
            out_specs=pl.BlockSpec((1, H, W, Cp), lambda b: (b, 0, 0, 0)),
        ),
        compiler_params=pltpu.CompilerParams(
            dimension_semantics=("parallel",)),
    )(x, w1, b1, w2, b2, caw1t, cab1, caw2, cab2)

    out = out[..., :C]                                            # drop lane padding
    return jnp.transpose(out, (0, 3, 1, 2))                       # back to NCHW


def rcab_reference(x_nchw, params):
    """Pure-JAX f32 reference (mirrors the PyTorch forward) for validation."""
    x = jnp.transpose(x_nchw, (0, 2, 3, 1))

    def conv3(inp, w, b):
        o = jax.lax.conv_general_dilated(
            inp, w, window_strides=(1, 1), padding="SAME",
            dimension_numbers=("NHWC", "HWIO", "NHWC"))
        return o + b.reshape(1, 1, 1, -1)

    h = jax.nn.relu(conv3(x, params["w1"], params["b1"][0]))
    h = conv3(h, params["w2"], params["b2"][0])
    avg = jnp.mean(h, axis=(1, 2), keepdims=True)                 # (B,1,1,C)
    y = jax.nn.relu(jnp.einsum("bijc,cr->bijr", avg, params["caw1"])
                    + params["cab1"].reshape(1, 1, 1, -1))
    y = jax.nn.sigmoid(jnp.einsum("bijr,rc->bijc", y, params["caw2"])
                       + params["cab2"].reshape(1, 1, 1, -1))
    out = h * y + x
    return jnp.transpose(out, (0, 3, 1, 2))


def make_params(key, n_feat, reduction):
    """Deterministic synthetic parameters (shapes follow RCAB.__init__)."""
    cr = n_feat // reduction
    ks = jax.random.split(key, 8)
    s = 0.05
    return {
        # 3x3 conv weights stored as (kh, kw, in_c, out_c)  [HWIO]
        "w1":   s * jax.random.normal(ks[0], (3, 3, n_feat, n_feat), jnp.float32),
        "b1":   s * jax.random.normal(ks[1], (1, n_feat), jnp.float32),
        "w2":   s * jax.random.normal(ks[2], (3, 3, n_feat, n_feat), jnp.float32),
        "b2":   s * jax.random.normal(ks[3], (1, n_feat), jnp.float32),
        # CALayer 1x1 convs stored as dense matrices (in, out)
        "caw1": s * jax.random.normal(ks[4], (n_feat, cr), jnp.float32),
        "cab1": s * jax.random.normal(ks[5], (1, cr), jnp.float32),
        "caw2": s * jax.random.normal(ks[6], (cr, n_feat), jnp.float32),
        "cab2": s * jax.random.normal(ks[7], (1, n_feat), jnp.float32),
    }


if __name__ == "__main__":
    B, n_feat, H, W = 2, 32, 16, 16
    reduction = 16

    key = jax.random.PRNGKey(0)
    kx, kp = jax.random.split(key)
    x = jax.random.normal(kx, (B, n_feat, H, W), jnp.float32)   # NCHW like PyTorch
    params = make_params(kp, n_feat, reduction)

    out = rcab_pallas(x, params)
    out = jax.block_until_ready(out)

    ref = rcab_reference(x, params)
    assert out.shape == (B, n_feat, H, W)
    # bf16 MXU operands (f32 accumulation) -> looser tolerance vs. f32 reference.
    assert jnp.allclose(out, ref, atol=5e-2, rtol=5e-2), "mismatch vs reference"

    print("KERNEL_OK")
</pallas_src>

<mosaic_0001>
module attributes {stable_mosaic.version = 11 : i64} {
  func.func @_rcab_kernel(%arg0: i32, %arg1: memref<1x16x16x128xf32, #tpu.memory_space<vmem>>, %arg2: memref<1152x128xbf16, #tpu.memory_space<vmem>>, %arg3: memref<1x128xf32, #tpu.memory_space<vmem>>, %arg4: memref<1152x128xbf16, #tpu.memory_space<vmem>>, %arg5: memref<1x128xf32, #tpu.memory_space<vmem>>, %arg6: memref<2x128xf32, #tpu.memory_space<vmem>>, %arg7: memref<2x1xf32, #tpu.memory_space<vmem>>, %arg8: memref<2x128xf32, #tpu.memory_space<vmem>>, %arg9: memref<1x128xf32, #tpu.memory_space<vmem>>, %arg10: memref<1x16x16x128xf32, #tpu.memory_space<vmem>>) attributes {dimension_semantics = [#tpu.dimension_semantics<parallel>], iteration_bounds = array<i64: 2>, scalar_prefetch = 0 : i64, scratch_operands = 0 : i64, tpu.core_type = #tpu.core_type<tc>, window_params = [{transform_indices = @transform_0, window_bounds = array<i64: 1, 16, 16, 128>}, {pipeline_mode = #tpu.pipeline_mode<synchronous>, transform_indices = @transform_1, window_bounds = array<i64: 1152, 128>}, {pipeline_mode = #tpu.pipeline_mode<synchronous>, transform_indices = @transform_2, window_bounds = array<i64: 1, 128>}, {pipeline_mode = #tpu.pipeline_mode<synchronous>, transform_indices = @transform_3, window_bounds = array<i64: 1152, 128>}, {pipeline_mode = #tpu.pipeline_mode<synchronous>, transform_indices = @transform_4, window_bounds = array<i64: 1, 128>}, {pipeline_mode = #tpu.pipeline_mode<synchronous>, transform_indices = @transform_5, window_bounds = array<i64: 2, 128>}, {pipeline_mode = #tpu.pipeline_mode<synchronous>, transform_indices = @transform_6, window_bounds = array<i64: 2, 1>}, {pipeline_mode = #tpu.pipeline_mode<synchronous>, transform_indices = @transform_7, window_bounds = array<i64: 2, 128>}, {pipeline_mode = #tpu.pipeline_mode<synchronous>, transform_indices = @transform_8, window_bounds = array<i64: 1, 128>}, {transform_indices = @transform_9, window_bounds = array<i64: 1, 16, 16, 128>}]} {
    %c0 = arith.constant 0 : index
    %c0_0 = arith.constant 0 : index
    %c0_1 = arith.constant 0 : index
    %c0_2 = arith.constant 0 : index
    %0 = vector.load %arg1[%c0, %c0_0, %c0_1, %c0_2] : memref<1x16x16x128xf32, #tpu.memory_space<vmem>>, vector<1x16x16x128xf32>
    %1 = vector.shape_cast %0 : vector<1x16x16x128xf32> to vector<16x16x128xf32>
    %2 = vector.shape_cast %1 : vector<16x16x128xf32> to vector<256x128xf32>
    %3 = tpu.iota {dimensions = array<i32: 0>} : vector<256x1xi32>
    %c15_i32 = arith.constant 15 : i32
    %4 = vector.broadcast %c15_i32 : i32 to vector<256x1xi32>
    %5 = arith.andi %3, %4 : vector<256x1xi32>
    %c17_i32 = arith.constant 17 : i32
    %6 = tpu.dynamic_rotate %2 by %c17_i32 dim 0 : vector<256x128xf32>, i32 -> vector<256x128xf32>
    %c16_i32 = arith.constant 16 : i32
    %7 = vector.broadcast %c16_i32 : i32 to vector<256x1xi32>
    %8 = arith.cmpi sge, %3, %7 : vector<256x1xi32>
    %c272_i32 = arith.constant 272 : i32
    %9 = vector.broadcast %c272_i32 : i32 to vector<256x1xi32>
    %10 = arith.cmpi slt, %3, %9 : vector<256x1xi32>
    %11 = arith.andi %8, %10 : vector<256x1xi1>
    %c1_i32 = arith.constant 1 : i32
    %12 = vector.broadcast %c1_i32 : i32 to vector<256x1xi32>
    %13 = arith.cmpi sge, %5, %12 : vector<256x1xi32>
    %c17_i32_3 = arith.constant 17 : i32
    %14 = vector.broadcast %c17_i32_3 : i32 to vector<256x1xi32>
    %15 = arith.cmpi slt, %5, %14 : vector<256x1xi32>
    %16 = arith.andi %13, %15 : vector<256x1xi1>
    %17 = arith.andi %11, %16 : vector<256x1xi1>
    %cst = arith.constant 0.000000e+00 : f32
    %18 = vector.shape_cast %17 : vector<256x1xi1> to vector<256x1xi1>
    %19 = vector.broadcast %18 : vector<256x1xi1> to vector<256x128xi1>
    %20 = vector.broadcast %cst : f32 to vector<256x128xf32>
    %21 = arith.select %19, %6, %20 : vector<256x128xi1>, vector<256x128xf32>
    %22 = arith.truncf %21 : vector<256x128xf32> to vector<256x128xbf16>
    %c16_i32_4 = arith.constant 16 : i32
    %23 = tpu.dynamic_rotate %2 by %c16_i32_4 dim 0 : vector<256x128xf32>, i32 -> vector<256x128xf32>
    %c16_i32_5 = arith.constant 16 : i32
    %24 = vector.broadcast %c16_i32_5 : i32 to vector<256x1xi32>
    %25 = arith.cmpi sge, %3, %24 : vector<256x1xi32>
    %c272_i32_6 = arith.constant 272 : i32
    %26 = vector.broadcast %c272_i32_6 : i32 to vector<256x1xi32>
    %27 = arith.cmpi slt, %3, %26 : vector<256x1xi32>
    %28 = arith.andi %25, %27 : vector<256x1xi1>
    %c0_i32 = arith.constant 0 : i32
    %29 = vector.broadcast %c0_i32 : i32 to vector<256x1xi32>
    %30 = arith.cmpi sge, %5, %29 : vector<256x1xi32>
    %c16_i32_7 = arith.constant 16 : i32
    %31 = vector.broadcast %c16_i32_7 : i32 to vector<256x1xi32>
    %32 = arith.cmpi slt, %5, %31 : vector<256x1xi32>
    %33 = arith.andi %30, %32 : vector<256x1xi1>
    %34 = arith.andi %28, %33 : vector<256x1xi1>
    %cst_8 = arith.constant 0.000000e+00 : f32
    %35 = vector.shape_cast %34 : vector<256x1xi1> to vector<256x1xi1>
    %36 = vector.broadcast %35 : vector<256x1xi1> to vector<256x128xi1>
    %37 = vector.broadcast %cst_8 : f32 to vector<256x128xf32>
    %38 = arith.select %36, %23, %37 : vector<256x128xi1>, vector<256x128xf32>
    %39 = arith.truncf %38 : vector<256x128xf32> to vector<256x128xbf16>
    %c15_i32_9 = arith.constant 15 : i32
    %40 = tpu.dynamic_rotate %2 by %c15_i32_9 dim 0 : vector<256x128xf32>, i32 -> vector<256x128xf32>
    %c16_i32_10 = arith.constant 16 : i32
    %41 = vector.broadcast %c16_i32_10 : i32 to vector<256x1xi32>
    %42 = arith.cmpi sge, %3, %41 : vector<256x1xi32>
    %c272_i32_11 = arith.constant 272 : i32
    %43 = vector.broadcast %c272_i32_11 : i32 to vector<256x1xi32>
    %44 = arith.cmpi slt, %3, %43 : vector<256x1xi32>
    %45 = arith.andi %42, %44 : vector<256x1xi1>
    %c-1_i32 = arith.constant -1 : i32
    %46 = vector.broadcast %c-1_i32 : i32 to vector<256x1xi32>
    %47 = arith.cmpi sge, %5, %46 : vector<256x1xi32>
    %c15_i32_12 = arith.constant 15 : i32
    %48 = vector.broadcast %c15_i32_12 : i32 to vector<256x1xi32>
    %49 = arith.cmpi slt, %5, %48 : vector<256x1xi32>
    %50 = arith.andi %47, %49 : vector<256x1xi1>
    %51 = arith.andi %45, %50 : vector<256x1xi1>
    %cst_13 = arith.constant 0.000000e+00 : f32
    %52 = vector.shape_cast %51 : vector<256x1xi1> to vector<256x1xi1>
    %53 = vector.broadcast %52 : vector<256x1xi1> to vector<256x128xi1>
    %54 = vector.broadcast %cst_13 : f32 to vector<256x128xf32>
    %55 = arith.select %53, %40, %54 : vector<256x128xi1>, vector<256x128xf32>
    %56 = arith.truncf %55 : vector<256x128xf32> to vector<256x128xbf16>
    %c1_i32_14 = arith.constant 1 : i32
    %57 = tpu.dynamic_rotate %2 by %c1_i32_14 dim 0 : vector<256x128xf32>, i32 -> vector<256x128xf32>
    %c0_i32_15 = arith.constant 0 : i32
    %58 = vector.broadcast %c0_i32_15 : i32 to vector<256x1xi32>
    %59 = arith.cmpi sge, %3, %58 : vector<256x1xi32>
    %c256_i32 = arith.constant 256 : i32
    %60 = vector.broadcast %c256_i32 : i32 to vector<256x1xi32>
    %61 = arith.cmpi slt, %3, %60 : vector<256x1xi32>
    %62 = arith.andi %59, %61 : vector<256x1xi1>
    %c1_i32_16 = arith.constant 1 : i32
    %63 = vector.broadcast %c1_i32_16 : i32 to vector<256x1xi32>
    %64 = arith.cmpi sge, %5, %63 : vector<256x1xi32>
    %c17_i32_17 = arith.constant 17 : i32
    %65 = vector.broadcast %c17_i32_17 : i32 to vector<256x1xi32>
    %66 = arith.cmpi slt, %5, %65 : vector<256x1xi32>
    %67 = arith.andi %64, %66 : vector<256x1xi1>
    %68 = arith.andi %62, %67 : vector<256x1xi1>
    %cst_18 = arith.constant 0.000000e+00 : f32
    %69 = vector.shape_cast %68 : vector<256x1xi1> to vector<256x1xi1>
    %70 = vector.broadcast %69 : vector<256x1xi1> to vector<256x128xi1>
    %71 = vector.broadcast %cst_18 : f32 to vector<256x128xf32>
    %72 = arith.select %70, %57, %71 : vector<256x128xi1>, vector<256x128xf32>
    %73 = arith.truncf %72 : vector<256x128xf32> to vector<256x128xbf16>
    %c0_i32_19 = arith.constant 0 : i32
    %74 = vector.broadcast %c0_i32_19 : i32 to vector<256x1xi32>
    %75 = arith.cmpi sge, %3, %74 : vector<256x1xi32>
    %c256_i32_20 = arith.constant 256 : i32
    %76 = vector.broadcast %c256_i32_20 : i32 to vector<256x1xi32>
    %77 = arith.cmpi slt, %3, %76 : vector<256x1xi32>
    %78 = arith.andi %75, %77 : vector<256x1xi1>
    %c0_i32_21 = arith.constant 0 : i32
    %79 = vector.broadcast %c0_i32_21 : i32 to vector<256x1xi32>
    %80 = arith.cmpi sge, %5, %79 : vector<256x1xi32>
    %c16_i32_22 = arith.constant 16 : i32
    %81 = vector.broadcast %c16_i32_22 : i32 to vector<256x1xi32>
    %82 = arith.cmpi slt, %5, %81 : vector<256x1xi32>
    %83 = arith.andi %80, %82 : vector<256x1xi1>
    %84 = arith.andi %78, %83 : vector<256x1xi1>
    %cst_23 = arith.constant 0.000000e+00 : f32
    %85 = vector.shape_cast %84 : vector<256x1xi1> to vector<256x1xi1>
    %86 = vector.broadcast %85 : vector<256x1xi1> to vector<256x128xi1>
    %87 = vector.broadcast %cst_23 : f32 to vector<256x128xf32>
    %88 = arith.select %86, %2, %87 : vector<256x128xi1>, vector<256x128xf32>
    %89 = arith.truncf %88 : vector<256x128xf32> to vector<256x128xbf16>
    %c255_i32 = arith.constant 255 : i32
    %90 = tpu.dynamic_rotate %2 by %c255_i32 dim 0 : vector<256x128xf32>, i32 -> vector<256x128xf32>
    %c0_i32_24 = arith.constant 0 : i32
    %91 = vector.broadcast %c0_i32_24 : i32 to vector<256x1xi32>
    %92 = arith.cmpi sge, %3, %91 : vector<256x1xi32>
    %c256_i32_25 = arith.constant 256 : i32
    %93 = vector.broadcast %c256_i32_25 : i32 to vector<256x1xi32>
    %94 = arith.cmpi slt, %3, %93 : vector<256x1xi32>
    %95 = arith.andi %92, %94 : vector<256x1xi1>
    %c-1_i32_26 = arith.constant -1 : i32
    %96 = vector.broadcast %c-1_i32_26 : i32 to vector<256x1xi32>
    %97 = arith.cmpi sge, %5, %96 : vector<256x1xi32>
    %c15_i32_27 = arith.constant 15 : i32
    %98 = vector.broadcast %c15_i32_27 : i32 to vector<256x1xi32>
    %99 = arith.cmpi slt, %5, %98 : vector<256x1xi32>
    %100 = arith.andi %97, %99 : vector<256x1xi1>
    %101 = arith.andi %95, %100 : vector<256x1xi1>
    %cst_28 = arith.constant 0.000000e+00 : f32
    %102 = vector.shape_cast %101 : vector<256x1xi1> to vector<256x1xi1>
    %103 = vector.broadcast %102 : vector<256x1xi1> to vector<256x128xi1>
    %104 = vector.broadcast %cst_28 : f32 to vector<256x128xf32>
    %105 = arith.select %103, %90, %104 : vector<256x128xi1>, vector<256x128xf32>
    %106 = arith.truncf %105 : vector<256x128xf32> to vector<256x128xbf16>
    %c241_i32 = arith.constant 241 : i32
    %107 = tpu.dynamic_rotate %2 by %c241_i32 dim 0 : vector<256x128xf32>, i32 -> vector<256x128xf32>
    %c-16_i32 = arith.constant -16 : i32
    %108 = vector.broadcast %c-16_i32 : i32 to vector<256x1xi32>
    %109 = arith.cmpi sge, %3, %108 : vector<256x1xi32>
    %c240_i32 = arith.constant 240 : i32
    %110 = vector.broadcast %c240_i32 : i32 to vector<256x1xi32>
    %111 = arith.cmpi slt, %3, %110 : vector<256x1xi32>
    %112 = arith.andi %109, %111 : vector<256x1xi1>
    %c1_i32_29 = arith.constant 1 : i32
    %113 = vector.broadcast %c1_i32_29 : i32 to vector<256x1xi32>
    %114 = arith.cmpi sge, %5, %113 : vector<256x1xi32>
    %c17_i32_30 = arith.constant 17 : i32
    %115 = vector.broadcast %c17_i32_30 : i32 to vector<256x1xi32>
    %116 = arith.cmpi slt, %5, %115 : vector<256x1xi32>
    %117 = arith.andi %114, %116 : vector<256x1xi1>
    %118 = arith.andi %112, %117 : vector<256x1xi1>
    %cst_31 = arith.constant 0.000000e+00 : f32
    %119 = vector.shape_cast %118 : vector<256x1xi1> to vector<256x1xi1>
    %120 = vector.broadcast %119 : vector<256x1xi1> to vector<256x128xi1>
    %121 = vector.broadcast %cst_31 : f32 to vector<256x128xf32>
    %122 = arith.select %120, %107, %121 : vector<256x128xi1>, vector<256x128xf32>
    %123 = arith.truncf %122 : vector<256x128xf32> to vector<256x128xbf16>
    %c240_i32_32 = arith.constant 240 : i32
    %124 = tpu.dynamic_rotate %2 by %c240_i32_32 dim 0 : vector<256x128xf32>, i32 -> vector<256x128xf32>
    %c-16_i32_33 = arith.constant -16 : i32
    %125 = vector.broadcast %c-16_i32_33 : i32 to vector<256x1xi32>
    %126 = arith.cmpi sge, %3, %125 : vector<256x1xi32>
    %c240_i32_34 = arith.constant 240 : i32
    %127 = vector.broadcast %c240_i32_34 : i32 to vector<256x1xi32>
    %128 = arith.cmpi slt, %3, %127 : vector<256x1xi32>
    %129 = arith.andi %126, %128 : vector<256x1xi1>
    %c0_i32_35 = arith.constant 0 : i32
    %130 = vector.broadcast %c0_i32_35 : i32 to vector<256x1xi32>
    %131 = arith.cmpi sge, %5, %130 : vector<256x1xi32>
    %c16_i32_36 = arith.constant 16 : i32
    %132 = vector.broadcast %c16_i32_36 : i32 to vector<256x1xi32>
    %133 = arith.cmpi slt, %5, %132 : vector<256x1xi32>
    %134 = arith.andi %131, %133 : vector<256x1xi1>
    %135 = arith.andi %129, %134 : vector<256x1xi1>
    %cst_37 = arith.constant 0.000000e+00 : f32
    %136 = vector.shape_cast %135 : vector<256x1xi1> to vector<256x1xi1>
    %137 = vector.broadcast %136 : vector<256x1xi1> to vector<256x128xi1>
    %138 = vector.broadcast %cst_37 : f32 to vector<256x128xf32>
    %139 = arith.select %137, %124, %138 : vector<256x128xi1>, vector<256x128xf32>
    %140 = arith.truncf %139 : vector<256x128xf32> to vector<256x128xbf16>
    %c239_i32 = arith.constant 239 : i32
    %141 = tpu.dynamic_rotate %2 by %c239_i32 dim 0 : vector<256x128xf32>, i32 -> vector<256x128xf32>
    %c-16_i32_38 = arith.constant -16 : i32
    %142 = vector.broadcast %c-16_i32_38 : i32 to vector<256x1xi32>
    %143 = arith.cmpi sge, %3, %142 : vector<256x1xi32>
    %c240_i32_39 = arith.constant 240 : i32
    %144 = vector.broadcast %c240_i32_39 : i32 to vector<256x1xi32>
    %145 = arith.cmpi slt, %3, %144 : vector<256x1xi32>
    %146 = arith.andi %143, %145 : vector<256x1xi1>
    %c-1_i32_40 = arith.constant -1 : i32
    %147 = vector.broadcast %c-1_i32_40 : i32 to vector<256x1xi32>
    %148 = arith.cmpi sge, %5, %147 : vector<256x1xi32>
    %c15_i32_41 = arith.constant 15 : i32
    %149 = vector.broadcast %c15_i32_41 : i32 to vector<256x1xi32>
    %150 = arith.cmpi slt, %5, %149 : vector<256x1xi32>
    %151 = arith.andi %148, %150 : vector<256x1xi1>
    %152 = arith.andi %146, %151 : vector<256x1xi1>
    %cst_42 = arith.constant 0.000000e+00 : f32
    %153 = vector.shape_cast %152 : vector<256x1xi1> to vector<256x1xi1>
    %154 = vector.broadcast %153 : vector<256x1xi1> to vector<256x128xi1>
    %155 = vector.broadcast %cst_42 : f32 to vector<256x128xf32>
    %156 = arith.select %154, %141, %155 : vector<256x128xi1>, vector<256x128xf32>
    %157 = arith.truncf %156 : vector<256x128xf32> to vector<256x128xbf16>
    %158 = tpu.concatenate %22, %39, %56, %73, %89, %106, %123, %140, %157 in 1 : vector<256x128xbf16>, vector<256x128xbf16>, vector<256x128xbf16>, vector<256x128xbf16>, vector<256x128xbf16>, vector<256x128xbf16>, vector<256x128xbf16>, vector<256x128xbf16>, vector<256x128xbf16> -> vector<256x1152xbf16>
    %c0_43 = arith.constant 0 : index
    %c0_44 = arith.constant 0 : index
    %159 = vector.load %arg2[%c0_43, %c0_44] : memref<1152x128xbf16, #tpu.memory_space<vmem>>, vector<1152x128xbf16>
    %cst_45 = arith.constant dense<0.000000e+00> : vector<256x128xf32>
    %160 = tpu.matmul %158, %159, %cst_45 {dimension_numbers = #tpu.dot_dimension_numbers<[1], [0], [0], [1], [0, 0, 1, 1], [], []>} : vector<256x1152xbf16>, vector<1152x128xbf16>, vector<256x128xf32> -> vector<256x128xf32>
    %c0_46 = arith.constant 0 : index
    %c0_47 = arith.constant 0 : index
    %161 = vector.load %arg3[%c0_46, %c0_47] : memref<1x128xf32, #tpu.memory_space<vmem>>, vector<1x128xf32>
    %162 = vector.broadcast %161 : vector<1x128xf32> to vector<256x128xf32>
    %163 = arith.addf %160, %162 : vector<256x128xf32>
    %cst_48 = arith.constant 0.000000e+00 : f32
    %164 = vector.broadcast %cst_48 : f32 to vector<256x128xf32>
    %165 = arith.maximumf %163, %164 : vector<256x128xf32>
    %c17_i32_49 = arith.constant 17 : i32
    %166 = tpu.dynamic_rotate %165 by %c17_i32_49 dim 0 : vector<256x128xf32>, i32 -> vector<256x128xf32>
    %c16_i32_50 = arith.constant 16 : i32
    %167 = vector.broadcast %c16_i32_50 : i32 to vector<256x1xi32>
    %168 = arith.cmpi sge, %3, %167 : vector<256x1xi32>
    %c272_i32_51 = arith.constant 272 : i32
    %169 = vector.broadcast %c272_i32_51 : i32 to vector<256x1xi32>
    %170 = arith.cmpi slt, %3, %169 : vector<256x1xi32>
    %171 = arith.andi %168, %170 : vector<256x1xi1>
    %c1_i32_52 = arith.constant 1 : i32
    %172 = vector.broadcast %c1_i32_52 : i32 to vector<256x1xi32>
    %173 = arith.cmpi sge, %5, %172 : vector<256x1xi32>
    %c17_i32_53 = arith.constant 17 : i32
    %174 = vector.broadcast %c17_i32_53 : i32 to vector<256x1xi32>
    %175 = arith.cmpi slt, %5, %174 : vector<256x1xi32>
    %176 = arith.andi %173, %175 : vector<256x1xi1>
    %177 = arith.andi %171, %176 : vector<256x1xi1>
    %cst_54 = arith.constant 0.000000e+00 : f32
    %178 = vector.shape_cast %177 : vector<256x1xi1> to vector<256x1xi1>
    %179 = vector.broadcast %178 : vector<256x1xi1> to vector<256x128xi1>
    %180 = vector.broadcast %cst_54 : f32 to vector<256x128xf32>
    %181 = arith.select %179, %166, %180 : vector<256x128xi1>, vector<256x128xf32>
    %182 = arith.truncf %181 : vector<256x128xf32> to vector<256x128xbf16>
    %c16_i32_55 = arith.constant 16 : i32
    %183 = tpu.dynamic_rotate %165 by %c16_i32_55 dim 0 : vector<256x128xf32>, i32 -> vector<256x128xf32>
    %c16_i32_56 = arith.constant 16 : i32
    %184 = vector.broadcast %c16_i32_56 : i32 to vector<256x1xi32>
    %185 = arith.cmpi sge, %3, %184 : vector<256x1xi32>
    %c272_i32_57 = arith.constant 272 : i32
    %186 = vector.broadcast %c272_i32_57 : i32 to vector<256x1xi32>
    %187 = arith.cmpi slt, %3, %186 : vector<256x1xi32>
    %188 = arith.andi %185, %187 : vector<256x1xi1>
    %c0_i32_58 = arith.constant 0 : i32
    %189 = vector.broadcast %c0_i32_58 : i32 to vector<256x1xi32>
    %190 = arith.cmpi sge, %5, %189 : vector<256x1xi32>
    %c16_i32_59 = arith.constant 16 : i32
    %191 = vector.broadcast %c16_i32_59 : i32 to vector<256x1xi32>
    %192 = arith.cmpi slt, %5, %191 : vector<256x1xi32>
    %193 = arith.andi %190, %192 : vector<256x1xi1>
    %194 = arith.andi %188, %193 : vector<256x1xi1>
    %cst_60 = arith.constant 0.000000e+00 : f32
    %195 = vector.shape_cast %194 : vector<256x1xi1> to vector<256x1xi1>
    %196 = vector.broadcast %195 : vector<256x1xi1> to vector<256x128xi1>
    %197 = vector.broadcast %cst_60 : f32 to vector<256x128xf32>
    %198 = arith.select %196, %183, %197 : vector<256x128xi1>, vector<256x128xf32>
    %199 = arith.truncf %198 : vector<256x128xf32> to vector<256x128xbf16>
    %c15_i32_61 = arith.constant 15 : i32
    %200 = tpu.dynamic_rotate %165 by %c15_i32_61 dim 0 : vector<256x128xf32>, i32 -> vector<256x128xf32>
    %c16_i32_62 = arith.constant 16 : i32
    %201 = vector.broadcast %c16_i32_62 : i32 to vector<256x1xi32>
    %202 = arith.cmpi sge, %3, %201 : vector<256x1xi32>
    %c272_i32_63 = arith.constant 272 : i32
    %203 = vector.broadcast %c272_i32_63 : i32 to vector<256x1xi32>
    %204 = arith.cmpi slt, %3, %203 : vector<256x1xi32>
    %205 = arith.andi %202, %204 : vector<256x1xi1>
    %c-1_i32_64 = arith.constant -1 : i32
    %206 = vector.broadcast %c-1_i32_64 : i32 to vector<256x1xi32>
    %207 = arith.cmpi sge, %5, %206 : vector<256x1xi32>
    %c15_i32_65 = arith.constant 15 : i32
    %208 = vector.broadcast %c15_i32_65 : i32 to vector<256x1xi32>
    %209 = arith.cmpi slt, %5, %208 : vector<256x1xi32>
    %210 = arith.andi %207, %209 : vector<256x1xi1>
    %211 = arith.andi %205, %210 : vector<256x1xi1>
    %cst_66 = arith.constant 0.000000e+00 : f32
    %212 = vector.shape_cast %211 : vector<256x1xi1> to vector<256x1xi1>
    %213 = vector.broadcast %212 : vector<256x1xi1> to vector<256x128xi1>
    %214 = vector.broadcast %cst_66 : f32 to vector<256x128xf32>
    %215 = arith.select %213, %200, %214 : vector<256x128xi1>, vector<256x128xf32>
    %216 = arith.truncf %215 : vector<256x128xf32> to vector<256x128xbf16>
    %c1_i32_67 = arith.constant 1 : i32
    %217 = tpu.dynamic_rotate %165 by %c1_i32_67 dim 0 : vector<256x128xf32>, i32 -> vector<256x128xf32>
    %c0_i32_68 = arith.constant 0 : i32
    %218 = vector.broadcast %c0_i32_68 : i32 to vector<256x1xi32>
    %219 = arith.cmpi sge, %3, %218 : vector<256x1xi32>
    %c256_i32_69 = arith.constant 256 : i32
    %220 = vector.broadcast %c256_i32_69 : i32 to vector<256x1xi32>
    %221 = arith.cmpi slt, %3, %220 : vector<256x1xi32>
    %222 = arith.andi %219, %221 : vector<256x1xi1>
    %c1_i32_70 = arith.constant 1 : i32
    %223 = vector.broadcast %c1_i32_70 : i32 to vector<256x1xi32>
    %224 = arith.cmpi sge, %5, %223 : vector<256x1xi32>
    %c17_i32_71 = arith.constant 17 : i32
    %225 = vector.broadcast %c17_i32_71 : i32 to vector<256x1xi32>
    %226 = arith.cmpi slt, %5, %225 : vector<256x1xi32>
    %227 = arith.andi %224, %226 : vector<256x1xi1>
    %228 = arith.andi %222, %227 : vector<256x1xi1>
    %cst_72 = arith.constant 0.000000e+00 : f32
    %229 = vector.shape_cast %228 : vector<256x1xi1> to vector<256x1xi1>
    %230 = vector.broadcast %229 : vector<256x1xi1> to vector<256x128xi1>
    %231 = vector.broadcast %cst_72 : f32 to vector<256x128xf32>
    %232 = arith.select %230, %217, %231 : vector<256x128xi1>, vector<256x128xf32>
    %233 = arith.truncf %232 : vector<256x128xf32> to vector<256x128xbf16>
    %c0_i32_73 = arith.constant 0 : i32
    %234 = vector.broadcast %c0_i32_73 : i32 to vector<256x1xi32>
    %235 = arith.cmpi sge, %3, %234 : vector<256x1xi32>
    %c256_i32_74 = arith.constant 256 : i32
    %236 = vector.broadcast %c256_i32_74 : i32 to vector<256x1xi32>
    %237 = arith.cmpi slt, %3, %236 : vector<256x1xi32>
    %238 = arith.andi %235, %237 : vector<256x1xi1>
    %c0_i32_75 = arith.constant 0 : i32
    %239 = vector.broadcast %c0_i32_75 : i32 to vector<256x1xi32>
    %240 = arith.cmpi sge, %5, %239 : vector<256x1xi32>
    %c16_i32_76 = arith.constant 16 : i32
    %241 = vector.broadcast %c16_i32_76 : i32 to vector<256x1xi32>
    %242 = arith.cmpi slt, %5, %241 : vector<256x1xi32>
    %243 = arith.andi %240, %242 : vector<256x1xi1>
    %244 = arith.andi %238, %243 : vector<256x1xi1>
    %cst_77 = arith.constant 0.000000e+00 : f32
    %245 = vector.shape_cast %244 : vector<256x1xi1> to vector<256x1xi1>
    %246 = vector.broadcast %245 : vector<256x1xi1> to vector<256x128xi1>
    %247 = vector.broadcast %cst_77 : f32 to vector<256x128xf32>
    %248 = arith.select %246, %165, %247 : vector<256x128xi1>, vector<256x128xf32>
    %249 = arith.truncf %248 : vector<256x128xf32> to vector<256x128xbf16>
    %c255_i32_78 = arith.constant 255 : i32
    %250 = tpu.dynamic_rotate %165 by %c255_i32_78 dim 0 : vector<256x128xf32>, i32 -> vector<256x128xf32>
    %c0_i32_79 = arith.constant 0 : i32
    %251 = vector.broadcast %c0_i32_79 : i32 to vector<256x1xi32>
    %252 = arith.cmpi sge, %3, %251 : vector<256x1xi32>
    %c256_i32_80 = arith.constant 256 : i32
    %253 = vector.broadcast %c256_i32_80 : i32 to vector<256x1xi32>
    %254 = arith.cmpi slt, %3, %253 : vector<256x1xi32>
    %255 = arith.andi %252, %254 : vector<256x1xi1>
    %c-1_i32_81 = arith.constant -1 : i32
    %256 = vector.broadcast %c-1_i32_81 : i32 to vector<256x1xi32>
    %257 = arith.cmpi sge, %5, %256 : vector<256x1xi32>
    %c15_i32_82 = arith.constant 15 : i32
    %258 = vector.broadcast %c15_i32_82 : i32 to vector<256x1xi32>
    %259 = arith.cmpi slt, %5, %258 : vector<256x1xi32>
    %260 = arith.andi %257, %259 : vector<256x1xi1>
    %261 = arith.andi %255, %260 : vector<256x1xi1>
    %cst_83 = arith.constant 0.000000e+00 : f32
    %262 = vector.shape_cast %261 : vector<256x1xi1> to vector<256x1xi1>
    %263 = vector.broadcast %262 : vector<256x1xi1> to vector<256x128xi1>
    %264 = vector.broadcast %cst_83 : f32 to vector<256x128xf32>
    %265 = arith.select %263, %250, %264 : vector<256x128xi1>, vector<256x128xf32>
    %266 = arith.truncf %265 : vector<256x128xf32> to vector<256x128xbf16>
    %c241_i32_84 = arith.constant 241 : i32
    %267 = tpu.dynamic_rotate %165 by %c241_i32_84 dim 0 : vector<256x128xf32>, i32 -> vector<256x128xf32>
    %c-16_i32_85 = arith.constant -16 : i32
    %268 = vector.broadcast %c-16_i32_85 : i32 to vector<256x1xi32>
    %269 = arith.cmpi sge, %3, %268 : vector<256x1xi32>
    %c240_i32_86 = arith.constant 240 : i32
    %270 = vector.broadcast %c240_i32_86 : i32 to vector<256x1xi32>
    %271 = arith.cmpi slt, %3, %270 : vector<256x1xi32>
    %272 = arith.andi %269, %271 : vector<256x1xi1>
    %c1_i32_87 = arith.constant 1 : i32
    %273 = vector.broadcast %c1_i32_87 : i32 to vector<256x1xi32>
    %274 = arith.cmpi sge, %5, %273 : vector<256x1xi32>
    %c17_i32_88 = arith.constant 17 : i32
    %275 = vector.broadcast %c17_i32_88 : i32 to vector<256x1xi32>
    %276 = arith.cmpi slt, %5, %275 : vector<256x1xi32>
    %277 = arith.andi %274, %276 : vector<256x1xi1>
    %278 = arith.andi %272, %277 : vector<256x1xi1>
    %cst_89 = arith.constant 0.000000e+00 : f32
    %279 = vector.shape_cast %278 : vector<256x1xi1> to vector<256x1xi1>
    %280 = vector.broadcast %279 : vector<256x1xi1> to vector<256x128xi1>
    %281 = vector.broadcast %cst_89 : f32 to vector<256x128xf32>
    %282 = arith.select %280, %267, %281 : vector<256x128xi1>, vector<256x128xf32>
    %283 = arith.truncf %282 : vector<256x128xf32> to vector<256x128xbf16>
    %c240_i32_90 = arith.constant 240 : i32
    %284 = tpu.dynamic_rotate %165 by %c240_i32_90 dim 0 : vector<256x128xf32>, i32 -> vector<256x128xf32>
    %c-16_i32_91 = arith.constant -16 : i32
    %285 = vector.broadcast %c-16_i32_91 : i32 to vector<256x1xi32>
    %286 = arith.cmpi sge, %3, %285 : vector<256x1xi32>
    %c240_i32_92 = arith.constant 240 : i32
    %287 = vector.broadcast %c240_i32_92 : i32 to vector<256x1xi32>
    %288 = arith.cmpi slt, %3, %287 : vector<256x1xi32>
    %289 = arith.andi %286, %288 : vector<256x1xi1>
    %c0_i32_93 = arith.constant 0 : i32
    %290 = vector.broadcast %c0_i32_93 : i32 to vector<256x1xi32>
    %291 = arith.cmpi sge, %5, %290 : vector<256x1xi32>
    %c16_i32_94 = arith.constant 16 : i32
    %292 = vector.broadcast %c16_i32_94 : i32 to vector<256x1xi32>
    %293 = arith.cmpi slt, %5, %292 : vector<256x1xi32>
    %294 = arith.andi %291, %293 : vector<256x1xi1>
    %295 = arith.andi %289, %294 : vector<256x1xi1>
    %cst_95 = arith.constant 0.000000e+00 : f32
    %296 = vector.shape_cast %295 : vector<256x1xi1> to vector<256x1xi1>
    %297 = vector.broadcast %296 : vector<256x1xi1> to vector<256x128xi1>
    %298 = vector.broadcast %cst_95 : f32 to vector<256x128xf32>
    %299 = arith.select %297, %284, %298 : vector<256x128xi1>, vector<256x128xf32>
    %300 = arith.truncf %299 : vector<256x128xf32> to vector<256x128xbf16>
    %c239_i32_96 = arith.constant 239 : i32
    %301 = tpu.dynamic_rotate %165 by %c239_i32_96 dim 0 : vector<256x128xf32>, i32 -> vector<256x128xf32>
    %c-16_i32_97 = arith.constant -16 : i32
    %302 = vector.broadcast %c-16_i32_97 : i32 to vector<256x1xi32>
    %303 = arith.cmpi sge, %3, %302 : vector<256x1xi32>
    %c240_i32_98 = arith.constant 240 : i32
    %304 = vector.broadcast %c240_i32_98 : i32 to vector<256x1xi32>
    %305 = arith.cmpi slt, %3, %304 : vector<256x1xi32>
    %306 = arith.andi %303, %305 : vector<256x1xi1>
    %c-1_i32_99 = arith.constant -1 : i32
    %307 = vector.broadcast %c-1_i32_99 : i32 to vector<256x1xi32>
    %308 = arith.cmpi sge, %5, %307 : vector<256x1xi32>
    %c15_i32_100 = arith.constant 15 : i32
    %309 = vector.broadcast %c15_i32_100 : i32 to vector<256x1xi32>
    %310 = arith.cmpi slt, %5, %309 : vector<256x1xi32>
    %311 = arith.andi %308, %310 : vector<256x1xi1>
    %312 = arith.andi %306, %311 : vector<256x1xi1>
    %cst_101 = arith.constant 0.000000e+00 : f32
    %313 = vector.shape_cast %312 : vector<256x1xi1> to vector<256x1xi1>
    %314 = vector.broadcast %313 : vector<256x1xi1> to vector<256x128xi1>
    %315 = vector.broadcast %cst_101 : f32 to vector<256x128xf32>
    %316 = arith.select %314, %301, %315 : vector<256x128xi1>, vector<256x128xf32>
    %317 = arith.truncf %316 : vector<256x128xf32> to vector<256x128xbf16>
    %318 = tpu.concatenate %182, %199, %216, %233, %249, %266, %283, %300, %317 in 1 : vector<256x128xbf16>, vector<256x128xbf16>, vector<256x128xbf16>, vector<256x128xbf16>, vector<256x128xbf16>, vector<256x128xbf16>, vector<256x128xbf16>, vector<256x128xbf16>, vector<256x128xbf16> -> vector<256x1152xbf16>
    %c0_102 = arith.constant 0 : index
    %c0_103 = arith.constant 0 : index
    %319 = vector.load %arg4[%c0_102, %c0_103] : memref<1152x128xbf16, #tpu.memory_space<vmem>>, vector<1152x128xbf16>
    %cst_104 = arith.constant dense<0.000000e+00> : vector<256x128xf32>
    %320 = tpu.matmul %318, %319, %cst_104 {dimension_numbers = #tpu.dot_dimension_numbers<[1], [0], [0], [1], [0, 0, 1, 1], [], []>} : vector<256x1152xbf16>, vector<1152x128xbf16>, vector<256x128xf32> -> vector<256x128xf32>
    %c0_105 = arith.constant 0 : index
    %c0_106 = arith.constant 0 : index
    %321 = vector.load %arg5[%c0_105, %c0_106] : memref<1x128xf32, #tpu.memory_space<vmem>>, vector<1x128xf32>
    %322 = vector.broadcast %321 : vector<1x128xf32> to vector<256x128xf32>
    %323 = arith.addf %320, %322 : vector<256x128xf32>
    %cst_107 = arith.constant dense<0.000000e+00> : vector<128xf32>
    %324 = vector.multi_reduction <add>, %323, %cst_107 [0] : vector<256x128xf32> to vector<128xf32>
    %325 = vector.shape_cast %324 : vector<128xf32> to vector<1x128xf32>
    %cst_108 = arith.constant 2.560000e+02 : f32
    %326 = vector.broadcast %cst_108 : f32 to vector<1x128xf32>
    %327 = arith.divf %325, %326 : vector<1x128xf32>
    %c0_109 = arith.constant 0 : index
    %c0_110 = arith.constant 0 : index
    %328 = vector.load %arg6[%c0_109, %c0_110] : memref<2x128xf32, #tpu.memory_space<vmem>>, vector<2x128xf32>
    %329 = vector.broadcast %327 : vector<1x128xf32> to vector<2x128xf32>
    %330 = arith.mulf %329, %328 : vector<2x128xf32>
    %cst_111 = arith.constant dense<0.000000e+00> : vector<2xf32>
    %331 = vector.multi_reduction <add>, %330, %cst_111 [1] : vector<2x128xf32> to vector<2xf32>
    %332 = vector.shape_cast %331 : vector<2xf32> to vector<2x1xf32>
    %c0_112 = arith.constant 0 : index
    %c0_113 = arith.constant 0 : index
    %333 = vector.load %arg7[%c0_112, %c0_113] : memref<2x1xf32, #tpu.memory_space<vmem>>, vector<2x1xf32>
    %334 = arith.addf %332, %333 : vector<2x1xf32>
    %cst_114 = arith.constant 0.000000e+00 : f32
    %335 = vector.broadcast %cst_114 : f32 to vector<2x1xf32>
    %336 = arith.maximumf %334, %335 : vector<2x1xf32>
    %c0_115 = arith.constant 0 : index
    %c0_116 = arith.constant 0 : index
    %337 = vector.load %arg8[%c0_115, %c0_116] : memref<2x128xf32, #tpu.memory_space<vmem>>, vector<2x128xf32>
    %338 = vector.broadcast %336 : vector<2x1xf32> to vector<2x128xf32>
    %339 = arith.mulf %338, %337 : vector<2x128xf32>
    %cst_117 = arith.constant dense<0.000000e+00> : vector<128xf32>
    %340 = vector.multi_reduction <add>, %339, %cst_117 [0] : vector<2x128xf32> to vector<128xf32>
    %341 = vector.shape_cast %340 : vector<128xf32> to vector<1x128xf32>
    %c0_118 = arith.constant 0 : index
    %c0_119 = arith.constant 0 : index
    %342 = vector.load %arg9[%c0_118, %c0_119] : memref<1x128xf32, #tpu.memory_space<vmem>>, vector<1x128xf32>
    %343 = arith.addf %341, %342 : vector<1x128xf32>
    %344 = arith.negf %343 : vector<1x128xf32>
    %345 = math.exp %344 : vector<1x128xf32>
    %cst_120 = arith.constant 1.000000e+00 : f32
    %346 = vector.broadcast %cst_120 : f32 to vector<1x128xf32>
    %347 = arith.addf %346, %345 : vector<1x128xf32>
    %348 = arith.divf %346, %347 : vector<1x128xf32>
    %349 = vector.broadcast %348 : vector<1x128xf32> to vector<256x128xf32>
    %350 = arith.mulf %323, %349 : vector<256x128xf32>
    %351 = arith.addf %350, %2 : vector<256x128xf32>
    %352 = vector.shape_cast %351 : vector<256x128xf32> to vector<1x16x16x128xf32>
    %c0_121 = arith.constant 0 : index
    %c0_122 = arith.constant 0 : index
    %c0_123 = arith.constant 0 : index
    %c0_124 = arith.constant 0 : index
    %353 = vector.load %arg10[%c0_121, %c0_122, %c0_123, %c0_124] : memref<1x16x16x128xf32, #tpu.memory_space<vmem>>, vector<1x16x16x128xf32>
    tpu.vector_store %arg10[%c0_121, %c0_122, %c0_123, %c0_124], %352 {strides = array<i32>} : memref<1x16x16x128xf32, #tpu.memory_space<vmem>>, vector<1x16x16x128xf32>,
    return
  }
  func.func @transform_0(%arg0: i32) -> (i32, i32, i32, i32) {
    %c0_i32 = arith.constant 0 : i32
    %c0_i32_0 = arith.constant 0 : i32
    %c0_i32_1 = arith.constant 0 : i32
    %c0_i32_2 = arith.constant 0 : i32
    return %arg0, %c0_i32, %c0_i32_0, %c0_i32_1 : i32, i32, i32, i32
  }
  func.func @transform_1(%arg0: i32) -> (i32, i32) {
    %c0_i32 = arith.constant 0 : i32
    %c0_i32_0 = arith.constant 0 : i32
    %c0_i32_1 = arith.constant 0 : i32
    return %c0_i32, %c0_i32_0 : i32, i32
  }
  func.func @transform_2(%arg0: i32) -> (i32, i32) {
    %c0_i32 = arith.constant 0 : i32
    %c0_i32_0 = arith.constant 0 : i32
    %c0_i32_1 = arith.constant 0 : i32
    return %c0_i32, %c0_i32_0 : i32, i32
  }
  func.func @transform_3(%arg0: i32) -> (i32, i32) {
    %c0_i32 = arith.constant 0 : i32
    %c0_i32_0 = arith.constant 0 : i32
    %c0_i32_1 = arith.constant 0 : i32
    return %c0_i32, %c0_i32_0 : i32, i32
  }
  func.func @transform_4(%arg0: i32) -> (i32, i32) {
    %c0_i32 = arith.constant 0 : i32
    %c0_i32_0 = arith.constant 0 : i32
    %c0_i32_1 = arith.constant 0 : i32
    return %c0_i32, %c0_i32_0 : i32, i32
  }
  func.func @transform_5(%arg0: i32) -> (i32, i32) {
    %c0_i32 = arith.constant 0 : i32
    %c0_i32_0 = arith.constant 0 : i32
    %c0_i32_1 = arith.constant 0 : i32
    return %c0_i32, %c0_i32_0 : i32, i32
  }
  func.func @transform_6(%arg0: i32) -> (i32, i32) {
    %c0_i32 = arith.constant 0 : i32
    %c0_i32_0 = arith.constant 0 : i32
    %c0_i32_1 = arith.constant 0 : i32
    return %c0_i32, %c0_i32_0 : i32, i32
  }
  func.func @transform_7(%arg0: i32) -> (i32, i32) {
    %c0_i32 = arith.constant 0 : i32
    %c0_i32_0 = arith.constant 0 : i32
    %c0_i32_1 = arith.constant 0 : i32
    return %c0_i32, %c0_i32_0 : i32, i32
  }
  func.func @transform_8(%arg0: i32) -> (i32, i32) {
    %c0_i32 = arith.constant 0 : i32
    %c0_i32_0 = arith.constant 0 : i32
    %c0_i32_1 = arith.constant 0 : i32
    return %c0_i32, %c0_i32_0 : i32, i32
  }
  func.func @transform_9(%arg0: i32) -> (i32, i32, i32, i32) {
    %c0_i32 = arith.constant 0 : i32
    %c0_i32_0 = arith.constant 0 : i32
    %c0_i32_1 = arith.constant 0 : i32
    %c0_i32_2 = arith.constant 0 : i32
    return %arg0, %c0_i32, %c0_i32_0, %c0_i32_1 : i32, i32, i32, i32
  }
}

</mosaic_0001>

<bundles_post_ra>
// kernel: tpu_custom_call.1
= control target key start
LH: loop header
LB: loop body
LE: loop exit
PB: predicated region body
PF: predicated region fallthrough
CT: control target
= control target key end

     0   :  { %14 = vsyncpa [#allocation3], 0  ;;  %s11187_s0 = inlined_call_operand.hbm [shape: f32[2,16,16,128], index: 0, kind: input, shape index: {}]   ;;  %s11188_s1 = inlined_call_operand.hbm [shape: bf16[1152,128], index: 1, kind: input, shape index: {}]   ;;  %s11189_s2 = inlined_call_operand.vmem [shape: f32[1,128], index: 2, kind: input, shape index: {}]   ;;  %s11190_s3 = inlined_call_operand.hbm [shape: bf16[1152,128], index: 3, kind: input, shape index: {}]   ;;  %s11191_s4 = inlined_call_operand.vmem [shape: f32[1,128], index: 4, kind: input, shape index: {}]   ;;  %s11192_s5 = inlined_call_operand.vmem [shape: f32[2,128], index: 5, kind: input, shape index: {}]   ;;  %s11193_s6 = inlined_call_operand.vmem [shape: f32[2,1], index: 6, kind: input, shape index: {}]   ;;  %s11194_s7 = inlined_call_operand.vmem [shape: f32[2,128], index: 7, kind: input, shape index: {}]   ;;  %s11195_s8 = inlined_call_operand.vmem [shape: f32[1,128], index: 8, kind: input, shape index: {}]   ;;  %s11196_s9 = inlined_call_operand.hbm [shape: f32[2,16,16,128], index: 9, kind: output, shape index: {}]  }
   0x1   :  { %16 = vsyncpa [#allocation3 + $0x1], 0 }
   0x2   :  { %17 = vsyncpa [#allocation6], 0 }
   0x3   :  { %18 = vsyncpa [#allocation4], 0 }
   0x4   :  { %20 = vsyncpa [#allocation4 + $0x1], 0  ;;  %s8362_s30 = smov 0   ;;  %s8364_s10 = smov 0  }
   0x5   :  { %s8366_s11 = smov 0   ;;  %s8368_s12 = smov 0  }
   0x6 LB: > { %s8383_s13 = sadd.s32 4294967295, %s8297_s12   ;;  %s6124_s14 = sadd.s32 4294967294, %s8297_s12   ;;  %s8297_s12 = sphi %s8368_s12, %s11912_s12   ;;  %s8293_s11 = sphi %s8366_s11, %s11911_s11   ;;  %s8289_s10 = sphi %s8364_s10, %s11910_s10   ;;  %s8285_s30 = sphi %s8362_s30, %s11909_s30  }
   0x7   : > { %p46_p0 = scmp.ne.s32.totalorder %s8289_s10, %s8285_s30  ;;  %p11197_p1 = scmp.eq.s32.totalorder %s8383_s13, 0 }
   0x8   : > { %p244_p3 = scmp.eq.s32.totalorder %s6124_s14, 1  ;;  %p6125_p5 = scmp.ge.s32.totalorder %s8297_s12, 1 }
   0x9   : > { %p8392_p4 = por %p11197_p1, %p46_p0  ;;  %p251_p7 = scmp.lt.s32.totalorder %s8297_s12, 3 }
   0xa   : > { %p8397_p6 = por %p244_p3, %p46_p0  ;;  %s8299_s18 = smov [#allocation5]  }
   0xb   : > { %s11393_s15 = scalar_select %p8392_p4, 1, 0 }
   0xc   : > { %s11394_s16 = scalar_select %p8397_p6, 1, 0 }
   0xd   : > { %p8402_p8 = pnand %p6125_p5, %p251_p7  ;;  %s263_s19 = sshll.u32 %s8299_s18, 4  ;;  %s8406_s19 = int_to_ptr.vmem [resolvable:$true] %s263_s19 }
   0xe   : > { %11395 = sst [smem:[#allocation12_spill]] %s11394_s16  ;;  %s8300_s21 = smov [#allocation7]  }
   0xf   : > { %p7895_p9 = pneg %p8402_p8  ;;  %s279_s22 = sshll.u32 %s8300_s21, 4  ;;  %s8417_s22 = int_to_ptr.vmem [resolvable:$true] %s279_s22 }
  0x10   : > { %s8141_s25 = scalar_lea.hbm %s11188_s1, 9216 }
  0x11   : > { %p8413_p11 = pnand %p7895_p9, %p11197_p1  ;;  %p8142_p12 = scmp.ne.s32.totalorder %s11188_s1, %s8141_s25 }
  0x12   : > { %p8148_p5 = scmp.lt.u32.totalorder %s8141_s25, %s11188_s1 }
  0x13   : > { %p8143_p13 = pneg %p8413_p11 }
  0x15   : > { %p8144_p0 = pnand %p8143_p13, %p8142_p12 }
  0x17   : > { %p8145_p3 = pneg %p8144_p0 }
  0x19   : > { %p8150_p7 = pnand %p8148_p5, %p8145_p3 }
  0x1b   : > { %8153 = shalt.err (!%p8150_p7)
}
  0x1c   : > { %s8154_s14 = scalar_lea.vmem %s8406_s19, 9216  ;;  %p8162_p2 = scmp.lt.s32.totalorder %s8406_s19, %s8406_s19 }
  0x1d   : > { %p8155_p9 = scmp.ne.s32.totalorder %s8406_s19, %s8154_s14  ;;  %p8163_p12 = scmp.lt.s32.totalorder %s8154_s14, %s8154_s14 }
  0x1f   : > { %p8157_p10 = pnand %p8155_p9, %p8143_p13  ;;  %p8164_p0 = por %p8163_p12, %p8162_p2 }
  0x21   : > { %p8158_p1 = pneg %p8157_p10 }
  0x23   : > { %p8165_p6 = pnand %p8164_p0, %p8158_p1 }
  0x25   : > { %8168 = shalt.err (!%p8165_p6)
}
  0x26   : > { %s8301_s18 = smov 64   ;;  %s8302_s21 = smov 4  }
  0x27   : > { %7898 = dma.hbm_to_vmem [thread:$0]  (!%p8413_p11), %s11188_s1, 9216, %s8406_s19, [#allocation6], %s8301_s18, %s8301_s18, %s8302_s21  }
  0x28   : > { %s8169_s27 = scalar_lea.hbm %s11190_s3, 9216 }
  0x29   : > { %p8170_p2 = scmp.ne.s32.totalorder %s11190_s3, %s8169_s27  ;;  %p8176_p10 = scmp.lt.u32.totalorder %s8169_s27, %s11190_s3 }
  0x2b   : > { %p8172_p1 = pnand %p8170_p2, %p8143_p13 }
  0x2d   : > { %p8173_p6 = pneg %p8172_p1 }
  0x2f   : > { %p8178_p3 = pnand %p8176_p10, %p8173_p6 }
  0x31   : > { %8181 = shalt.err (!%p8178_p3)
}
  0x32   : > { %s8182_s19 = scalar_lea.vmem %s8417_s22, 9216  ;;  %p8190_p12 = scmp.lt.s32.totalorder %s8417_s22, %s8417_s22 }
  0x33   : > { %p8183_p5 = scmp.ne.s32.totalorder %s8417_s22, %s8182_s19  ;;  %p8191_p0 = scmp.lt.s32.totalorder %s8182_s19, %s8182_s19 }
  0x35   : > { %p8185_p7 = pnand %p8183_p5, %p8143_p13  ;;  %p8192_p2 = por %p8191_p0, %p8190_p12 }
  0x37   : > { %p8186_p9 = pneg %p8185_p7 }
  0x39   : > { %p8193_p1 = pnand %p8192_p2, %p8186_p9 }
  0x3b   : > { %8196 = shalt.err (!%p8193_p1)
}
  0x3c   : > { %7901 = dma.hbm_to_vmem [thread:$0]  (!%p8413_p11), %s11190_s3, 9216, %s8417_s22, [#allocation6], %s8301_s18, %s8301_s18, %s8302_s21  }
  0x3d   : > { %s8472_s24 = sadd.s32 1, %s8297_s12   ;;  %s33_s20 = sadd.s32 1, %s8293_s11 }
  0x3e   : > { %s30_s25 = ssub.s32 %s8297_s12, %s8472_s24  ;;  %p40_p13 = scmp.ne.s32.totalorder %s8293_s11, %s8289_s10 }
  0x3f   : > { %p31_p6 = scmp.eq.s32.totalorder %s30_s25, 0  ;;  %p41_p10 = scmp.eq.s32.totalorder %s8297_s12, 0 }
  0x40   : > { %p11398_p3 = scmp.eq.s32.totalorder %s8383_s13, 1  ;;  %p7912_p7 = scmp.lt.s32.totalorder %s8297_s12, 2 }
  0x41   : > { %s8488_s27 = scalar_select %p31_p6, %s8293_s11, %s33_s20  }
  0x42   : > { %p8482_p5 = por %p11398_p3, %p40_p13  ;;  %p42_p9 = por %p41_p10, %p40_p13 }
  0x43   : > { %s308_s28 = sand.u32 1, %s8293_s11   ;;  %s6841_s22 = sshll.u32 %s8297_s12, 12 }
  0x44   : > { %s11399_s26 = scalar_select %p8482_p5, 1, 0 }
  0x45   : > { %s6129_s29 = sshll.u32 %s308_s28, 8  ;;  %s8495_s14 = scalar_lea.hbm %s11187_s0, %s6841_s22 }
  0x46   : > { %s312_s19 = scalar_lea.vmem [#allocation2], %s6129_s29  ;;  %p8499_p11 = pnand %p7912_p7, %p42_p9 }
  0x47   : > { %s319_s16 = sshll.u32 %s312_s19, 4  ;;  %s8503_s20 = scalar_lea.sflag [#allocation3], %s308_s28  ;;  %s8497_s16 = int_to_ptr.vmem [resolvable:$true] %s319_s16 }
  0x48   : > { %s8197_s25 = scalar_lea.hbm %s8495_s14, 4096  ;;  %p8199_p0 = pneg %p8499_p11 }
  0x49   : > { %p8198_p12 = scmp.ne.s32.totalorder %s8495_s14, %s8197_s25  ;;  %s8202_s18 = scalar_lea.hbm %s11187_s0, 8192 }
  0x4a   : > { %p8203_p13 = scmp.lt.u32.totalorder %s8495_s14, %s11187_s0  ;;  %p8204_p6 = scmp.lt.u32.totalorder %s8202_s18, %s8197_s25 }
  0x4b   : > { %p8200_p2 = pnand %p8199_p0, %p8198_p12  ;;  %p8206_p3 = scmp.lt.u32.totalorder %s8197_s25, %s8495_s14 }
  0x4c   : > { %p8205_p10 = por %p8204_p6, %p8203_p13 }
  0x4d   : > { %p8201_p1 = pneg %p8200_p2 }
  0x4e   : > { %p8207_p7 = por %p8206_p3, %p8205_p10 }
  0x50   : > { %p8208_p9 = pnand %p8207_p7, %p8201_p1 }
  0x52   : > { %8211 = shalt.err (!%p8208_p9)
}
  0x53   : > { %s8212_s28 = scalar_lea.vmem %s8497_s16, 4096  ;;  %s8303_s29 = smov [#allocation2]  }
  0x54   : > { %p8213_p12 = scmp.ne.s32.totalorder %s8497_s16, %s8212_s28  ;;  %s8217_s22 = sshll.u32 %s8303_s29, 4  ;;  %s8218_s22 = int_to_ptr.vmem [resolvable:$false] %s8217_s22 }
  0x55   : > { %s8219_s21 = scalar_lea.vmem %s8218_s22, 8192  ;;  %p8220_p4 = scmp.lt.s32.totalorder %s8497_s16, %s8218_s22 }
  0x56   : > { %p8215_p2 = pnand %p8213_p12, %p8199_p0  ;;  %p8221_p13 = scmp.lt.s32.totalorder %s8219_s21, %s8212_s28 }
  0x58   : > { %p8216_p5 = pneg %p8215_p2  ;;  %p8222_p6 = por %p8221_p13, %p8220_p4 }
  0x5a   : > { %p8223_p10 = pnand %p8222_p6, %p8216_p5 }
  0x5c   : > { %8226 = shalt.err (!%p8223_p10)
}
  0x5d   : > { %s8304_s25 = smov 128   ;;  %s8305_s18 = smov 8  }
  0x5e   : > { %7905 = dma.hbm_to_vmem [thread:$0]  (!%p8499_p11), %s8495_s14, 4096, %s8497_s16, %s8503_s20, %s8304_s25, %s8304_s25, %s8305_s18  }
  0x5f   : > { %331 = sbr.rel (%p8402_p8) target bundleno = 1582 (0x62e), region = 56 }
  0x66   : > { %s8534_s19 = sand.u32 1, %s8289_s10   ;;  %p11401_p4 = scmp.ne.s32.totalorder %s11393_s15, 0 }
  0x67   : > { %s6133_s28 = sshll.u32 %s8534_s19, 8  ;;  %s334_s29 = scalar_lea.sflag [#allocation3], %s8534_s19 }
  0x68   : > { %s8540_s22 = scalar_lea.vmem [#allocation2], %s6133_s28 }
  0x69   : > { %8272 = dma.done.wait (%p11401_p4), %s334_s29, 4096  }
  0x6a   : > { %8274 = vsyncadd (%p11401_p4), %s334_s29, 4294963200  ;;  %p11402_p5 = scmp.eq.s32.totalorder %s8383_s13, 0 }
  0x6c   : > { %8276 = dma.done.wait (%p11402_p5), [#allocation6], 18432   ;;  %p11403_p8 = pmov %p11402_p5 }
  0x6d   : > { %v11202_v0 = vmov 0.0|0.0   ;;  %v7960_v1 = vld [vmem:[#allocation5 + $0x40] sm:$0xff]   ;;  %v7964_v5 = vld [vmem:[#allocation5 + $0x48] sm:$0xff]   ;;  %v7968_v9 = vld [vmem:[#allocation5 + $0x50] sm:$0xff]   ;;  %v413_v23 = vlaneseq  ;;  %vm11214_vm4 = vmmov 1   ;;  %v11410_v55 = vmov 0 }
  0x6e   : > { %8278 = vsyncadd (%p11403_p8), [#allocation6], 4294948864  ;;  %3095 = vmatprep.mubr.bf16.mxu0 %v11202_v0  ;;  %v7961_v2 = vld [vmem:[#allocation5] sm:$0xff]   ;;  %6843 = vmatprep.subr.bf16.mxu0 %v7960_v1  ;;  %v7965_v6 = vld [vmem:[#allocation5 + $0x8] sm:$0xff]   ;;  %s11065_s14 = scalar_lea.vmem [#allocation8], %s6133_s28  ;;  %s6842_s28 = sshll.u32 %s8383_s13, 12 }
  0x6f   : > { %v7962_v3 = vld [vmem:[#allocation5 + $0xc0] sm:$0xff]   ;;  %6844 = vmatpush3.bf16.msra.mxu0 %v7961_v2  ;;  %v7966_v7 = vld [vmem:[#allocation5 + $0xc8] sm:$0xff]   ;;  %v7969_v10 = vld [vmem:[#allocation5 + $0x10] sm:$0xff]   ;;  %v8551_v28 = vshrl.u32 %v413_v23, 7  ;;  %s6032_s16 = sshll.u32 %s11065_s14, 4  ;;  %s11119_s21 = scalar_lea.hbm %s11196_s9, %s6842_s28  ;;  %s11123_s16 = int_to_ptr.vmem [resolvable:$true] %s6032_s16 }
  0x70   : > { %v7963_v4 = vld [vmem:[#allocation5 + $0x80] sm:$0xff]   ;;  %6955 = vmatprep.subr.bf16.mxu1 %v7962_v3  ;;  %6845 = vmatprep.subr.bf16.mxu0 %v7964_v5  ;;  %v7967_v8 = vld [vmem:[#allocation5 + $0x88] sm:$0xff]   ;;  %v7970_v11 = vld [vmem:[#allocation5 + $0xd0] sm:$0xff]   ;;  %s6019_s13 = scalar_lea.sflag [#allocation4], %s8534_s19  ;;  %s8227_s25 = scalar_lea.vmem %s11123_s16, 4096 }
  0x71   : > { %6956 = vmatpush3.bf16.msra.mxu1 %v7963_v4  ;;  %v7971_v12 = vld [vmem:[#allocation5 + $0x90] sm:$0xff]   ;;  %v7972_v13 = vld [vmem:[#allocation5 + $0x58] sm:$0xff]   ;;  %v7976_v17 = vld [vmem:[#allocation5 + $0x60] sm:$0xff]   ;;  %11404 = vst [vmem:[#allocation13_spill] sm:$0xff] %v8551_v28  ;;  %v416_v31 = vadd.s32 16, %v8551_v28  ;;  %v446_v34 = vand.u32 15, %v8551_v28  ;;  %p8228_p11 = scmp.ne.s32.totalorder %s11123_s16, %s8227_s25 }
  0x72   : > { %6957 = vmatprep.subr.bf16.mxu1 %v7966_v7  ;;  %v7973_v14 = vld [vmem:[#allocation5 + $0x18] sm:$0xff]   ;;  %v7977_v18 = vld [vmem:[#allocation5 + $0x20] sm:$0xff]   ;;  %v7980_v21 = vld [vmem:[#allocation5 + $0x68] sm:$0xff]   ;;  %vm11201_vm0 = vcmp.lt.s32.totalorder %v8551_v28, 1  ;;  %v417_v43 = vadd.s32 24, %v8551_v28  ;;  %v418_v44 = vadd.s32 32, %v8551_v28 }
  0x73   : > { %6846 = vmatpush3.bf16.msra.mxu0 %v7965_v6  ;;  %v7974_v15 = vld [vmem:[#allocation5 + $0xd8] sm:$0xff]   ;;  %v7978_v19 = vld [vmem:[#allocation5 + $0xe0] sm:$0xff]   ;;  %v7981_v22 = vld [vmem:[#allocation5 + $0x28] sm:$0xff]   ;;  %v448_v37 = vand.u32 15, %v416_v31  ;;  %vm8563_vm1 = vcmp.ge.s32.totalorder %v446_v34, 1  ;;  %vm11206_vm3 = vcmp.lt.s32.totalorder %v8551_v28, 7 }
  0x74   : > { %6847 = vmatprep.subr.bf16.mxu0 %v7968_v9  ;;  %v7975_v16 = vld [vmem:[#allocation5 + $0x98] sm:$0xff]   ;;  %v7979_v20 = vld [vmem:[#allocation5 + $0xa0] sm:$0xff]   ;;  %v7982_v24 = vld [vmem:[#allocation5 + $0xe8] sm:$0xff]   ;;  %v419_v52 = vadd.s32 40, %v8551_v28  ;;  %v449_v2 = vand.u32 15, %v417_v43  ;;  %v450_v3 = vand.u32 15, %v418_v44 }
  0x75   : > { %6958 = vmatpush3.bf16.msra.mxu1 %v7967_v8  ;;  %v7983_v25 = vld [vmem:[#allocation5 + $0xa8] sm:$0xff]   ;;  %v7984_v26 = vld [vmem:[#allocation5 + $0x70] sm:$0xff]   ;;  %v7988_v32 = vld [vmem:[#allocation5 + $0x78] sm:$0xff]   ;;  %vm8575_vm2 = vcmp.ge.s32.totalorder %v448_v37, 1  ;;  %v11413_v6 = vmov 0  ;;  %p11905_p0 = scmp.ne.s32.totalorder %s11399_s26, 0 }
  0x76   : > { %6959 = vmatprep.subr.bf16.mxu1 %v7970_v11  ;;  %v7985_v27 = vld [vmem:[#allocation5 + $0x30] sm:$0xff]   ;;  %v7989_v33 = vld [vmem:[#allocation5 + $0x38] sm:$0xff]   ;;  %v7992_v38 = vld [vmem:[#allocation5 + $0x140] sm:$0xff]   ;;  %vm1219_vm7 = vcmp.lt.s32.totalorder %v449_v2, 15  ;;  %vm8641_vm8 = vcmp.ge.s32.totalorder %v450_v3, 1  ;;  %v423_v2 = vadd.s32 72, %v8551_v28 }
  0x77   : > { %6848 = vmatpush3.bf16.msra.mxu0 %v7969_v10  ;;  %v7986_v29 = vld [vmem:[#allocation5 + $0xf0] sm:$0xff]   ;;  %v7990_v35 = vld [vmem:[#allocation5 + $0xf8] sm:$0xff]   ;;  %v8557_v39 = vld [vmem:[%s8540_s22] sm:$0xff]  ;;  %p8229_p1 = pnand %p8228_p11, %p11905_p0 }
  0x78   : > { %6849 = vmatprep.subr.bf16.mxu0 %v7972_v13  ;;  %v7987_v30 = vld [vmem:[#allocation5 + $0xb0] sm:$0xff]   ;;  %v7991_v36 = vld [vmem:[#allocation5 + $0xb8] sm:$0xff]   ;;  %11405 = vst [vmem:[#allocation14_spill] sm:$0xff] %v8557_v39  ;;  %v382_v40 = vld [vmem:[%s8540_s22 + $0x8] sm:$0xff]  ;;  %v478_v45 = vrot.slane %v8557_v39, 7  ;;  %v11204_v58 = vrot.slane %v8557_v39, 1 }
  0x79   : > { %6960 = vmatpush3.bf16.msra.mxu1 %v7971_v12  ;;  %v8561_v41 = vld [vmem:[%s8540_s22 + $0xf8] sm:$0xff]  ;;  %v479_v46 = vrot.slane %v382_v40, 7  ;;  %v7993_v48 = vld [vmem:[#allocation5 + $0x100] sm:$0xff]   ;;  %v8573_v49 = vpack.c.bf16 %v382_v40, %v8557_v39  ;;  %v8580_v51 = vld [vmem:[%s8540_s22 + $0x10] sm:$0xff]  ;;  %v1120_v61 = vrot.slane %v382_v40, 1  ;;  %v9016_v39 = vadd.s32 184, %v8551_v28  ;;  %p8230_p3 = pneg %p8229_p1 }
  0x7a   : > { %6961 = vmatprep.subr.bf16.mxu1 %v7974_v15  ;;  %v11205_v47 = vrot.slane %v8561_v41, 7  ;;  %vm8593_vm5 = vmpackc.low %vm11214_vm4, %vm8563_vm1  ;;  %v384_v56 = vld [vmem:[%s8540_s22 + $0x18] sm:$0xff]  ;;  %v480_v57 = vrot.slane %v8580_v51, 7  ;;  %v1121_v62 = vrot.slane %v8580_v51, 1  ;;  %v7994_v63 = vld [vmem:[#allocation5 + $0x148] sm:$0xff]   ;;  %v420_v15 = vadd.s32 48, %v8551_v28 }
  0x7b   : > { %6850 = vmatpush3.bf16.msra.mxu0 %v7973_v14  ;;  %v541_v53 = vsel %vm11201_vm0, %v478_v45, %v479_v46  ;;  %v11411_v55 = vsel %vm8593_vm5, 4294967295, %v11410_v55  ;;  %v481_v60 = vrot.slane %v384_v56, 7  ;;  %v8605_v4 = vld [vmem:[%s8540_s22 + $0x20] sm:$0xff]  ;;  %v8608_v5 = vld [vmem:[%s8540_s22 + $0x28] sm:$0xff]  ;;  %vm8615_vm6 = vmpackc.low %vm11214_vm4, %vm8575_vm2  ;;  %v8622_v8 = vpack.c.bf16 %v384_v56, %v8580_v51 }
  0x7c   : > { %6851 = vmatprep.subr.bf16.mxu0 %v7976_v17  ;;  %v542_v54 = vsel %vm11201_vm0, %v11205_v47, %v478_v45  ;;  %11412 = vst [vmem:[#allocation15_spill] sm:$0xff] %v11411_v55  ;;  %v540_v1 = vsel %vm11201_vm0, %v479_v46, %v480_v57  ;;  %v11414_v6 = vsel %vm8615_vm6, 4294967295, %v11413_v6  ;;  %v482_v9 = vrot.slane %v8605_v4, 7  ;;  %v7995_v11 = vld [vmem:[#allocation5 + $0x108] sm:$0xff]   ;;  %vm8659_vm9 = vmpackc.low %vm1219_vm7, %vm11214_vm4  ;;  %v7999_v37 = vld [vmem:[#allocation5 + $0x118] sm:$0xff]  }
  0x7d   : > { %6962 = vmatpush3.bf16.msra.mxu1 %v7975_v16  ;;  %v6211_v59 = vpack.c.bf16 %v541_v53, %v542_v54  ;;  %v539_v7 = vsel %vm11201_vm0, %v480_v57, %v481_v60  ;;  %v483_v10 = vrot.slane %v8608_v5, 7  ;;  %v1181_v13 = vsel %vm11206_vm3, %v1120_v61, %v1121_v62  ;;  %vm8669_vm10 = vmpackc.low %vm11214_vm4, %vm8641_vm8  ;;  %v8704_v46 = vld [vmem:[%s8540_s22 + $0x40] sm:$0xff]  ;;  %v8708_v50 = vld [vmem:[%s8540_s22 + $0x48] sm:$0xff] }
  0x7e   : > { %6963 = vmatprep.subr.bf16.mxu1 %v7978_v19  ;;  %v8627_v12 = vpack.c.bf16 %v539_v7, %v540_v1  ;;  %v1182_v14 = vsel %vm11206_vm3, %v11204_v58, %v1120_v61  ;;  %v8650_v19 = vld [vmem:[%s8540_s22 + $0x30] sm:$0xff]  ;;  %v8677_v34 = vpack.c.bf16 %v8608_v5, %v8605_v4  ;;  %v422_v45 = vadd.s32 64, %v8551_v28  ;;  %v8000_v51 = vld [vmem:[#allocation5 + $0x1c0] sm:$0xff]  }
  0x7f   : > { %6852 = vmatpush3.bf16.msra.mxu0 %v7977_v18  ;;  %6257 = vmatprep.mubr.msk.bf16.mxu1 %vm8593_vm5, %v6211_v59  ;;  %v537_v17 = vsel %vm11201_vm0, %v482_v9, %v483_v10  ;;  %v538_v18 = vsel %vm11201_vm0, %v481_v60, %v482_v9  ;;  %v8656_v23 = vpack.c.bf16 %v1181_v13, %v1182_v14  ;;  %v484_v31 = vrot.slane %v8650_v19, 7  ;;  %v8001_v54 = vld [vmem:[#allocation5 + $0x180] sm:$0xff]   ;;  %v8004_v13 = vld [vmem:[#allocation5 + $0x1c8] sm:$0xff]   ;;  %v8010_v14 = vld [vmem:[#allocation5 + $0x170] sm:$0xff]  }
  0x80   : > { %6853 = vmatprep.subr.bf16.mxu0 %v7980_v21  ;;  %v451_v21 = vand.u32 15, %v419_v52  ;;  %v1124_v53 = vrot.slane %v8608_v5, 1  ;;  %v1125_v57 = vrot.slane %v8650_v19, 1  ;;  %v11424_v60 = vmov 0  ;;  %v8003_v3 = vld [vmem:[#allocation5 + $0x120] sm:$0xff]   ;;  %v8915_v58 = vld [vmem:[%s8540_s22 + $0x90] sm:$0xff] }
  0x81   : > { %6964 = vmatpush3.bf16.msra.mxu1 %v7979_v20  ;;  %v7996_v20 = vld [vmem:[#allocation5 + $0x150] sm:$0xff]   ;;  %v536_v44 = vsel %vm11201_vm0, %v483_v10, %v484_v31  ;;  %v454_v61 = vand.u32 15, %v422_v45  ;;  %v425_v5 = vadd.s32 88, %v8551_v28  ;;  %v8794_v45 = vadd.s32 104, %v8551_v28 }
  0x82   : > { %6965 = vmatprep.subr.bf16.mxu1 %v7982_v24  ;;  %v7997_v24 = vld [vmem:[#allocation5 + $0x110] sm:$0xff]   ;;  %vm1221_vm11 = vcmp.lt.s32.totalorder %v451_v21, 15  ;;  %v1177_v7 = vsel %vm11206_vm3, %v1124_v53, %v1125_v57  ;;  %v8006_v21 = vld [vmem:[#allocation5 + $0x168] sm:$0xff]  }
  0x83   : > { %6854 = vmatpush3.bf16.msra.mxu0 %v7981_v22  ;;  %v8654_v22 = vld [vmem:[%s8540_s22 + $0x38] sm:$0xff]  ;;  %vm8694_vm12 = vmpackc.low %vm1221_vm11, %vm11214_vm4  ;;  %vm8750_vm1 = vcmp.ge.s32.totalorder %v454_v61, 1  ;;  %v11465_v61 = vmov 0  ;;  %v8977_v10 = vld [vmem:[%s8540_s22 + $0xb0] sm:$0xff] }
  0x84   : > { %6855 = vmatprep.subr.bf16.mxu0 %v7984_v26  ;;  %v8663_v26 = vpack.c.bf16 %v537_v17, %v538_v18  ;;  %v8725_v1 = vpack.c.bf16 %v8654_v22, %v8650_v19  ;;  %v8005_v17 = vld [vmem:[#allocation5 + $0x188] sm:$0xff]   ;;  %v455_v18 = vand.u32 15, %v423_v2  ;;  %v8760_v19 = vld [vmem:[%s8540_s22 + $0x58] sm:$0xff]  ;;  %vm8779_vm7 = vmpackc.low %vm11214_vm4, %vm8750_vm1  ;;  %v8827_v2 = vadd.s32 128, %v8551_v28 }
  0x85   : > { %6966 = vmatpush3.bf16.msra.mxu1 %v7983_v25 }
  0x86   : > { %6967 = vmatprep.subr.bf16.mxu1 %v7986_v29  ;;  %v1123_v29 = vrot.slane %v8605_v4, 1  ;;  %v424_v4 = vadd.s32 80, %v8551_v28  ;;  %vm8785_vm8 = vcmp.lt.s32.totalorder %v455_v18, 15  ;;  %v8855_v18 = vadd.s32 136, %v8551_v28 }
  0x87   : > { %6856 = vmatpush3.bf16.msra.mxu0 %v7985_v27  ;;  %v1122_v27 = vrot.slane %v384_v56, 1  ;;  %vm8860_vm1 = vmpackc.low %vm8785_vm8, %vm11214_vm4  ;;  %vm11454_vm8 = vcmp.lt.s32.totalorder %v8551_v28, 1 }
  0x88   : > { %6857 = vmatprep.subr.bf16.mxu0 %v7988_v32  ;;  %v485_v32 = vrot.slane %v8654_v22, 7  ;;  %v1178_v9 = vsel %vm11206_vm3, %v1123_v29, %v1124_v53  ;;  %v8807_v53 = vadd.s32 112, %v8551_v28 }
  0x89   : > { %6968 = vmatpush3.bf16.msra.mxu1 %v7987_v30  ;;  %v11419_v30 = vmov 0  ;;  %v1180_v40 = vsel %vm11206_vm3, %v1121_v62, %v1122_v27  ;;  %v486_v62 = vrot.slane %v8704_v46, 7 }
  0x8a   : > { %6969 = vmatprep.subr.bf16.mxu1 %v7990_v35  ;;  %v11420_v30 = vsel %vm8669_vm10, 4294967295, %v11419_v30  ;;  %v452_v35 = vand.u32 15, %v420_v15  ;;  %v535_v43 = vsel %vm11201_vm0, %v484_v31, %v485_v32 }
  0x8b   : > { %6858 = vmatpush3.bf16.msra.mxu0 %v7989_v33  ;;  %11421 = vst [vmem:[#allocation16_spill] sm:$0xff] %v11420_v30  ;;  %v7998_v33 = vld [vmem:[#allocation5 + $0x158] sm:$0xff]   ;;  %v8713_v56 = vpack.c.bf16 %v535_v43, %v536_v44  ;;  %v534_v16 = vsel %vm11201_vm0, %v485_v32, %v486_v62 }
  0x8c   : > { %7067 = vmatprep.subr.bf16.mxu0 %v7992_v38  ;;  %v1179_v38 = vsel %vm11206_vm3, %v1122_v27, %v1123_v29  ;;  %vm645_vm13 = vcmp.ge.s32.totalorder %v452_v35, 1  ;;  %v456_v27 = vand.u32 15, %v424_v4  ;;  %v457_v29 = vand.u32 15, %v425_v5  ;;  %v8927_v43 = vld [vmem:[%s8540_s22 + $0x98] sm:$0xff] }
  0x8d   : > { %6970 = vmatpush3.bf16.msra.mxu1 %v7991_v36  ;;  %v421_v36 = vadd.s32 56, %v8551_v28  ;;  %v8710_v52 = vpack.c.bf16 %v1179_v38, %v1180_v40  ;;  %vm8717_vm14 = vmpackc.low %vm11214_vm4, %vm645_vm13  ;;  %v1127_v35 = vrot.slane %v8704_v46, 1  ;;  %v489_v38 = vrot.slane %v8760_v19, 7  ;;  %v8007_v40 = vld [vmem:[#allocation5 + $0x128] sm:$0xff]  }
  0x8e   : > { %3096 = vmatmul.mubr.bf16.vlgmr.msra.gmra.mrb[0].mxu0 %v11202_v0  ;;  %7179 = vmatprep.subr.bf16.mxu1 %v8000_v51  ;;  %v11425_v60 = vsel %vm8717_vm14, 4294967295, %v11424_v60  ;;  %vm8799_vm11 = vcmp.ge.s32.totalorder %v456_v27, 1  ;;  %v8804_v51 = vld [vmem:[%s8540_s22 + $0x60] sm:$0xff]  ;;  %vm8819_vm13 = vcmp.lt.s32.totalorder %v457_v29, 15  ;;  %v1128_v5 = vrot.slane %v8708_v50, 1 }
  0x8f   : > { %7068 = vmatpush3.bf16.msra.mxu0 %v7993_v48  ;;  %3103 = vmatprep.mubr.bf16.mxu0 %v8573_v49  ;;  %v453_v48 = vand.u32 15, %v421_v36  ;;  %11426 = vst [vmem:[#allocation17_spill] sm:$0xff] %v11425_v60  ;;  %v11434_v36 = vmov 0  ;;  %v490_v27 = vrot.slane %v8804_v51, 7  ;;  %v9077_v60 = vld [vmem:[%s8540_s22 + $0xd0] sm:$0xff] }
  0x90   : > { %7069 = vmatprep.subr.bf16.mxu0 %v7994_v63  ;;  %3257 = vmatmul.mubr.bf16.vlgmr.msra.gmra.mrb[0].mxu1 %v11202_v0  ;;  %v487_v63 = vrot.slane %v8708_v50, 7  ;;  %v11435_v36 = vsel %vm8779_vm7, 4294967295, %v11434_v36  ;;  %v8956_v0 = vadd.s32 160, %v8551_v28 }
  0x91   : > { %6260 = vmatprep.mubr.msk.bf16.mxu1 %vm8615_vm6, %v8627_v12  ;;  %7180 = vmatpush3.bf16.msra.mxu1 %v8001_v54  ;;  %vm8740_vm15 = vcmp.lt.s32.totalorder %v453_v48, 15  ;;  %11436 = vst [vmem:[#allocation19_spill] sm:$0xff] %v11435_v36 }
  0x92   : > { %v533_v15 = vsel %vm11201_vm0, %v486_v62, %v487_v63  ;;  %7181 = vmatprep.subr.bf16.mxu1 %v8004_v13  ;;  %vm8768_vm2 = vmpackc.low %vm8740_vm15, %vm11214_vm4  ;;  %v8824_v62 = vld [vmem:[%s8540_s22 + $0x68] sm:$0xff]  ;;  %v459_v13 = vand.u32 15, %v8794_v45  ;;  %v8883_v45 = vadd.s32 144, %v8551_v28 }
  0x93   : > { %7070 = vmatpush3.bf16.msra.mxu0 %v7995_v11  ;;  %v8745_v11 = vld [vmem:[%s8540_s22 + $0x50] sm:$0xff]  ;;  %v8772_v32 = vpack.c.bf16 %v533_v15, %v534_v16  ;;  %v11207_v29 = vrot.slane %v8824_v62, 7 }
  0x94   : > { %7071 = vmatprep.subr.bf16.mxu0 %v7996_v20  ;;  %v426_v20 = vadd.s32 96, %v8551_v28  ;;  %v8848_v16 = vld [vmem:[%s8540_s22 + $0x70] sm:$0xff] }
  0x95   : > { %7182 = vmatpush3.bf16.msra.mxu1 %v8005_v17  ;;  %11433 = vst [vmem:[#allocation18_spill] sm:$0xff] %v8772_v32  ;;  %v9019_v17 = vld [vmem:[%s8540_s22 + $0xc0] sm:$0xff] }
  0x96   : > { %6212 = vmatmul.mubr.msk.bf16.gmra.mrb[4].mxu0 %vm8615_vm6, %v6211_v59  ;;  %v8002_v59 = vld [vmem:[#allocation5 + $0x160] sm:$0xff]   ;;  %v458_v44 = vand.u32 15, %v426_v20  ;;  %v11446_v20 = vmov 0 }
  0x97   : > { %3111 = vmatprep.mubr.bf16.mxu0 %v8622_v8  ;;  %7072 = vmatpush3.bf16.msra.mxu0 %v7997_v24  ;;  %v8763_v24 = vpack.c.bf16 %v1177_v7, %v1178_v9  ;;  %v8009_v7 = vld [vmem:[#allocation5 + $0x190] sm:$0xff]   ;;  %v1129_v9 = vrot.slane %v8745_v11, 1  ;;  %v11447_v20 = vsel %vm8860_vm1, 4294967295, %v11446_v20 }
  0x98   : > { %6263 = vmatmul.mubr.msk.bf16.gmra.mrb[4].mxu1 %vm8659_vm9, %v8656_v23  ;;  %7073 = vmatprep.subr.bf16.mxu0 %v7998_v33  ;;  %v1126_v33 = vrot.slane %v8654_v22, 1  ;;  %v8791_v22 = vpack.c.bf16 %v8708_v50, %v8704_v46  ;;  %v8810_v46 = vadd.s32 120, %v8551_v28  ;;  %vm8839_vm15 = vcmp.ge.s32.totalorder %v458_v44, 1  ;;  %v8851_v50 = vld [vmem:[%s8540_s22 + $0x78] sm:$0xff]  ;;  %11448 = vst [vmem:[#allocation21_spill] sm:$0xff] %v11447_v20  ;;  %v8880_v44 = vld [vmem:[%s8540_s22 + $0x80] sm:$0xff] }
  0x99   : > { %6266 = vmatprep.mubr.msk.bf16.mxu1 %vm8669_vm10, %v8663_v26  ;;  %v1173_v48 = vsel %vm11206_vm3, %v1128_v5, %v1129_v9  ;;  %v8022_v20 = vld [vmem:[#allocation5 + $0x1f8] sm:$0xff]  }
  0x9a   : > { %11439 = vst [vmem:[#allocation20_spill] sm:$0xff] %v8791_v22  ;;  %v1175_v54 = vsel %vm11206_vm3, %v1126_v33, %v1127_v35 }
  0x9b   : > { %7074 = vmatpush3.bf16.msra.mxu0 %v7999_v37  ;;  %v488_v37 = vrot.slane %v8745_v11, 7 }
  0x9c   : > { %7075 = vmatprep.subr.bf16.mxu0 %v8002_v59  ;;  %v1176_v59 = vsel %vm11206_vm3, %v1125_v57, %v1126_v33  ;;  %v11450_v33 = vmov 0 }
  0x9d   : > { %v531_v4 = vsel %vm11201_vm0, %v488_v37, %v489_v38  ;;  %v532_v57 = vsel %vm11201_vm0, %v487_v63, %v488_v37  ;;  %v8844_v15 = vpack.c.bf16 %v1175_v54, %v1176_v59  ;;  %v460_v63 = vand.u32 15, %v8807_v53  ;;  %vm8871_vm0 = vmpackc.low %vm11214_vm4, %vm8799_vm11  ;;  %v8011_v53 = vld [vmem:[#allocation5 + $0x130] sm:$0xff]   ;;  %v8016_v59 = vld [vmem:[#allocation5 + $0x1e0] sm:$0xff]  }
  0x9e   : > { %6215 = vmatmul.mubr.msk.bf16.gmra.mrb[8].mxu0 %vm8669_vm10, %v8627_v12  ;;  %v11451_v33 = vsel %vm8871_vm0, 4294967295, %v11450_v33  ;;  %v1174_v37 = vsel %vm11206_vm3, %v1127_v35, %v1128_v5  ;;  %v8891_v54 = vpack.c.bf16 %v8760_v19, %v8745_v11  ;;  %v11210_v35 = vrot.slane %v8804_v51, 1  ;;  %v8012_v5 = vld [vmem:[#allocation5 + $0x1d8] sm:$0xff]   ;;  %vm11455_vm11 = vmmov %vm11454_vm8 }
  0x9f   : > { %3119 = vmatprep.mubr.bf16.mxu0 %v8677_v34  ;;  %7076 = vmatpush3.bf16.msra.mxu0 %v8003_v3  ;;  %v8008_v3 = vld [vmem:[#allocation5 + $0x1d0] sm:$0xff]   ;;  %11452 = vst [vmem:[#allocation23_spill] sm:$0xff] %v11451_v33  ;;  %v8920_v47 = vpack.c.bf16 %v1173_v48, %v1174_v37  ;;  %vm8922_vm3 = vcmp.lt.s32.totalorder %v459_v13, 15  ;;  %v463_v13 = vand.u32 15, %v8855_v18  ;;  %v8972_v48 = vadd.s32 168, %v8551_v28  ;;  %v8990_v18 = vld [vmem:[%s8540_s22 + $0xb8] sm:$0xff] }
  0xa0   : > { %6269 = vmatmul.mubr.msk.bf16.gmra.mrb[8].mxu1 %vm8694_vm12, %v8710_v52  ;;  %7077 = vmatprep.subr.bf16.mxu0 %v8006_v21  ;;  %v8864_v21 = vpack.c.bf16 %v531_v4, %v532_v57  ;;  %11453 = vst [vmem:[#allocation24_spill] sm:$0xff] %v8891_v54  ;;  %v8901_v57 = vld [vmem:[%s8540_s22 + $0x88] sm:$0xff]  ;;  %v9002_v37 = vadd.s32 176, %v8551_v28  ;;  %v11471_v33 = vand.u32 15, %v8810_v46  ;;  %v11474_v46 = vrot.slane %v8851_v50, 7 }
  0xa1   : > { %6272 = vmatprep.mubr.msk.bf16.mxu1 %vm8717_vm14, %v8713_v56  ;;  %7183 = vmatprep.subr.bf16.mxu1 %v8008_v3  ;;  %11456 = vst [vmem:[#allocation25_spill] sm:$0xff] %v8920_v47  ;;  %v8015_v3 = vld [vmem:[#allocation5 + $0x138] sm:$0xff]   ;;  %v11491_v4 = vmov 0 }
  0xa2   : > { %7184 = vmatpush3.bf16.msra.mxu1 %v8009_v7  ;;  %11449 = vst [vmem:[#allocation22_spill] sm:$0xff] %v8864_v21  ;;  %v530_v7 = vsel %vm11455_vm11, %v489_v38, %v490_v27  ;;  %v8930_v38 = vadd.s32 152, %v8551_v28  ;;  %vm8947_vm11 = vmpackc.low %vm8819_vm13, %vm11214_vm4  ;;  %vm11468_vm13 = vcmp.lt.s32.totalorder %v8551_v28, 7 }
  0xa3   : > { %7078 = vmatpush3.bf16.msra.mxu0 %v8007_v40  ;;  %v1130_v40 = vrot.slane %v8760_v19, 1  ;;  %v529_v19 = vsel %vm11454_vm8, %v490_v27, %v11207_v29  ;;  %7185 = vmatprep.subr.bf16.mxu1 %v8012_v5  ;;  %vm8933_vm8 = vcmp.ge.s32.totalorder %v460_v63, 1  ;;  %v8014_v29 = vld [vmem:[#allocation5 + $0x178] sm:$0xff]   ;;  %v11461_v63 = vmov 0 }
  0xa4   : > { %7079 = vmatprep.subr.bf16.mxu0 %v8010_v14  ;;  %v8942_v14 = vld [vmem:[%s8540_s22 + $0xa0] sm:$0xff]  ;;  %v11462_v63 = vsel %vm8947_vm11, 4294967295, %v11461_v63  ;;  %v8951_v5 = vpack.c.bf16 %v529_v19, %v530_v7  ;;  %v8985_v7 = vpack.c.bf16 %v8824_v62, %v8804_v51  ;;  %v11494_v27 = vand.u32 15, %v8883_v45 }
  0xa5   : > { %11463 = vst [vmem:[#allocation26_spill] sm:$0xff] %v11462_v63  ;;  %v1171_v19 = vsel %vm11468_vm13, %v1130_v40, %v11210_v35  ;;  %v11497_v45 = vrot.slane %v8848_v16, 1  ;;  %v11525_v63 = vrot.slane %v8851_v50, 1 }
  0xa6   : > { %6218 = vmatmul.mubr.msk.bf16.gmra.mrb[12].mxu0 %vm8717_vm14, %v8663_v26  ;;  %11464 = vst [vmem:[#allocation27_spill] sm:$0xff] %v8951_v5  ;;  %11469 = vst [vmem:[#allocation29_spill] sm:$0xff] %v8985_v7 }
  0xa7   : > { %3127 = vmatprep.mubr.bf16.mxu0 %v8725_v1  ;;  %7080 = vmatpush3.bf16.msra.mxu0 %v8011_v53  ;;  %v8013_v53 = vld [vmem:[#allocation5 + $0x198] sm:$0xff]  }
  0xa8   : > { %6275 = vmatmul.mubr.msk.bf16.gmra.mrb[12].mxu1 %vm8768_vm2, %v8763_v24  ;;  %7081 = vmatprep.subr.bf16.mxu0 %v8014_v29  ;;  %v8017_v29 = vld [vmem:[#allocation5 + $0x1a0] sm:$0xff]  }
  0xa9   : > { %6278 = vmatprep.mubr.msk.bf16.mxu1 %vm8779_vm7, %v8772_v32  ;;  %7186 = vmatpush3.bf16.msra.mxu1 %v8013_v53  ;;  %v8959_v53 = vld [vmem:[%s8540_s22 + $0xa8] sm:$0xff] }
  0xaa   : > { %7187 = vmatprep.subr.bf16.mxu1 %v8016_v59  ;;  %v11480_v59 = vand.u32 15, %v8827_v2 }
  0xab   : > { %7082 = vmatpush3.bf16.msra.mxu0 %v8015_v3 }
  0xad   : > { %7188 = vmatpush3.bf16.msra.mxu1 %v8017_v29  ;;  %v8020_v29 = vld [vmem:[#allocation5 + $0x1f0] sm:$0xff]  }
  0xae   : > { %6221 = vmatmul.mubr.msk.bf16.gmra.mrb[16].mxu0 %vm8779_vm7, %v8713_v56  ;;  %vm9038_vm7 = vcmp.ge.s32.totalorder %v11480_v59, 1 }
  0xaf   : > { %3135 = vmatprep.mubr.bf16.mxu0 %v8791_v22  ;;  %v11552_v22 = vrot.slane %v8915_v58, 1 }
  0xb0   : > { %6281 = vmatmul.mubr.msk.bf16.gmra.mrb[16].mxu1 %vm8860_vm1, %v8844_v15 }
  0xb1   : > { %6284 = vmatprep.mubr.msk.bf16.mxu1 %vm8871_vm0, %v8864_v21 }
  0xb6   : > { %6224 = vmatmul.mubr.msk.bf16.gmra.mrb[20].mxu0 %vm8871_vm0, %v8772_v32  ;;  %vm8964_vm0 = vmpackc.low %vm11214_vm4, %vm8839_vm15  ;;  %v8021_v32 = vld [vmem:[#allocation5 + $0x1b0] sm:$0xff]  }
  0xb7   : > { %3143 = vmatprep.mubr.bf16.mxu0 %v8891_v54  ;;  %v11466_v61 = vsel %vm8964_vm0, 4294967295, %v11465_v61  ;;  %vm11470_vm15 = vmmov %vm11468_vm13  ;;  %vm9009_vm13 = vcmp.lt.s32.totalorder %v11471_v33, 15  ;;  %v11475_v33 = vrot.slane %v8848_v16, 7  ;;  %v9059_v54 = vadd.s32 200, %v8551_v28 }
  0xb8   : > { %11467 = vst [vmem:[#allocation28_spill] sm:$0xff] %v11466_v61  ;;  %6287 = vmatmul.mubr.msk.bf16.gmra.mrb[20].mxu1 %vm8947_vm11, %v8920_v47  ;;  %v1172_v35 = vsel %vm11470_vm15, %v1129_v9, %v1130_v40  ;;  %vm11476_vm15 = vcmp.lt.s32.totalorder %v8551_v28, 1  ;;  %v11478_v40 = vrot.slane %v8824_v62, 7  ;;  %v9043_v61 = vadd.s32 192, %v8551_v28 }
  0xb9   : > { %6290 = vmatprep.mubr.msk.bf16.mxu1 %vm8964_vm0, %v8951_v5  ;;  %v527_v3 = vsel %vm11476_vm15, %v11475_v33, %v11474_v46  ;;  %v11477_v9 = vmov %v11475_v33  ;;  %vm11479_vm4 = vmmov %vm11476_vm15  ;;  %v9048_v46 = vpack.c.bf16 %v1171_v19, %v1172_v35  ;;  %vm9051_vm15 = vcmp.lt.s32.totalorder %v463_v13, 15  ;;  %v8019_v19 = vld [vmem:[#allocation5 + $0x1a8] sm:$0xff]  }
  0xba   : > { %v528_v36 = vsel %vm11479_vm4, %v11478_v40, %v11477_v9  ;;  %v8018_v9 = vld [vmem:[#allocation5 + $0x1e8] sm:$0xff]   ;;  %v9062_v35 = vadd.s32 208, %v8551_v28  ;;  %vm11486_vm4 = vmmov 1   ;;  %v11487_v13 = vmov 0 }
  0xbb   : > { %11483 = vst [vmem:[#allocation30_spill] sm:$0xff] %v9048_v46  ;;  %v9071_v2 = vpack.c.bf16 %v527_v3, %v528_v36  ;;  %7189 = vmatprep.subr.bf16.mxu1 %v8018_v9  ;;  %vm9082_vm11 = vmpackc.low %vm11486_vm4, %vm8933_vm8  ;;  %v9089_v3 = vld [vmem:[%s8540_s22 + $0xd8] sm:$0xff]  ;;  %vm11499_vm8 = vcmp.lt.s32.totalorder %v8551_v28, 7  ;;  %v9124_v40 = vadd.s32 216, %v8551_v28  ;;  %v11509_v47 = vand.u32 15, %v8930_v38  ;;  %v9162_v38 = vld [vmem:[#allocation5 + $0x200] sm:$0xff]  }
  0xbc   : > { %v11492_v4 = vsel %vm9082_vm11, 4294967295, %v11491_v4  ;;  %7190 = vmatpush3.bf16.msra.mxu1 %v8019_v19  ;;  %v11501_v19 = vrot.slane %v8804_v51, 1  ;;  %7787 = vmatprep.subr.bf16.mxu0 %v9162_v38  ;;  %v11524_v33 = vrot.slane %v8880_v44, 1  ;;  %v11539_v9 = vand.u32 15, %v8972_v48 }
  0xbd   : > { %11490 = vst [vmem:[#allocation32_spill] sm:$0xff] %v9071_v2  ;;  %11493 = vst [vmem:[#allocation33_spill] sm:$0xff] %v11492_v4  ;;  %7191 = vmatprep.subr.bf16.mxu1 %v8020_v29  ;;  %v11498_v29 = vrot.slane %v8824_v62, 1  ;;  %v11504_v62 = vrot.slane %v8880_v44, 7  ;;  %vm9149_vm14 = vcmp.lt.s32.totalorder %v11509_v47, 15  ;;  %v11515_v47 = vmov 0 }
  0xbe   : > { %6227 = vmatmul.mubr.msk.bf16.gmra.mrb[24].mxu0 %vm8964_vm0, %v8864_v21  ;;  %v9046_v21 = vld [vmem:[%s8540_s22 + $0xc8] sm:$0xff]  ;;  %vm9067_vm0 = vmpackc.low %vm8922_vm3, %vm11486_vm4  ;;  %vm9097_vm3 = vcmp.ge.s32.totalorder %v11494_v27, 1  ;;  %v9186_v4 = vadd.s32 224, %v8551_v28  ;;  %v11546_v48 = vmov 0 }
  0xbf   : > { %3151 = vmatprep.mubr.bf16.mxu0 %v8985_v7  ;;  %v11488_v13 = vsel %vm9067_vm0, 4294967295, %v11487_v13  ;;  %v9093_v7 = vpack.c.bf16 %v8851_v50, %v8848_v16  ;;  %v1169_v27 = vsel %vm11499_vm8, %v11498_v29, %v11497_v45  ;;  %v11500_v59 = vmov %v11498_v29 }
  0xc0   : > { %11489 = vst [vmem:[#allocation31_spill] sm:$0xff] %v11488_v13  ;;  %6293 = vmatmul.mubr.msk.bf16.gmra.mrb[24].mxu1 %vm9067_vm0, %v9048_v46  ;;  %vm11502_vm0 = vmmov %vm11499_vm8  ;;  %v9127_v13 = vld [vmem:[%s8540_s22 + $0xe0] sm:$0xff]  ;;  %v9130_v46 = vld [vmem:[%s8540_s22 + $0xe8] sm:$0xff]  ;;  %v11503_v45 = vrot.slane %v8901_v57, 7  ;;  %vm11505_vm8 = vcmp.lt.s32.totalorder %v8551_v28, 1 }
  0xc1   : > { %6296 = vmatprep.mubr.msk.bf16.mxu1 %vm9082_vm11, %v9071_v2  ;;  %v1170_v36 = vsel %vm11502_vm0, %v11501_v19, %v11500_v59  ;;  %v11506_v59 = vmov %v11504_v62  ;;  %v11507_v19 = vrot.slane %v8851_v50, 7  ;;  %vm11508_vm0 = vmmov %vm11505_vm8  ;;  %7192 = vmatpush3.bf16.msra.mxu1 %v8021_v32  ;;  %v11534_v50 = vrot.slane %v8915_v58, 7 }
  0xc2   : > { %v525_v51 = vsel %vm11505_vm8, %v11504_v62, %v11503_v45  ;;  %v11512_v45 = vand.u32 15, %v8956_v0  ;;  %7193 = vmatprep.subr.bf16.mxu1 %v8022_v20  ;;  %v9171_v32 = vpack.c.bf16 %v1169_v27, %v1170_v36  ;;  %v11518_v20 = vmov 0 }
  0xc3   : > { %v526_v29 = vsel %vm11508_vm0, %v11507_v19, %v11506_v59  ;;  %vm9167_vm0 = vmpackc.low %vm9009_vm13, %vm11486_vm4  ;;  %v11521_v36 = vmov 0  ;;  %v9204_v0 = vpack.c.bf16 %v8901_v57, %v8880_v44  ;;  %v11528_v27 = vrot.slane %v8848_v16, 1 }
  0xc4   : > { %vm9157_vm8 = vcmp.ge.s32.totalorder %v11512_v45, 1  ;;  %v11516_v47 = vsel %vm9167_vm0, 4294967295, %v11515_v47  ;;  %v9182_v45 = vpack.c.bf16 %v525_v51, %v526_v29  ;;  %vm9192_vm13 = vmpackc.low %vm9051_vm15, %vm11486_vm4  ;;  %v9199_v51 = vadd.s32 232, %v8551_v28 }
  0xc5   : > { %11517 = vst [vmem:[#allocation34_spill] sm:$0xff] %v11516_v47  ;;  %v11522_v36 = vsel %vm9192_vm13, 4294967295, %v11521_v36  ;;  %v11530_v59 = vmov 0  ;;  %v11553_v62 = vrot.slane %v8901_v57, 1 }
  0xc6   : > { %6230 = vmatmul.mubr.msk.bf16.gmra.mrb[28].mxu0 %vm9082_vm11, %v8951_v5  ;;  %v8023_v5 = vld [vmem:[#allocation5 + $0x1b8] sm:$0xff]   ;;  %vm9178_vm11 = vmpackc.low %vm11486_vm4, %vm9038_vm7  ;;  %11523 = vst [vmem:[#allocation36_spill] sm:$0xff] %v11522_v36  ;;  %vm11526_vm7 = vcmp.lt.s32.totalorder %v8551_v28, 7 }
  0xc7   : > { %3159 = vmatprep.mubr.bf16.mxu0 %v9093_v7  ;;  %v11519_v20 = vsel %vm9178_vm11, 4294967295, %v11518_v20  ;;  %7194 = vmatpush3.bf16.msra.mxu1 %v8023_v5  ;;  %v1167_v29 = vsel %vm11526_vm7, %v11525_v63, %v11524_v33  ;;  %v11527_v5 = vmov %v11525_v63  ;;  %vm11529_vm15 = vmmov %vm11526_vm7  ;;  %v11533_v63 = vrot.slane %v8927_v43, 7 }
  0xc8   : > { %11520 = vst [vmem:[#allocation35_spill] sm:$0xff] %v11519_v20  ;;  %6299 = vmatmul.mubr.msk.bf16.gmra.mrb[28].mxu1 %vm9167_vm0, %v9171_v32  ;;  %v1168_v19 = vsel %vm11529_vm15, %v11528_v27, %v11527_v5  ;;  %vm9230_vm0 = vmpackc.low %vm11486_vm4, %vm9097_vm3  ;;  %vm11535_vm7 = vcmp.lt.s32.totalorder %v8551_v28, 1  ;;  %v11536_v27 = vmov %v11534_v50  ;;  %v11537_v33 = vrot.slane %v8901_v57, 7 }
  0xc9   : > { %6302 = vmatprep.mubr.msk.bf16.mxu1 %vm9178_vm11, %v9182_v45  ;;  %v11531_v59 = vsel %vm9230_vm0, 4294967295, %v11530_v59  ;;  %v523_v16 = vsel %vm11535_vm7, %v11534_v50, %v11533_v63  ;;  %vm11538_vm15 = vmmov %vm11535_vm7  ;;  %vm9248_vm3 = vcmp.lt.s32.totalorder %v11539_v9, 15  ;;  %v474_v20 = vand.u32 15, %v9186_v4 }
  0xca   : > { %11532 = vst [vmem:[#allocation37_spill] sm:$0xff] %v11531_v59  ;;  %v524_v5 = vsel %vm11538_vm15, %v11537_v33, %v11536_v27  ;;  %v9255_v63 = vpack.c.bf16 %v1167_v29, %v1168_v19  ;;  %vm9262_vm7 = vmpackc.low %vm9149_vm14, %vm11486_vm4  ;;  %v11543_v27 = vmov 0  ;;  %v9275_v4 = vpack.c.bf16 %v8927_v43, %v8915_v58 }
  0xcb   : > { %v9257_v50 = vpack.c.bf16 %v523_v16, %v524_v5  ;;  %v11544_v27 = vsel %vm9262_vm7, 4294967295, %v11543_v27  ;;  %vm9269_vm15 = vmpackc.low %vm11486_vm4, %vm9157_vm8  ;;  %v11549_v19 = vand.u32 15, %v9002_v37  ;;  %vm11554_vm14 = vcmp.lt.s32.totalorder %v8551_v28, 7 }
  0xcc   : > { %11545 = vst [vmem:[#allocation39_spill] sm:$0xff] %v11544_v27  ;;  %v11547_v48 = vsel %vm9269_vm15, 4294967295, %v11546_v48  ;;  %v1165_v16 = vsel %vm11554_vm14, %v11553_v62, %v11552_v22  ;;  %v11555_v37 = vmov %v11553_v62  ;;  %v11556_v33 = vrot.slane %v8880_v44, 1  ;;  %vm11557_vm8 = vmmov %vm11554_vm14 }
  0xcd   : > { %11542 = vst [vmem:[#allocation38_spill] sm:$0xff] %v9257_v50  ;;  %11548 = vst [vmem:[#allocation40_spill] sm:$0xff] %v11547_v48  ;;  %v11558_v9 = vrot.slane %v8959_v53, 7  ;;  %v11562_v57 = vrot.slane %v8927_v43, 7  ;;  %v11564_v62 = vand.u32 15, %v9016_v39  ;;  %v11589_v29 = vand.u32 15, %v9059_v54 }
  0xce   : > { %6233 = vmatmul.mubr.msk.bf16.gmra.mrb[32].mxu0 %vm9178_vm11, %v9071_v2  ;;  %vm9279_vm11 = vcmp.ge.s32.totalorder %v11549_v19, 1  ;;  %v1166_v5 = vsel %vm11557_vm8, %v11556_v33, %v11555_v37  ;;  %v11559_v19 = vrot.slane %v8942_v14, 7  ;;  %v444_v48 = vadd.s32 240, %v8551_v28 }
  0xcf   : > { %3167 = vmatprep.mubr.bf16.mxu0 %v9204_v0  ;;  %vm9318_vm8 = vcmp.lt.s32.totalorder %v11564_v62, 15  ;;  %v9323_v33 = vpack.c.bf16 %v1165_v16, %v1166_v5  ;;  %v9342_v16 = vpack.c.bf16 %v8959_v53, %v8942_v14  ;;  %v11583_v62 = vrot.slane %v8990_v18, 7 }
  0xd0   : > { %6305 = vmatmul.mubr.msk.bf16.gmra.mrb[32].mxu1 %vm9192_vm13, %v9255_v63  ;;  %vm11560_vm13 = vcmp.lt.s32.totalorder %v8551_v28, 1  ;;  %v11561_v22 = vmov %v11559_v19 }
  0xd1   : > { %6308 = vmatprep.mubr.msk.bf16.mxu1 %vm9230_vm0, %v9257_v50  ;;  %v521_v2 = vsel %vm11560_vm13, %v11559_v19, %v11558_v9  ;;  %vm11563_vm14 = vmmov %vm11560_vm13  ;;  %v11567_v9 = vmov 0  ;;  %v11570_v19 = vand.u32 15, %v9043_v61  ;;  %11573 = vst [vmem:[#allocation42_spill] sm:$0xff] %v9342_v16  ;;  %v11575_v61 = vrot.slane %v8927_v43, 1 }
  0xd2   : > { %v522_v44 = vsel %vm11563_vm14, %v11562_v57, %v11561_v22  ;;  %vm9330_vm13 = vmpackc.low %vm9248_vm3, %vm11486_vm4  ;;  %vm11576_vm3 = vcmp.lt.s32.totalorder %v8551_v28, 7  ;;  %v11578_v22 = vrot.slane %v8915_v58, 1  ;;  %v11584_v43 = vrot.slane %v8977_v10, 7 }
  0xd3   : > { %v9325_v59 = vpack.c.bf16 %v521_v2, %v522_v44  ;;  %v11568_v9 = vsel %vm9330_vm13, 4294967295, %v11567_v9  ;;  %vm9336_vm14 = vcmp.ge.s32.totalorder %v11570_v19, 1  ;;  %v11574_v2 = vrot.slane %v8942_v14, 1 }
  0xd4   : > { %11569 = vst [vmem:[#allocation41_spill] sm:$0xff] %v11568_v9  ;;  %v11577_v5 = vmov %v11575_v61  ;;  %v11580_v44 = vmov 0  ;;  %v11586_v19 = vmov %v11584_v43  ;;  %v11607_v9 = vrot.slane %v9046_v21, 7 }
  0xd5   : > { %v1163_v11 = vsel %vm11576_vm3, %v11575_v61, %v11574_v2  ;;  %v11587_v2 = vrot.slane %v8959_v53, 7 }
  0xd6   : > { %6236 = vmatmul.mubr.msk.bf16.gmra.mrb[36].mxu0 %vm9230_vm0, %v9182_v45  ;;  %vm11579_vm0 = vmmov %vm11576_vm3  ;;  %vm11585_vm3 = vcmp.lt.s32.totalorder %v8551_v28, 1 }
  0xd7   : > { %3175 = vmatprep.mubr.bf16.mxu0 %v9275_v4  ;;  %v1164_v57 = vsel %vm11579_vm0, %v11578_v22, %v11577_v5  ;;  %v519_v58 = vsel %vm11585_vm3, %v11584_v43, %v11583_v62  ;;  %vm11588_vm0 = vmmov %vm11585_vm3  ;;  %v475_v22 = vand.u32 15, %v9199_v51  ;;  %v11592_v62 = vand.u32 15, %v9062_v35 }
  0xd8   : > { %6311 = vmatmul.mubr.msk.bf16.gmra.mrb[36].mxu1 %vm9262_vm7, %v9323_v33  ;;  %vm9368_vm7 = vmpackc.low %vm11486_vm4, %vm9279_vm11  ;;  %v520_v61 = vsel %vm11588_vm0, %v11587_v2, %v11586_v19  ;;  %vm9386_vm11 = vcmp.lt.s32.totalorder %v11589_v29, 15  ;;  %v9402_v19 = vpack.c.bf16 %v1163_v11, %v1164_v57  ;;  %v11595_v51 = vmov 0 }
  0xd9   : > { %6314 = vmatprep.mubr.msk.bf16.mxu1 %vm9269_vm15, %v9325_v59  ;;  %v11581_v44 = vsel %vm9368_vm7, 4294967295, %v11580_v44  ;;  %vm9395_vm3 = vcmp.ge.s32.totalorder %v11592_v62, 1  ;;  %v9404_v54 = vpack.c.bf16 %v519_v58, %v520_v61  ;;  %vm9409_vm0 = vmpackc.low %vm9318_vm8, %vm11486_vm4  ;;  %v9415_v35 = vpack.c.bf16 %v8990_v18, %v8977_v10 }
  0xda   : > { %11582 = vst [vmem:[#allocation43_spill] sm:$0xff] %v11581_v44  ;;  %v11596_v51 = vsel %vm9409_vm0, 4294967295, %v11595_v51  ;;  %v11598_v11 = vmov 0  ;;  %v415_v57 = vadd.s32 8, %v8551_v28  ;;  %v11601_v58 = vrot.slane %v8977_v10, 1 }
  0xdb   : > { %11597 = vst [vmem:[#allocation44_spill] sm:$0xff] %v11596_v51  ;;  %v11602_v2 = vrot.slane %v8959_v53, 1  ;;  %vm11603_vm8 = vcmp.lt.s32.totalorder %v8551_v28, 7  ;;  %v11605_v29 = vrot.slane %v8942_v14, 1  ;;  %v11611_v53 = vrot.slane %v8990_v18, 7 }
  0xdc   : > { %v11625_v5 = vrot.slane %v8990_v18, 1  ;;  %v11634_v18 = vrot.slane %v9046_v21, 7 }
  0xdd   : > { %v1161_v39 = vsel %vm11603_vm8, %v11602_v2, %v11601_v58  ;;  %v11604_v61 = vmov %v11602_v2  ;;  %v11613_v2 = vand.u32 15, %v9124_v40  ;;  %v11621_v40 = vmov 0 }
  0xde   : > { %6239 = vmatmul.mubr.msk.bf16.gmra.mrb[40].mxu0 %vm9269_vm15, %v9257_v50  ;;  %v9400_v50 = vld [vmem:[%s8540_s22 + $0xf0] sm:$0xff]  ;;  %vm9423_vm15 = vmpackc.low %vm11486_vm4, %vm9336_vm14 }
  0xdf   : > { %3183 = vmatprep.mubr.bf16.mxu0 %v9342_v16  ;;  %v11599_v11 = vsel %vm9423_vm15, 4294967295, %v11598_v11  ;;  %v508_v37 = vrot.slane %v9400_v50, 7  ;;  %vm11606_vm14 = vmmov %vm11603_vm8  ;;  %v11608_v16 = vrot.slane %v9019_v17, 7 }
  0xe0   : > { %6317 = vmatmul.mubr.msk.bf16.gmra.mrb[40].mxu1 %vm9330_vm13, %v9402_v19  ;;  %11600 = vst [vmem:[#allocation45_spill] sm:$0xff] %v11599_v11  ;;  %v1162_v62 = vsel %vm11606_vm14, %v11605_v29, %v11604_v61  ;;  %vm11609_vm13 = vcmp.lt.s32.totalorder %v8551_v28, 1  ;;  %vm9461_vm14 = vcmp.lt.s32.totalorder %v11613_v2, 15  ;;  %v11642_v61 = vrot.slane %v9077_v60, 1 }
  0xe1   : > { %6320 = vmatprep.mubr.msk.bf16.mxu1 %vm9368_vm7, %v9404_v54  ;;  %v517_v27 = vsel %vm11609_vm13, %v11608_v16, %v11607_v9  ;;  %v11610_v58 = vmov %v11608_v16  ;;  %vm11612_vm8 = vmmov %vm11609_vm13  ;;  %v9466_v29 = vpack.c.bf16 %v1161_v39, %v1162_v62  ;;  %v11618_v16 = vmov 0 }
  0xe2   : > { %v518_v14 = vsel %vm11612_vm8, %v11611_v53, %v11610_v58  ;;  %vm9477_vm13 = vmpackc.low %vm9386_vm11, %vm11486_vm4  ;;  %vm11626_vm11 = vcmp.lt.s32.totalorder %v8551_v28, 7  ;;  %v11627_v39 = vmov %v11625_v5  ;;  %v11628_v62 = vrot.slane %v8977_v10, 1 }
  0xe3   : > { %v9472_v9 = vpack.c.bf16 %v517_v27, %v518_v14  ;;  %v11619_v16 = vsel %vm9477_vm13, 4294967295, %v11618_v16  ;;  %vm9484_vm8 = vmpackc.low %vm11486_vm4, %vm9395_vm3  ;;  %v11624_v27 = vrot.slane %v9019_v17, 1  ;;  %v11630_v53 = vrot.slane %v9089_v3, 7 }
  0xe4   : > { %11620 = vst [vmem:[#allocation46_spill] sm:$0xff] %v11619_v16  ;;  %v11622_v40 = vsel %vm9484_vm8, 4294967295, %v11621_v40  ;;  %vm11629_vm3 = vmmov %vm11626_vm11  ;;  %v11631_v14 = vrot.slane %v9077_v60, 7 }
  0xe5   : > { %11623 = vst [vmem:[#allocation47_spill] sm:$0xff] %v11622_v40  ;;  %v1159_v43 = vsel %vm11626_vm11, %v11625_v5, %v11624_v27  ;;  %v1160_v58 = vsel %vm11629_vm3, %v11628_v62, %v11627_v39  ;;  %vm9533_vm3 = vmpackc.low %vm9461_vm14, %vm11486_vm4  ;;  %v11636_v62 = vmov 0  ;;  %vm11644_vm14 = vcmp.lt.s32.totalorder %v8551_v28, 7 }
  0xe6   : > { %6242 = vmatmul.mubr.msk.bf16.gmra.mrb[44].mxu0 %vm9368_vm7, %v9325_v59  ;;  %vm9468_vm7 = vcmp.ge.s32.totalorder %v474_v20, 1  ;;  %v9490_v20 = vpack.c.bf16 %v9046_v21, %v9019_v17  ;;  %v11633_v27 = vmov %v11631_v14  ;;  %v9526_v5 = vpack.c.bf16 %v1159_v43, %v1160_v58 }
  0xe7   : > { %3191 = vmatprep.mubr.bf16.mxu0 %v9415_v35  ;;  %v11637_v62 = vsel %vm9533_vm3, 4294967295, %v11636_v62  ;;  %v476_v43 = vand.u32 15, %v444_v48  ;;  %v447_v58 = vand.u32 15, %v415_v57  ;;  %v11646_v48 = vrot.slane %v9019_v17, 1 }
  0xe8   : > { %6323 = vmatmul.mubr.msk.bf16.gmra.mrb[44].mxu1 %vm9409_vm0, %v9466_v29  ;;  %vm11632_vm0 = vcmp.lt.s32.totalorder %v8551_v28, 1  ;;  %11638 = vst [vmem:[#allocation48_spill] sm:$0xff] %v11637_v62  ;;  %v11660_v40 = vrot.slane %v9130_v46, 7 }
  0xe9   : > { %6326 = vmatprep.mubr.msk.bf16.mxu1 %vm9423_vm15, %v9472_v9  ;;  %v515_v2 = vsel %vm11632_vm0, %v11631_v14, %v11630_v53  ;;  %vm11635_vm11 = vmmov %vm11632_vm0  ;;  %v9539_v53 = vpack.c.bf16 %v9089_v3, %v9077_v60  ;;  %v11639_v14 = vmov 0 }
  0xea   : > { %v516_v10 = vsel %vm11635_vm11, %v11634_v18, %v11633_v27  ;;  %vm9544_vm0 = vmpackc.low %vm11486_vm4, %vm9468_vm7  ;;  %v11648_v18 = vrot.slane %v9130_v46, 7 }
  0xeb   : > { %v9528_v39 = vpack.c.bf16 %v515_v2, %v516_v10  ;;  %v11640_v14 = vsel %vm9544_vm0, 4294967295, %v11639_v14  ;;  %v11643_v2 = vrot.slane %v9046_v21, 1  ;;  %vm11647_vm7 = vmmov %vm11644_vm14  ;;  %v11649_v10 = vrot.slane %v9127_v13, 7 }
  0xec   : > { %11641 = vst [vmem:[#allocation49_spill] sm:$0xff] %v11640_v14  ;;  %v11651_v21 = vrot.slane %v9089_v3, 7 }
  0xed   : > { %v1157_v44 = vsel %vm11644_vm14, %v11643_v2, %v11642_v61  ;;  %v11645_v27 = vmov %v11643_v2  ;;  %v513_v11 = vsel %vm11635_vm11, %v11649_v10, %v11648_v18  ;;  %v11650_v61 = vmov %v11649_v10  ;;  %vm11652_vm14 = vmmov %vm11635_vm11 }
  0xee   : > { %6245 = vmatmul.mubr.msk.bf16.gmra.mrb[48].mxu0 %vm9423_vm15, %v9404_v54  ;;  %v1158_v57 = vsel %vm11647_vm7, %v11646_v48, %v11645_v27  ;;  %v514_v17 = vsel %vm11652_vm14, %v11651_v21, %v11650_v61  ;;  %v9588_v48 = vpack.c.bf16 %v9130_v46, %v9127_v13  ;;  %v11653_v18 = vrot.slane %v9127_v13, 1  ;;  %vm11657_vm11 = vmmov %vm11647_vm7 }
  0xef   : > { %3199 = vmatprep.mubr.bf16.mxu0 %v9490_v20  ;;  %v9582_v2 = vpack.c.bf16 %v1157_v44, %v1158_v57  ;;  %v9584_v27 = vpack.c.bf16 %v513_v11, %v514_v17  ;;  %v11654_v10 = vrot.slane %v9089_v3, 1  ;;  %v11656_v57 = vrot.slane %v9077_v60, 1 }
  0xf0   : > { %6329 = vmatmul.mubr.msk.bf16.gmra.mrb[48].mxu1 %vm9477_vm13, %v9526_v5  ;;  %vm1245_vm14 = vcmp.lt.s32.totalorder %v475_v22, 15  ;;  %v11658_v21 = vrot.slane %v8561_v41, 7  ;;  %v445_v60 = vadd.s32 248, %v8551_v28  ;;  %v11662_v22 = vmov 0 }
  0xf1   : > { %6332 = vmatprep.mubr.msk.bf16.mxu1 %vm9484_vm8, %v9528_v39  ;;  %v1155_v11 = vsel %vm11647_vm7, %v11654_v10, %v11653_v18  ;;  %v11655_v44 = vmov %v11654_v10  ;;  %v1148_v10 = vrot.slane %v9130_v46, 1 }
  0xf2   : > { %v1156_v61 = vsel %vm11657_vm11, %v11656_v57, %v11655_v44  ;;  %vm669_vm11 = vcmp.ge.s32.totalorder %v476_v43, 1  ;;  %v11309_v44 = vrot.slane %v9400_v50, 1  ;;  %v11668_v43 = vmov 0 }
  0xf3   : > { %v9621_v18 = vpack.c.bf16 %v1155_v11, %v1156_v61  ;;  %v11674_v61 = vmov 0 }
  0xf6   : > { %6248 = vmatmul.mubr.msk.bf16.gmra.mrb[52].mxu0 %vm9484_vm8, %v9472_v9  ;;  %vm11659_vm8 = vcmp.lt.s32.totalorder %v8551_v28, 1 }
  0xf7   : > { %3207 = vmatprep.mubr.bf16.mxu0 %v9539_v53  ;;  %v511_v17 = vsel %vm11659_vm8, %v508_v37, %v11658_v21  ;;  %vm11661_vm7 = vmmov %vm11659_vm8  ;;  %vm1217_vm8 = vcmp.lt.s32.totalorder %v447_v58, 15  ;;  %v11672_v58 = vrot.slane %v9127_v13, 1  ;;  %v8025_v13 = vld [vmem:[#allocation5 + $0x208] sm:$0xff]   ;;  %v8027_v21 = vld [vmem:[#allocation5 + $0x218] sm:$0xff]  }
  0xf8   : > { %6335 = vmatmul.mubr.msk.bf16.gmra.mrb[52].mxu1 %vm9533_vm3, %v9582_v2  ;;  %v512_v3 = vsel %vm11661_vm7, %v11660_v40, %v508_v37  ;;  %vm9633_vm7 = vmpackc.low %vm11486_vm4, %vm669_vm11  ;;  %v11665_v37 = vmov 0  ;;  %v477_v40 = vand.u32 15, %v445_v60  ;;  %vm11671_vm11 = vcmp.lt.s32.totalorder %v8551_v28, 7  ;;  %v11681_v60 = vld [vmem:[#allocation17_spill] sm:$0xff] }
  0xf9   : > { %6338 = vmatprep.mubr.msk.bf16.mxu1 %vm9544_vm0, %v9584_v27  ;;  %v9628_v41 = vpack.c.bf16 %v511_v17, %v512_v3  ;;  %v11666_v37 = vsel %vm9633_vm7, 4294967295, %v11665_v37  ;;  %v1153_v46 = vsel %vm11671_vm11, %v1148_v10, %v11309_v44  ;;  %vm11673_vm15 = vmmov %vm11671_vm11  ;;  %v11678_v17 = vld [vmem:[#allocation25_spill] sm:$0xff]  ;;  %v11680_v3 = vld [vmem:[#allocation18_spill] sm:$0xff] }
  0xfa   : > { %11667 = vst [vmem:[#allocation51_spill] sm:$0xff] %v11666_v37  ;;  %v1154_v11 = vsel %vm11673_vm15, %v11672_v58, %v1148_v10  ;;  %v11683_v10 = vld [vmem:[#allocation24_spill] sm:$0xff]  ;;  %v11690_v58 = vld [vmem:[#allocation29_spill] sm:$0xff] }
  0xfb   : > { %v9662_v57 = vpack.c.bf16 %v1153_v46, %v1154_v11  ;;  %v11688_v46 = vld [vmem:[#allocation19_spill] sm:$0xff] }
  0xfc   : > { %vm11689_vm11 = vnez %v11688_v46  ;;  %v11691_v11 = vld [vmem:[#allocation31_spill] sm:$0xff] }
  0xfe   : > { %6251 = vmatmul.mubr.msk.bf16.gmra.mrb[56].mxu0 %vm9544_vm0, %v9528_v39  ;;  %vm9624_vm0 = vmpackc.low %vm1245_vm14, %vm11486_vm4 }
  0xff   : > { %3215 = vmatprep.mubr.bf16.mxu0 %v9588_v48  ;;  %v11663_v22 = vsel %vm9624_vm0, 4294967295, %v11662_v22  ;;  %vm9641_vm14 = vmpackc.low %vm1217_vm8, %vm11486_vm4  ;;  %vm1247_vm8 = vcmp.lt.s32.totalorder %v477_v40, 15  ;;  %v11685_v40 = vld [vmem:[#allocation26_spill] sm:$0xff] }
 0x100   : > { %11664 = vst [vmem:[#allocation50_spill] sm:$0xff] %v11663_v22  ;;  %6341 = vmatmul.mubr.msk.bf16.gmra.mrb[56].mxu1 %vm9624_vm0, %v9621_v18  ;;  %v11669_v43 = vsel %vm9641_vm14, 4294967295, %v11668_v43  ;;  %vm9665_vm0 = vmpackc.low %vm1247_vm8, %vm11486_vm4  ;;  %vm11682_vm4 = vnez %v11681_v60  ;;  %vm11686_vm15 = vnez %v11685_v40  ;;  %vm11692_vm8 = vnez %v11691_v11 }
 0x101   : > { %11670 = vst [vmem:[#allocation52_spill] sm:$0xff] %v11669_v43  ;;  %6344 = vmatprep.mubr.msk.bf16.mxu1 %vm9633_vm7, %v9628_v41  ;;  %v11675_v61 = vsel %vm9665_vm0, 4294967295, %v11674_v61 }
 0x102   : > { %11676 = vst [vmem:[#allocation53_spill] sm:$0xff] %v11675_v61 }
 0x106   : > { %6254 = vmatmul.mubr.msk.bf16.gmra.mrb[60].mxu0 %vm9633_vm7, %v9584_v27 }
 0x107   : > { %6350 = vmatprep.mubr.msk.bf16.mxu0 %vm9641_vm14, %v8656_v23  ;;  %v8026_v23 = vld [vmem:[#allocation5 + $0x210] sm:$0xff]  }
 0x108   : > { %6347 = vmatmul.mubr.msk.bf16.gmra.mrb[60].mxu1 %vm9665_vm0, %v9662_v57 }
 0x109   : > { %3578 = vmatprep.mubr.bf16.mxu1 %v8622_v8 }
 0x10e   : > { %3418 = vmatmul.mubr.bf16.vlgmr.msra.gmra.mrb[64].mxu0 %v8573_v49  ;;  %v8028_v49 = vld [vmem:[#allocation5 + $0x220] sm:$0xff]  }
 0x10f   : > { %7788 = vmatpush3.bf16.msra.mxu0 %v9162_v38  ;;  %6353 = vmatprep.mubr.msk.bf16.mxu0 %vm8659_vm9, %v8710_v52  ;;  %v11677_v38 = vld [vmem:[#allocation20_spill] sm:$0xff] }
 0x110   : > { %7789 = vmatprep.subr.bf16.mxu0 %v8025_v13  ;;  %6398 = vmatmul.mubr.msk.bf16.vlgmr.msra.gmra.mrb[64].mxu1 %vm8593_vm5, %v8627_v12  ;;  %v8029_v12 = vld [vmem:[#allocation5 + $0x228] sm:$0xff]  }
 0x111   : > { %3586 = vmatprep.mubr.bf16.mxu1 %v8677_v34 }
 0x113   : > { %7790 = vmatpush3.bf16.msra.mxu0 %v8025_v13  ;;  %v11693_v13 = vld [vmem:[#allocation27_spill] sm:$0xff] }
 0x114   : > { %7791 = vmatprep.subr.bf16.mxu0 %v8026_v23 }
 0x116   : > { %3426 = vmatmul.mubr.bf16.gmra.mrb[68].mxu0 %v8622_v8  ;;  %v8030_v8 = vld [vmem:[#allocation5 + $0x230] sm:$0xff]  }
 0x117   : > { %6356 = vmatprep.mubr.msk.bf16.mxu0 %vm8694_vm12, %v8763_v24  ;;  %7792 = vmatpush3.bf16.msra.mxu0 %v8026_v23  ;;  %v11694_v23 = vld [vmem:[#allocation23_spill] sm:$0xff] }
 0x118   : > { %7793 = vmatprep.subr.bf16.mxu0 %v8027_v21  ;;  %6401 = vmatmul.mubr.msk.bf16.gmra.mrb[68].mxu1 %vm8615_vm6, %v8663_v26  ;;  %v8031_v26 = vld [vmem:[#allocation5 + $0x238] sm:$0xff]   ;;  %vm11695_vm7 = vnez %v11694_v23 }
 0x119   : > { %3594 = vmatprep.mubr.bf16.mxu1 %v8725_v1 }
 0x11b   : > { %7794 = vmatpush3.bf16.msra.mxu0 %v8027_v21  ;;  %v11697_v21 = vld [vmem:[#allocation32_spill] sm:$0xff] }
 0x11c   : > { %7795 = vmatprep.subr.bf16.mxu0 %v8028_v49 }
 0x11e   : > { %3434 = vmatmul.mubr.bf16.gmra.mrb[72].mxu0 %v8677_v34 }
 0x11f   : > { %6359 = vmatprep.mubr.msk.bf16.mxu0 %vm8768_vm2, %v8844_v15  ;;  %7796 = vmatpush3.bf16.msra.mxu0 %v8028_v49  ;;  %v11698_v49 = vld [vmem:[#allocation28_spill] sm:$0xff] }
 0x120   : > { %7797 = vmatprep.subr.bf16.mxu0 %v8029_v12  ;;  %6404 = vmatmul.mubr.msk.bf16.gmra.mrb[72].mxu1 %vm8669_vm10, %v8713_v56  ;;  %v11684_v56 = vld [vmem:[#allocation30_spill] sm:$0xff]  ;;  %vm11700_vm10 = vnez %v11522_v36 }
 0x121   : > { %3602 = vmatprep.mubr.bf16.mxu1 %v11677_v38 }
 0x123   : > { %7798 = vmatpush3.bf16.msra.mxu0 %v8029_v12  ;;  %v11701_v12 = vld [vmem:[#allocation33_spill] sm:$0xff] }
 0x124   : > { %7799 = vmatprep.subr.bf16.mxu0 %v8030_v8 }
 0x126   : > { %3442 = vmatmul.mubr.bf16.gmra.mrb[76].mxu0 %v8725_v1  ;;  %v11687_v1 = vld [vmem:[#allocation22_spill] sm:$0xff] }
 0x127   : > { %6362 = vmatprep.mubr.msk.bf16.mxu0 %vm8860_vm1, %v11678_v17  ;;  %7800 = vmatpush3.bf16.msra.mxu0 %v8030_v8  ;;  %v11703_v8 = vld [vmem:[#allocation39_spill] sm:$0xff] }
 0x128   : > { %7801 = vmatprep.subr.bf16.mxu0 %v8031_v26  ;;  %6407 = vmatmul.mubr.msk.bf16.gmra.mrb[76].mxu1 %vm11682_vm4, %v11680_v3  ;;  %vm11696_vm4 = vnez %v11516_v47  ;;  %vm11704_vm5 = vnez %v11703_v8  ;;  %v11709_v3 = vld [vmem:[#allocation41_spill] sm:$0xff] }
 0x129   : > { %3610 = vmatprep.mubr.bf16.mxu1 %v11683_v10  ;;  %vm11710_vm6 = vnez %v11709_v3 }
 0x12b   : > { %7802 = vmatpush3.bf16.msra.mxu0 %v8031_v26  ;;  %v11705_v26 = vld [vmem:[#allocation38_spill] sm:$0xff] }
 0x12e   : > { %3450 = vmatmul.mubr.bf16.gmra.mrb[80].mxu0 %v11677_v38  ;;  %v11706_v38 = vld [vmem:[#allocation35_spill] sm:$0xff] }
 0x12f   : > { %6365 = vmatprep.mubr.msk.bf16.mxu0 %vm11686_vm15, %v11684_v56 }
 0x130   : > { %6410 = vmatmul.mubr.msk.bf16.gmra.mrb[80].mxu1 %vm11689_vm11, %v11687_v1  ;;  %vm11699_vm11 = vnez %v11698_v49 }
 0x131   : > { %3618 = vmatprep.mubr.bf16.mxu1 %v11690_v58 }
 0x136   : > { %3458 = vmatmul.mubr.bf16.gmra.mrb[84].mxu0 %v11683_v10 }
 0x137   : > { %6368 = vmatprep.mubr.msk.bf16.mxu0 %vm11692_vm8, %v9171_v32 }
 0x138   : > { %6413 = vmatmul.mubr.msk.bf16.gmra.mrb[84].mxu1 %vm11695_vm7, %v11693_v13  ;;  %vm11702_vm7 = vnez %v11701_v12 }
 0x139   : > { %3626 = vmatprep.mubr.bf16.mxu1 %v9093_v7 }
 0x13e   : > { %3466 = vmatmul.mubr.bf16.gmra.mrb[88].mxu0 %v11690_v58  ;;  %v11714_v58 = vld [vmem:[#allocation40_spill] sm:$0xff] }
 0x13f   : > { %6371 = vmatprep.mubr.msk.bf16.mxu0 %vm11696_vm4, %v9255_v63 }
 0x140   : > { %6416 = vmatmul.mubr.msk.bf16.gmra.mrb[88].mxu1 %vm11699_vm11, %v11697_v21  ;;  %vm11707_vm11 = vnez %v11706_v38 }
 0x141   : > { %3634 = vmatprep.mubr.bf16.mxu1 %v9204_v0 }
 0x146   : > { %3474 = vmatmul.mubr.bf16.gmra.mrb[92].mxu0 %v9093_v7  ;;  %v11708_v7 = vld [vmem:[#allocation42_spill] sm:$0xff] }
 0x147   : > { %6374 = vmatprep.mubr.msk.bf16.mxu0 %vm11700_vm10, %v9323_v33 }
 0x148   : > { %6419 = vmatmul.mubr.msk.bf16.gmra.mrb[92].mxu1 %vm11702_vm7, %v9182_v45  ;;  %v11711_v45 = vld [vmem:[#allocation37_spill] sm:$0xff] }
 0x149   : > { %3642 = vmatprep.mubr.bf16.mxu1 %v9275_v4  ;;  %vm11712_vm7 = vnez %v11711_v45 }
 0x14e   : > { %3482 = vmatmul.mubr.bf16.gmra.mrb[96].mxu0 %v9204_v0 }
 0x14f   : > { %6377 = vmatprep.mubr.msk.bf16.mxu0 %vm11704_vm5, %v9402_v19  ;;  %vm11713_vm5 = vnez %v11596_v51 }
 0x150   : > { %6422 = vmatmul.mubr.msk.bf16.gmra.mrb[96].mxu1 %vm11707_vm11, %v11705_v26  ;;  %vm11715_vm11 = vnez %v11714_v58 }
 0x151   : > { %3650 = vmatprep.mubr.bf16.mxu1 %v11708_v7 }
 0x156   : > { %3490 = vmatmul.mubr.bf16.gmra.mrb[100].mxu0 %v9275_v4 }
 0x157   : > { %6380 = vmatprep.mubr.msk.bf16.mxu0 %vm11710_vm6, %v9466_v29 }
 0x158   : > { %6425 = vmatmul.mubr.msk.bf16.gmra.mrb[100].mxu1 %vm11712_vm7, %v9325_v59  ;;  %v9764_v59 = vld [vmem:[%s11189_s2] ss:$0 sm:$0xff]  ;;  %vm11720_vm7 = vnez %v11663_v22 }
 0x159   : > { %3658 = vmatprep.mubr.bf16.mxu1 %v9415_v35 }
 0x15e   : > { %3498 = vmatmul.mubr.bf16.gmra.mrb[104].mxu0 %v11708_v7 }
 0x15f   : > { %6383 = vmatprep.mubr.msk.bf16.mxu0 %vm11713_vm5, %v9526_v5 }
 0x160   : > { %6428 = vmatmul.mubr.msk.bf16.gmra.mrb[104].mxu1 %vm11715_vm11, %v9404_v54 }
 0x161   : > { %v6859_v0 = vpop.f32.mrb[0].mxu0  ;;  %3666 = vmatprep.mubr.bf16.mxu1 %v9490_v20 }
 0x162   : > { %v6860_v10 = vpop.f32.mrb[1].mxu0 }
 0x163   : > { %v6861_v1 = vadd.f32 %v6860_v10, %v6859_v0  ;;  %v6862_v4 = vpop.f32.mrb[2].mxu0  ;;  %v6971_v7 = vpop.f32.mrb[0].mxu1 }
 0x164   : > { %v6863_v13 = vpop.f32.mrb[3].mxu0  ;;  %v6972_v0 = vpop.f32.mrb[1].mxu1 }
 0x165   : > { %v6864_v21 = vadd.f32 %v6863_v13, %v6862_v4  ;;  %v3098_v26 = vadd.f32 %v6861_v1, %v9764_v59  ;;  %v6973_v10 = vadd.f32 %v6972_v0, %v6971_v7  ;;  %v6974_v44 = vpop.f32.mrb[2].mxu1 }
 0x166   : > { %3506 = vmatmul.mubr.bf16.gmra.mrb[108].mxu0 %v9415_v35  ;;  %v6975_v58 = vpop.f32.mrb[3].mxu1  ;;  %v11716_v35 = vld [vmem:[#allocation43_spill] sm:$0xff] }
 0x167   : > { %6386 = vmatprep.mubr.msk.bf16.mxu0 %vm9477_vm13, %v9582_v2  ;;  %v3101_v54 = vadd.f32 %v6864_v21, %v9764_v59  ;;  %v6976_v4 = vadd.f32 %v6975_v58, %v6974_v44  ;;  %v9773_v12 = vadd.f32 %v6973_v10, %v3098_v26  ;;  %vm11717_vm11 = vnez %v11716_v35 }
 0x168   : > { %6431 = vmatmul.mubr.msk.bf16.gmra.mrb[108].mxu1 %vm11717_vm11, %v9472_v9 }
 0x169   : > { %v6865_v37 = vpop.f32.mrb[4].mxu0  ;;  %3674 = vmatprep.mubr.bf16.mxu1 %v9539_v53  ;;  %v9779_v23 = vadd.f32 %v6976_v4, %v3101_v54  ;;  %v11718_v4 = vld [vmem:[#allocation45_spill] sm:$0xff] }
 0x16a   : > { %v6866_v45 = vpop.f32.mrb[5].mxu0  ;;  %vm11719_vm11 = vnez %v11718_v4 }
 0x16b   : > { %v6867_v13 = vadd.f32 %v6866_v45, %v6865_v37  ;;  %v6868_v38 = vpop.f32.mrb[6].mxu0  ;;  %v6977_v44 = vpop.f32.mrb[4].mxu1 }
 0x16c   : > { %v6869_v1 = vpop.f32.mrb[7].mxu0  ;;  %v6978_v37 = vpop.f32.mrb[5].mxu1 }
 0x16d   : > { %v6870_v49 = vadd.f32 %v6869_v1, %v6868_v38  ;;  %v3106_v21 = vadd.f32 %v6867_v13, %v9764_v59  ;;  %v6979_v9 = vadd.f32 %v6978_v37, %v6977_v44  ;;  %v6980_v58 = vpop.f32.mrb[6].mxu1  ;;  %v8108_v1 = vld [vmem:[%s8540_s22 + $0xf8] sm:$0xff] }
 0x16e   : > { %3514 = vmatmul.mubr.bf16.gmra.mrb[112].mxu0 %v9490_v20  ;;  %v6981_v26 = vpop.f32.mrb[7].mxu1  ;;  %v1150_v35 = vrot.slane %v8108_v1, 1 }
 0x16f   : > { %6389 = vmatprep.mubr.msk.bf16.mxu0 %vm9533_vm3, %v9621_v18  ;;  %v3109_v45 = vadd.f32 %v6870_v49, %v9764_v59  ;;  %v6982_v0 = vadd.f32 %v6981_v26, %v6980_v58  ;;  %v9787_v20 = vadd.f32 %v6979_v9, %v3106_v21  ;;  %v11723_v58 = vld [vmem:[#allocation14_spill] sm:$0xff] }
 0x170   : > { %6434 = vmatmul.mubr.msk.bf16.gmra.mrb[112].mxu1 %vm11719_vm11, %v9528_v39  ;;  %v11721_v39 = vrot.slane %v9400_v50, 1  ;;  %vm11722_vm11 = vcmp.lt.s32.totalorder %v8551_v28, 7 }
 0x171   : > { %v6871_v38 = vpop.f32.mrb[8].mxu0  ;;  %3682 = vmatprep.mubr.bf16.mxu1 %v9588_v48  ;;  %v9794_v49 = vadd.f32 %v6982_v0, %v3109_v45  ;;  %vm11725_vm3 = vmmov %vm11722_vm11 }
 0x172   : > { %v6872_v7 = vpop.f32.mrb[9].mxu0  ;;  %v1152_v9 = vsel %vm11722_vm11, %v11721_v39, %v1150_v35 }
 0x173   : > { %v6873_v54 = vadd.f32 %v6872_v7, %v6871_v38  ;;  %v6874_v10 = vpop.f32.mrb[10].mxu0  ;;  %v6983_v37 = vpop.f32.mrb[8].mxu1  ;;  %v11724_v38 = vrot.slane %v11723_v58, 1  ;;  %v11726_v58 = vld [vmem:[#allocation47_spill] sm:$0xff] }
 0x174   : > { %v6875_v13 = vpop.f32.mrb[11].mxu0  ;;  %v6984_v21 = vpop.f32.mrb[9].mxu1  ;;  %vm11727_vm11 = vnez %v11726_v58 }
 0x175   : > { %v6876_v46 = vadd.f32 %v6875_v13, %v6874_v10  ;;  %v3114_v44 = vadd.f32 %v6873_v54, %v9764_v59  ;;  %v1183_v45 = vsel %vm11725_vm3, %v1150_v35, %v11724_v38  ;;  %v6985_v26 = vadd.f32 %v6984_v21, %v6983_v37  ;;  %v6986_v7 = vpop.f32.mrb[10].mxu1 }
 0x176   : > { %3522 = vmatmul.mubr.bf16.gmra.mrb[116].mxu0 %v9539_v53  ;;  %v1807_v54 = vpack.c.bf16 %v8108_v1, %v9400_v50  ;;  %v6987_v10 = vpop.f32.mrb[11].mxu1  ;;  %v9811_v55 = vpack.c.bf16 %v1183_v45, %v1152_v9  ;;  %vm11728_vm3 = vnez %v11640_v14 }
 0x177   : > { %6392 = vmatprep.mubr.msk.bf16.mxu0 %vm11720_vm7, %v9662_v57  ;;  %v3117_v53 = vadd.f32 %v6876_v46, %v9764_v59  ;;  %v6988_v4 = vadd.f32 %v6987_v10, %v6986_v7  ;;  %v9813_v39 = vadd.f32 %v6985_v26, %v3114_v44 }
 0x178   : > { %6437 = vmatmul.mubr.msk.bf16.gmra.mrb[116].mxu1 %vm11727_vm11, %v9584_v27 }
 0x179   : > { %v6877_v0 = vpop.f32.mrb[12].mxu0  ;;  %3690 = vmatprep.mubr.bf16.mxu1 %v1807_v54  ;;  %v9818_v37 = vadd.f32 %v6988_v4, %v3117_v53 }
 0x17a   : > { %v6878_v13 = vpop.f32.mrb[13].mxu0 }
 0x17b   : > { %v6879_v60 = vadd.f32 %v6878_v13, %v6877_v0  ;;  %v6880_v30 = vpop.f32.mrb[14].mxu0  ;;  %v6989_v1 = vpop.f32.mrb[12].mxu1  ;;  %v11729_v0 = vmov 0.0|0.0  }
 0x17c   : > { %v6881_v35 = vpop.f32.mrb[15].mxu0  ;;  %v6990_v44 = vpop.f32.mrb[13].mxu1 }
 0x17d   : > { %v6882_v46 = vadd.f32 %v6881_v35, %v6880_v30  ;;  %v3122_v50 = vadd.f32 %v6879_v60, %v9764_v59  ;;  %v6991_v9 = vadd.f32 %v6990_v44, %v6989_v1  ;;  %v6992_v38 = vpop.f32.mrb[14].mxu1 }
 0x17e   : > { %3530 = vmatmul.mubr.bf16.gmra.mrb[120].mxu0 %v9588_v48  ;;  %v6993_v45 = vpop.f32.mrb[15].mxu1 }
 0x17f   : > { %6395 = vmatprep.mubr.msk.bf16.mxu0 %vm9665_vm0, %v9811_v55  ;;  %v3125_v21 = vadd.f32 %v6882_v46, %v9764_v59  ;;  %v6994_v26 = vadd.f32 %v6993_v45, %v6992_v38  ;;  %v9826_v7 = vadd.f32 %v6991_v9, %v3122_v50  ;;  %vm11730_vm0 = vnez %v11703_v8 }
 0x180   : > { %6440 = vmatmul.mubr.msk.bf16.gmra.mrb[120].mxu1 %vm11728_vm3, %v9628_v41 }
 0x181   : > { %v6883_v27 = vpop.f32.mrb[16].mxu0  ;;  %3698 = vmatprep.mubr.bf16.mxu1 %v11729_v0  ;;  %v9832_v10 = vadd.f32 %v6994_v26, %v3125_v21 }
 0x182   : > { %v6884_v30 = vpop.f32.mrb[17].mxu0 }
 0x183   : > { %v6885_v4 = vadd.f32 %v6884_v30, %v6883_v27  ;;  %v6886_v53 = vpop.f32.mrb[18].mxu0  ;;  %v6995_v35 = vpop.f32.mrb[16].mxu1 }
 0x184   : > { %v6887_v48 = vpop.f32.mrb[19].mxu0  ;;  %v6996_v46 = vpop.f32.mrb[17].mxu1 }
 0x185   : > { %v6888_v60 = vadd.f32 %v6887_v48, %v6886_v53  ;;  %v3130_v13 = vadd.f32 %v6885_v4, %v9764_v59  ;;  %v6997_v1 = vadd.f32 %v6996_v46, %v6995_v35  ;;  %v6998_v44 = vpop.f32.mrb[18].mxu1 }
 0x186   : > { %3538 = vmatmul.mubr.bf16.gmra.mrb[124].mxu0 %v1807_v54  ;;  %v6999_v9 = vpop.f32.mrb[19].mxu1 }
 0x187   : > { %7803 = vmatprep.mubr.msk.bf16.mxu0 %vm9641_vm14, %v8710_v52  ;;  %v3133_v50 = vadd.f32 %v6888_v60, %v9764_v59  ;;  %v7000_v27 = vadd.f32 %v6999_v9, %v6998_v44  ;;  %v9839_v30 = vadd.f32 %v6997_v1, %v3130_v13  ;;  %vm11731_vm14 = vnez %v11637_v62  ;;  %v8038_v62 = vld [vmem:[#allocation7 + $0x58] sm:$0xff]  }
 0x188   : > { %3699 = vmatmul.mubr.bf16.gmra.mrb[124].mxu1 %v11729_v0 }
 0x189   : > { %v6889_v41 = vpop.f32.mrb[20].mxu0  ;;  %v9842_v4 = vadd.f32 %v7000_v27, %v3133_v50  ;;  %5075 = vmatprep.mubr.bf16.mxu1 %v11729_v0 }
 0x18a   : > { %v6890_v38 = vpop.f32.mrb[21].mxu0 }
 0x18b   : > { %v6891_v45 = vadd.f32 %v6890_v38, %v6889_v41  ;;  %v6892_v21 = vpop.f32.mrb[22].mxu0  ;;  %v7001_v53 = vpop.f32.mrb[20].mxu1 }
 0x18c   : > { %v6893_v54 = vpop.f32.mrb[23].mxu0  ;;  %v7002_v48 = vpop.f32.mrb[21].mxu1 }
 0x18d   : > { %v6894_v26 = vadd.f32 %v6893_v54, %v6892_v21  ;;  %v3138_v52 = vadd.f32 %v6891_v45, %v9764_v59  ;;  %v7003_v13 = vadd.f32 %v7002_v48, %v7001_v53  ;;  %v7004_v35 = vpop.f32.mrb[22].mxu1 }
 0x18e   : > { %7804 = vmatmul.mubr.msk.bf16.vlgmr.msra.gmra.mrb[128].mxu0 %vm8659_vm9, %v8763_v24  ;;  %v7005_v50 = vpop.f32.mrb[23].mxu1 }
 0x18f   : > { %7807 = vmatprep.mubr.msk.bf16.mxu0 %vm8694_vm12, %v8844_v15  ;;  %v3141_v60 = vadd.f32 %v6894_v26, %v9764_v59  ;;  %v7006_v44 = vadd.f32 %v7005_v50, %v7004_v35  ;;  %v9853_v38 = vadd.f32 %v7003_v13, %v3138_v52 }
 0x191   : > { %v6895_v46 = vpop.f32.mrb[24].mxu0  ;;  %v9855_v45 = vadd.f32 %v7006_v44, %v3141_v60 }
 0x192   : > { %v6896_v1 = vpop.f32.mrb[25].mxu0 }
 0x193   : > { %v6897_v41 = vadd.f32 %v6896_v1, %v6895_v46  ;;  %v6898_v9 = vpop.f32.mrb[26].mxu0  ;;  %v7007_v21 = vpop.f32.mrb[24].mxu1 }
 0x194   : > { %v6899_v24 = vpop.f32.mrb[27].mxu0  ;;  %v7008_v54 = vpop.f32.mrb[25].mxu1 }
 0x195   : > { %v6900_v27 = vadd.f32 %v6899_v24, %v6898_v9  ;;  %v3146_v15 = vadd.f32 %v6897_v41, %v9764_v59  ;;  %v7009_v52 = vadd.f32 %v7008_v54, %v7007_v21  ;;  %v7010_v53 = vpop.f32.mrb[26].mxu1 }
 0x196   : > { %7808 = vmatmul.mubr.msk.bf16.gmra.mrb[132].mxu0 %vm8768_vm2, %v11678_v17  ;;  %v7011_v13 = vpop.f32.mrb[27].mxu1 }
 0x197   : > { %7811 = vmatprep.mubr.msk.bf16.mxu0 %vm8860_vm1, %v11684_v56  ;;  %v3149_v26 = vadd.f32 %v6900_v27, %v9764_v59  ;;  %v7012_v35 = vadd.f32 %v7011_v13, %v7010_v53  ;;  %v9865_v1 = vadd.f32 %v7009_v52, %v3146_v15  ;;  %v8032_v52 = vld [vmem:[#allocation7 + $0x40] sm:$0xff]  }
 0x198   : > { %7315 = vmatprep.subr.bf16.mxu1 %v8032_v52 }
 0x199   : > { %v6901_v48 = vpop.f32.mrb[28].mxu0  ;;  %v9867_v41 = vadd.f32 %v7012_v35, %v3149_v26  ;;  %v8033_v35 = vld [vmem:[#allocation7] sm:$0xff]  }
 0x19a   : > { %v6902_v60 = vpop.f32.mrb[29].mxu0  ;;  %7316 = vmatpush3.bf16.msra.mxu1 %v8033_v35 }
 0x19b   : > { %v6903_v46 = vadd.f32 %v6902_v60, %v6901_v48  ;;  %v6904_v50 = vpop.f32.mrb[30].mxu0  ;;  %v7013_v9 = vpop.f32.mrb[28].mxu1 }
 0x19c   : > { %v6905_v17 = vpop.f32.mrb[31].mxu0  ;;  %v7014_v24 = vpop.f32.mrb[29].mxu1 }
 0x19d   : > { %v6906_v44 = vadd.f32 %v6905_v17, %v6904_v50  ;;  %v3154_v56 = vadd.f32 %v6903_v46, %v9764_v59  ;;  %v7015_v15 = vadd.f32 %v7014_v24, %v7013_v9  ;;  %v7016_v21 = vpop.f32.mrb[30].mxu1 }
 0x19e   : > { %7812 = vmatmul.mubr.msk.bf16.gmra.mrb[136].mxu0 %vm11686_vm15, %v9171_v32  ;;  %v7017_v26 = vpop.f32.mrb[31].mxu1 }
 0x19f   : > { %7815 = vmatprep.mubr.msk.bf16.mxu0 %vm11692_vm8, %v9255_v63  ;;  %v3157_v27 = vadd.f32 %v6906_v44, %v9764_v59  ;;  %v7018_v48 = vadd.f32 %v7017_v26, %v7016_v21  ;;  %v9877_v32 = vadd.f32 %v7015_v15, %v3154_v56 }
 0x1a1   : > { %v6907_v54 = vpop.f32.mrb[32].mxu0  ;;  %v9879_v17 = vadd.f32 %v7018_v48, %v3157_v27 }
 0x1a2   : > { %v6908_v53 = vpop.f32.mrb[33].mxu0 }
 0x1a3   : > { %v6909_v13 = vadd.f32 %v6908_v53, %v6907_v54  ;;  %v6910_v60 = vpop.f32.mrb[34].mxu0  ;;  %v7019_v44 = vpop.f32.mrb[32].mxu1 }
 0x1a4   : > { %v6911_v46 = vpop.f32.mrb[35].mxu0  ;;  %v7020_v56 = vpop.f32.mrb[33].mxu1 }
 0x1a5   : > { %v6912_v50 = vadd.f32 %v6911_v46, %v6910_v60  ;;  %v3162_v63 = vadd.f32 %v6909_v13, %v9764_v59  ;;  %v7021_v24 = vadd.f32 %v7020_v56, %v7019_v44  ;;  %v7022_v15 = vpop.f32.mrb[34].mxu1 }
 0x1a6   : > { %7816 = vmatmul.mubr.msk.bf16.gmra.mrb[140].mxu0 %vm11696_vm4, %v9323_v33  ;;  %v7023_v27 = vpop.f32.mrb[35].mxu1 }
 0x1a7   : > { %7819 = vmatprep.mubr.msk.bf16.mxu0 %vm11700_vm10, %v9402_v19  ;;  %v3165_v9 = vadd.f32 %v6912_v50, %v9764_v59  ;;  %v9889_v52 = vadd.f32 %v7021_v24, %v3162_v63  ;;  %v7024_v26 = vadd.f32 %v7023_v27, %v7022_v15 }
 0x1a9   : > { %v6913_v21 = vpop.f32.mrb[36].mxu0  ;;  %v9891_v13 = vadd.f32 %v7024_v26, %v3165_v9  ;;  %v8034_v9 = vld [vmem:[#allocation7 + $0x48] sm:$0xff]  }
 0x1aa   : > { %v6914_v54 = vpop.f32.mrb[37].mxu0  ;;  %7317 = vmatprep.subr.bf16.mxu1 %v8034_v9  ;;  %v8035_v26 = vld [vmem:[#allocation7 + $0x8] sm:$0xff]  }
 0x1ab   : > { %v6915_v53 = vadd.f32 %v6914_v54, %v6913_v21  ;;  %v6916_v33 = vpop.f32.mrb[38].mxu0  ;;  %v7025_v35 = vpop.f32.mrb[36].mxu1  ;;  %7318 = vmatpush3.bf16.msra.mxu1 %v8035_v26 }
 0x1ac   : > { %v6917_v48 = vpop.f32.mrb[39].mxu0  ;;  %v7026_v46 = vpop.f32.mrb[37].mxu1 }
 0x1ad   : > { %v6918_v60 = vadd.f32 %v6917_v48, %v6916_v33  ;;  %v3170_v19 = vadd.f32 %v6915_v53, %v9764_v59  ;;  %v7027_v63 = vadd.f32 %v7026_v46, %v7025_v35  ;;  %v7028_v44 = vpop.f32.mrb[38].mxu1 }
 0x1ae   : > { %7820 = vmatmul.mubr.msk.bf16.gmra.mrb[144].mxu0 %vm11730_vm0, %v9466_v29  ;;  %v7029_v24 = vpop.f32.mrb[39].mxu1 }
 0x1af   : > { %7823 = vmatprep.mubr.msk.bf16.mxu0 %vm11710_vm6, %v9526_v5  ;;  %v3173_v50 = vadd.f32 %v6918_v60, %v9764_v59  ;;  %v9901_v21 = vadd.f32 %v7027_v63, %v3170_v19  ;;  %v7030_v27 = vadd.f32 %v7029_v24, %v7028_v44 }
 0x1b1   : > { %v6919_v56 = vpop.f32.mrb[40].mxu0  ;;  %v9903_v33 = vadd.f32 %v7030_v27, %v3173_v50 }
 0x1b2   : > { %v6920_v15 = vpop.f32.mrb[41].mxu0 }
 0x1b3   : > { %v6921_v29 = vadd.f32 %v6920_v15, %v6919_v56  ;;  %v6922_v54 = vpop.f32.mrb[42].mxu0  ;;  %v7031_v60 = vpop.f32.mrb[40].mxu1 }
 0x1b4   : > { %v6923_v53 = vpop.f32.mrb[43].mxu0  ;;  %v7032_v19 = vpop.f32.mrb[41].mxu1 }
 0x1b5   : > { %v6924_v5 = vadd.f32 %v6923_v53, %v6922_v54  ;;  %v3178_v48 = vadd.f32 %v6921_v29, %v9764_v59  ;;  %v7033_v46 = vadd.f32 %v7032_v19, %v7031_v60  ;;  %v7034_v63 = vpop.f32.mrb[42].mxu1 }
 0x1b6   : > { %7824 = vmatmul.mubr.msk.bf16.gmra.mrb[148].mxu0 %vm11713_vm5, %v9582_v2  ;;  %v7035_v44 = vpop.f32.mrb[43].mxu1 }
 0x1b7   : > { %7827 = vmatprep.mubr.msk.bf16.mxu0 %vm9477_vm13, %v9621_v18  ;;  %v3181_v35 = vadd.f32 %v6924_v5, %v9764_v59  ;;  %v9913_v9 = vadd.f32 %v7033_v46, %v3178_v48  ;;  %v7036_v24 = vadd.f32 %v7035_v44, %v7034_v63 }
 0x1b9   : > { %v6925_v50 = vpop.f32.mrb[44].mxu0  ;;  %v9915_v29 = vadd.f32 %v7036_v24, %v3181_v35  ;;  %v8036_v35 = vld [vmem:[#allocation7 + $0x50] sm:$0xff]  }
 0x1ba   : > { %v6926_v56 = vpop.f32.mrb[45].mxu0  ;;  %7319 = vmatprep.subr.bf16.mxu1 %v8036_v35  ;;  %v8037_v24 = vld [vmem:[#allocation7 + $0x10] sm:$0xff]  }
 0x1bb   : > { %v6927_v15 = vadd.f32 %v6926_v56, %v6925_v50  ;;  %v6928_v2 = vpop.f32.mrb[46].mxu0  ;;  %v7037_v26 = vpop.f32.mrb[44].mxu1  ;;  %7320 = vmatpush3.bf16.msra.mxu1 %v8037_v24 }
 0x1bc   : > { %v6929_v27 = vpop.f32.mrb[47].mxu0  ;;  %v7038_v53 = vpop.f32.mrb[45].mxu1  ;;  %7321 = vmatprep.subr.bf16.mxu1 %v8038_v62 }
 0x1bd   : > { %v6930_v54 = vadd.f32 %v6929_v27, %v6928_v2  ;;  %v3186_v18 = vadd.f32 %v6927_v15, %v9764_v59  ;;  %v7039_v48 = vadd.f32 %v7038_v53, %v7037_v26  ;;  %v7040_v60 = vpop.f32.mrb[46].mxu1 }
 0x1be   : > { %7828 = vmatmul.mubr.msk.bf16.gmra.mrb[152].mxu0 %vm11731_vm14, %v9662_v57  ;;  %v7041_v46 = vpop.f32.mrb[47].mxu1  ;;  %vm11734_vm14 = vcmp.lt.s32.totalorder %v8551_v28, 7 }
 0x1bf   : > { %7831 = vmatprep.mubr.msk.bf16.mxu0 %vm11720_vm7, %v9811_v55  ;;  %v3189_v5 = vadd.f32 %v6930_v54, %v9764_v59  ;;  %v9925_v50 = vadd.f32 %v7039_v48, %v3186_v18  ;;  %v7042_v44 = vadd.f32 %v7041_v46, %v7040_v60  ;;  %vm11733_vm7 = vcmp.lt.s32.totalorder %v8551_v28, 1  ;;  %vm11737_vm11 = vmmov %vm11734_vm14 }
 0x1c0   : > { %vm11735_vm3 = vmmov %vm11733_vm7 }
 0x1c1   : > { %v6931_v19 = vpop.f32.mrb[48].mxu0  ;;  %v9927_v2 = vadd.f32 %v7042_v44, %v3189_v5  ;;  %vm11736_vm13 = vmmov %vm11735_vm3 }
 0x1c2   : > { %v6932_v63 = vpop.f32.mrb[49].mxu0 }
 0x1c3   : > { %v6933_v57 = vadd.f32 %v6932_v63, %v6931_v19  ;;  %v6934_v56 = vpop.f32.mrb[50].mxu0  ;;  %v7043_v54 = vpop.f32.mrb[48].mxu1 }
 0x1c4   : > { %v6935_v15 = vpop.f32.mrb[51].mxu0  ;;  %v7044_v26 = vpop.f32.mrb[49].mxu1 }
 0x1c5   : > { %v6936_v55 = vadd.f32 %v6935_v15, %v6934_v56  ;;  %v3194_v27 = vadd.f32 %v6933_v57, %v9764_v59  ;;  %v7045_v18 = vadd.f32 %v7044_v26, %v7043_v54  ;;  %v7046_v48 = vpop.f32.mrb[50].mxu1 }
 0x1c6   : > { %7832 = vmatmul.mubr.bf16.gmra.mrb[156].mxu0 %v11729_v0  ;;  %v7047_v19 = vpop.f32.mrb[51].mxu1 }
 0x1c7   : > { %v3197_v53 = vadd.f32 %v6936_v55, %v9764_v59  ;;  %v9932_v35 = vadd.f32 %v7045_v18, %v3194_v27  ;;  %v7048_v63 = vadd.f32 %v7047_v19, %v7046_v48 }
 0x1c9   : > { %v6937_v60 = vpop.f32.mrb[52].mxu0  ;;  %v9934_v24 = vadd.f32 %v7048_v63, %v3197_v53  ;;  %v8039_v53 = vld [vmem:[#allocation7 + $0x18] sm:$0xff]  }
 0x1ca   : > { %v6938_v46 = vpop.f32.mrb[53].mxu0  ;;  %7322 = vmatpush3.bf16.msra.mxu1 %v8039_v53 }
 0x1cb   : > { %v6939_v5 = vadd.f32 %v6938_v46, %v6937_v60  ;;  %v6940_v44 = vpop.f32.mrb[54].mxu0  ;;  %v7049_v61 = vpop.f32.mrb[52].mxu1 }
 0x1cc   : > { %v6941_v56 = vpop.f32.mrb[55].mxu0  ;;  %v7050_v43 = vpop.f32.mrb[53].mxu1 }
 0x1cd   : > { %v6942_v15 = vadd.f32 %v6941_v56, %v6940_v44  ;;  %v3202_v57 = vadd.f32 %v6939_v5, %v9764_v59  ;;  %v7051_v54 = vadd.f32 %v7050_v43, %v7049_v61  ;;  %v7052_v26 = vpop.f32.mrb[54].mxu1 }
 0x1ce   : > { %v7053_v14 = vpop.f32.mrb[55].mxu1 }
 0x1cf   : > { %v3205_v55 = vadd.f32 %v6942_v15, %v9764_v59  ;;  %v9938_v18 = vadd.f32 %v7051_v54, %v3202_v57  ;;  %v7054_v48 = vadd.f32 %v7053_v14, %v7052_v26 }
 0x1d1   : > { %v6943_v22 = vpop.f32.mrb[56].mxu0  ;;  %v9940_v63 = vadd.f32 %v7054_v48, %v3205_v55  ;;  %v8040_v48 = vld [vmem:[#allocation7 + $0x60] sm:$0xff]  }
 0x1d2   : > { %v6944_v27 = vpop.f32.mrb[57].mxu0  ;;  %7323 = vmatprep.subr.bf16.mxu1 %v8040_v48  ;;  %v8044_v48 = vld [vmem:[#allocation7 + $0x70] sm:$0xff]  }
 0x1d3   : > { %v6945_v60 = vadd.f32 %v6944_v27, %v6943_v22  ;;  %v6946_v19 = vpop.f32.mrb[58].mxu0  ;;  %v7055_v43 = vpop.f32.mrb[56].mxu1 }
 0x1d4   : > { %v6947_v46 = vpop.f32.mrb[59].mxu0  ;;  %v7056_v61 = vpop.f32.mrb[57].mxu1 }
 0x1d5   : > { %v6948_v5 = vadd.f32 %v6947_v46, %v6946_v19  ;;  %v3210_v44 = vadd.f32 %v6945_v60, %v9764_v59  ;;  %v7057_v15 = vadd.f32 %v7056_v61, %v7055_v43  ;;  %v7058_v16 = vpop.f32.mrb[58].mxu1  ;;  %v8041_v60 = vld [vmem:[#allocation7 + $0x20] sm:$0xff]   ;;  %v8042_v61 = vld [vmem:[#allocation7 + $0x68] sm:$0xff]  }
 0x1d6   : > { %v7059_v54 = vpop.f32.mrb[59].mxu1  ;;  %7324 = vmatpush3.bf16.msra.mxu1 %v8041_v60 }
 0x1d7   : > { %v3213_v56 = vadd.f32 %v6948_v5, %v9764_v59  ;;  %v9944_v22 = vadd.f32 %v7057_v15, %v3210_v44  ;;  %v7060_v62 = vadd.f32 %v7059_v54, %v7058_v16  ;;  %7325 = vmatprep.subr.bf16.mxu1 %v8042_v61 }
 0x1d9   : > { %v6949_v57 = vpop.f32.mrb[60].mxu0  ;;  %v9946_v19 = vadd.f32 %v7060_v62, %v3213_v56 }
 0x1da   : > { %v6950_v14 = vpop.f32.mrb[61].mxu0 }
 0x1db   : > { %v6951_v26 = vadd.f32 %v6950_v14, %v6949_v57  ;;  %v6952_v27 = vpop.f32.mrb[62].mxu0  ;;  %v7061_v5 = vpop.f32.mrb[60].mxu1  ;;  %v8043_v57 = vld [vmem:[#allocation7 + $0x28] sm:$0xff]  }
 0x1dc   : > { %v6953_v55 = vpop.f32.mrb[63].mxu0  ;;  %v7062_v43 = vpop.f32.mrb[61].mxu1  ;;  %7326 = vmatpush3.bf16.msra.mxu1 %v8043_v57 }
 0x1dd   : > { %v6954_v53 = vadd.f32 %v6953_v55, %v6952_v27  ;;  %v3218_v46 = vadd.f32 %v6951_v26, %v9764_v59  ;;  %v7063_v44 = vadd.f32 %v7062_v43, %v7061_v5  ;;  %v7064_v15 = vpop.f32.mrb[62].mxu1  ;;  %7327 = vmatprep.subr.bf16.mxu1 %v8044_v48 }
 0x1de   : > { %v7065_v54 = vpop.f32.mrb[63].mxu1 }
 0x1df   : > { %v3221_v58 = vadd.f32 %v6954_v53, %v9764_v59  ;;  %v9950_v56 = vadd.f32 %v7063_v44, %v3218_v46  ;;  %v7066_v62 = vadd.f32 %v7065_v54, %v7064_v15  ;;  %v8045_v53 = vld [vmem:[#allocation7 + $0x30] sm:$0xff]   ;;  %v8046_v46 = vld [vmem:[#allocation7 + $0x78] sm:$0xff]  }
 0x1e0   : > { %7328 = vmatpush3.bf16.msra.mxu1 %v8045_v53  ;;  %v8047_v54 = vld [vmem:[#allocation7 + $0x38] sm:$0xff]  }
 0x1e1   : > { %v7083_v16 = vpop.f32.mrb[64].mxu0  ;;  %v9952_v60 = vadd.f32 %v7066_v62, %v3221_v58  ;;  %7329 = vmatprep.subr.bf16.mxu1 %v8046_v46 }
 0x1e2   : > { %v7084_v14 = vpop.f32.mrb[65].mxu0 }
 0x1e3   : > { %v7085_v27 = vadd.f32 %v7084_v14, %v7083_v16  ;;  %v7086_v55 = vpop.f32.mrb[66].mxu0  ;;  %v7195_v5 = vpop.f32.mrb[64].mxu1 }
 0x1e4   : > { %v7087_v26 = vpop.f32.mrb[67].mxu0  ;;  %v7196_v61 = vpop.f32.mrb[65].mxu1  ;;  %7330 = vmatpush3.bf16.msra.mxu1 %v8047_v54 }
 0x1e5   : > { %v3420_v51 = vadd.f32 %v7085_v27, %v9773_v12  ;;  %v7088_v59 = vadd.f32 %v7087_v26, %v7086_v55  ;;  %v7197_v44 = vadd.f32 %v7196_v61, %v7195_v5  ;;  %v7198_v15 = vpop.f32.mrb[66].mxu1 }
 0x1e6   : > { %v7199_v57 = vpop.f32.mrb[67].mxu1 }
 0x1e7   : > { %v3423_v43 = vadd.f32 %v7088_v59, %v9779_v23  ;;  %v7200_v58 = vadd.f32 %v7199_v57, %v7198_v15  ;;  %v9956_v12 = vadd.f32 %v7197_v44, %v3420_v51  ;;  %5076 = vmatmul.mubr.bf16.vlgmr.msra.gmra.mrb[128].mxu1 %v11729_v0 }
 0x1e9   : > { %v7089_v16 = vpop.f32.mrb[68].mxu0  ;;  %v9959_v26 = vadd.f32 %v7200_v58, %v3423_v43 }
 0x1ea   : > { %v7090_v14 = vpop.f32.mrb[69].mxu0 }
 0x1eb   : > { %v7091_v62 = vadd.f32 %v7090_v14, %v7089_v16  ;;  %v7092_v3 = vpop.f32.mrb[70].mxu0  ;;  %v7201_v48 = vpop.f32.mrb[68].mxu1 }
 0x1ec   : > { %v7093_v27 = vpop.f32.mrb[71].mxu0  ;;  %v7202_v53 = vpop.f32.mrb[69].mxu1 }
 0x1ed   : > { %v3428_v55 = vadd.f32 %v7091_v62, %v9787_v20  ;;  %v7094_v23 = vadd.f32 %v7093_v27, %v7092_v3  ;;  %v7203_v5 = vadd.f32 %v7202_v53, %v7201_v48  ;;  %v7204_v61 = vpop.f32.mrb[70].mxu1 }
 0x1ee   : > { %v7205_v15 = vpop.f32.mrb[71].mxu1 }
 0x1ef   : > { %v3431_v59 = vadd.f32 %v7094_v23, %v9794_v49  ;;  %v7206_v51 = vadd.f32 %v7205_v15, %v7204_v61  ;;  %v9963_v57 = vadd.f32 %v7203_v5, %v3428_v55 }
 0x1f1   : > { %v7095_v46 = vpop.f32.mrb[72].mxu0  ;;  %v9966_v14 = vadd.f32 %v7206_v51, %v3431_v59 }
 0x1f2   : > { %v7096_v16 = vpop.f32.mrb[73].mxu0 }
 0x1f3   : > { %v7097_v44 = vadd.f32 %v7096_v16, %v7095_v46  ;;  %v7098_v54 = vpop.f32.mrb[74].mxu0  ;;  %v7207_v58 = vpop.f32.mrb[72].mxu1 }
 0x1f4   : > { %v7099_v20 = vpop.f32.mrb[75].mxu0  ;;  %v7208_v62 = vpop.f32.mrb[73].mxu1 }
 0x1f5   : > { %v3436_v3 = vadd.f32 %v7097_v44, %v9813_v39  ;;  %v7100_v43 = vadd.f32 %v7099_v20, %v7098_v54  ;;  %v7209_v27 = vadd.f32 %v7208_v62, %v7207_v58  ;;  %v7210_v23 = vpop.f32.mrb[74].mxu1 }
 0x1f6   : > { %v7211_v53 = vpop.f32.mrb[75].mxu1 }
 0x1f7   : > { %v3439_v49 = vadd.f32 %v7100_v43, %v9818_v37  ;;  %v7212_v61 = vadd.f32 %v7211_v53, %v7210_v23  ;;  %v9969_v55 = vadd.f32 %v7209_v27, %v3436_v3 }
 0x1f9   : > { %v7101_v48 = vpop.f32.mrb[76].mxu0  ;;  %v9972_v59 = vadd.f32 %v7212_v61, %v3439_v49 }
 0x1fa   : > { %v7102_v8 = vpop.f32.mrb[77].mxu0 }
 0x1fb   : > { %v7103_v46 = vadd.f32 %v7102_v8, %v7101_v48  ;;  %v7104_v15 = vpop.f32.mrb[78].mxu0  ;;  %v7213_v51 = vpop.f32.mrb[76].mxu1 }
 0x1fc   : > { %v7105_v5 = vpop.f32.mrb[79].mxu0  ;;  %v7214_v44 = vpop.f32.mrb[77].mxu1 }
 0x1fd   : > { %v3444_v39 = vadd.f32 %v7103_v46, %v9826_v7  ;;  %v7106_v16 = vadd.f32 %v7105_v5, %v7104_v15  ;;  %v7215_v54 = vadd.f32 %v7214_v44, %v7213_v51  ;;  %v7216_v20 = vpop.f32.mrb[78].mxu1  ;;  %v8048_v15 = vld [vmem:[#allocation7 + $0xc0] sm:$0xff]  }
 0x1fe   : > { %v7217_v58 = vpop.f32.mrb[79].mxu1  ;;  %v8049_v44 = vld [vmem:[#allocation7 + $0x80] sm:$0xff]   ;;  %7427 = vmatprep.subr.bf16.mxu0 %v8048_v15 }
 0x1ff   : > { %v3447_v37 = vadd.f32 %v7106_v16, %v9832_v10  ;;  %v7218_v23 = vadd.f32 %v7217_v58, %v7216_v20  ;;  %v9975_v3 = vadd.f32 %v7215_v54, %v3444_v39  ;;  %7428 = vmatpush3.bf16.msra.mxu0 %v8049_v44 }
 0x201   : > { %v7107_v43 = vpop.f32.mrb[80].mxu0  ;;  %v9978_v49 = vadd.f32 %v7218_v23, %v3447_v37  ;;  %v8050_v37 = vld [vmem:[#allocation7 + $0xc8] sm:$0xff]  }
 0x202   : > { %v7108_v62 = vpop.f32.mrb[81].mxu0  ;;  %7429 = vmatprep.subr.bf16.mxu0 %v8050_v37  ;;  %v8055_v37 = vld [vmem:[#allocation7 + $0x98] sm:$0xff]  }
 0x203   : > { %v7109_v8 = vadd.f32 %v7108_v62, %v7107_v43  ;;  %v7110_v48 = vpop.f32.mrb[82].mxu0  ;;  %v7219_v61 = vpop.f32.mrb[80].mxu1 }
 0x204   : > { %v7111_v27 = vpop.f32.mrb[83].mxu0  ;;  %v7220_v46 = vpop.f32.mrb[81].mxu1 }
 0x205   : > { %v3452_v7 = vadd.f32 %v7109_v8, %v9839_v30  ;;  %v7112_v53 = vadd.f32 %v7111_v27, %v7110_v48  ;;  %v7221_v5 = vadd.f32 %v7220_v46, %v7219_v61  ;;  %v7222_v16 = vpop.f32.mrb[82].mxu1  ;;  %v8051_v48 = vld [vmem:[#allocation7 + $0x88] sm:$0xff]   ;;  %v8052_v46 = vld [vmem:[#allocation7 + $0xd0] sm:$0xff]  }
 0x206   : > { %v7223_v20 = vpop.f32.mrb[83].mxu1  ;;  %7430 = vmatpush3.bf16.msra.mxu0 %v8051_v48 }
 0x207   : > { %v3455_v10 = vadd.f32 %v7112_v53, %v9842_v4  ;;  %v7224_v39 = vadd.f32 %v7223_v20, %v7222_v16  ;;  %v9981_v62 = vadd.f32 %v7221_v5, %v3452_v7  ;;  %v8053_v5 = vld [vmem:[#allocation7 + $0x90] sm:$0xff]   ;;  %7431 = vmatprep.subr.bf16.mxu0 %v8052_v46 }
 0x209   : > { %v7113_v51 = vpop.f32.mrb[84].mxu0  ;;  %v9984_v8 = vadd.f32 %v7224_v39, %v3455_v10 }
 0x20a   : > { %v7114_v43 = vpop.f32.mrb[85].mxu0  ;;  %7432 = vmatpush3.bf16.msra.mxu0 %v8053_v5 }
 0x20b   : > { %v7115_v54 = vadd.f32 %v7114_v43, %v7113_v51  ;;  %v7116_v58 = vpop.f32.mrb[86].mxu0  ;;  %v7225_v27 = vpop.f32.mrb[84].mxu1 }
 0x20c   : > { %v7117_v30 = vpop.f32.mrb[87].mxu0  ;;  %v7226_v61 = vpop.f32.mrb[85].mxu1 }
 0x20d   : > { %v3460_v23 = vadd.f32 %v7115_v54, %v9853_v38  ;;  %v7118_v4 = vadd.f32 %v7117_v30, %v7116_v58  ;;  %v7227_v15 = vadd.f32 %v7226_v61, %v7225_v27  ;;  %v7228_v16 = vpop.f32.mrb[86].mxu1  ;;  %v8054_v54 = vld [vmem:[#allocation7 + $0xd8] sm:$0xff]   ;;  %v8056_v61 = vld [vmem:[#allocation7 + $0xe0] sm:$0xff]  }
 0x20e   : > { %v7229_v51 = vpop.f32.mrb[87].mxu1  ;;  %7433 = vmatprep.subr.bf16.mxu0 %v8054_v54  ;;  %v8059_v54 = vld [vmem:[#allocation7 + $0xa8] sm:$0xff]  }
 0x20f   : > { %v3463_v53 = vadd.f32 %v7118_v4, %v9855_v45  ;;  %v7230_v20 = vadd.f32 %v7229_v51, %v7228_v16  ;;  %v9987_v10 = vadd.f32 %v7227_v15, %v3460_v23  ;;  %7434 = vmatpush3.bf16.msra.mxu0 %v8055_v37  ;;  %v8057_v15 = vld [vmem:[#allocation7 + $0xa0] sm:$0xff]  }
 0x210   : > { %7435 = vmatprep.subr.bf16.mxu0 %v8056_v61 }
 0x211   : > { %v7119_v7 = vpop.f32.mrb[88].mxu0  ;;  %v9990_v30 = vadd.f32 %v7230_v20, %v3463_v53 }
 0x212   : > { %v7120_v44 = vpop.f32.mrb[89].mxu0 }
 0x213   : > { %v7121_v38 = vadd.f32 %v7120_v44, %v7119_v7  ;;  %v7122_v43 = vpop.f32.mrb[90].mxu0  ;;  %v7231_v4 = vpop.f32.mrb[88].mxu1  ;;  %7436 = vmatpush3.bf16.msra.mxu0 %v8057_v15  ;;  %v8063_v15 = vld [vmem:[#allocation7 + $0xb0] sm:$0xff]  }
 0x214   : > { %v7123_v39 = vpop.f32.mrb[91].mxu0  ;;  %v7232_v27 = vpop.f32.mrb[89].mxu1 }
 0x215   : > { %v3468_v45 = vadd.f32 %v7121_v38, %v9865_v1  ;;  %v7124_v58 = vadd.f32 %v7123_v39, %v7122_v43  ;;  %v7233_v46 = vadd.f32 %v7232_v27, %v7231_v4  ;;  %v7234_v16 = vpop.f32.mrb[90].mxu1  ;;  %v8058_v38 = vld [vmem:[#allocation7 + $0xe8] sm:$0xff]   ;;  %v8061_v27 = vld [vmem:[#allocation7 + $0xf0] sm:$0xff]  }
 0x216   : > { %v7235_v7 = vpop.f32.mrb[91].mxu1  ;;  %7437 = vmatprep.subr.bf16.mxu0 %v8058_v38 }
 0x217   : > { %v3471_v48 = vadd.f32 %v7124_v58, %v9867_v41  ;;  %v7236_v51 = vadd.f32 %v7235_v7, %v7234_v16  ;;  %v9993_v53 = vadd.f32 %v7233_v46, %v3468_v45  ;;  %7438 = vmatpush3.bf16.msra.mxu0 %v8059_v54  ;;  %v8060_v46 = vld [vmem:[#allocation7 + $0x140] sm:$0xff]  }
 0x218   : > { %7439 = vmatprep.subr.bf16.mxu0 %v8061_v27  ;;  %7539 = vmatprep.subr.bf16.mxu1 %v8060_v46 }
 0x219   : > { %v7125_v23 = vpop.f32.mrb[92].mxu0  ;;  %v9996_v39 = vadd.f32 %v7236_v51, %v3471_v48 }
 0x21a   : > { %v7126_v5 = vpop.f32.mrb[93].mxu0 }
 0x21b   : > { %v7127_v1 = vadd.f32 %v7126_v5, %v7125_v23  ;;  %v7128_v44 = vpop.f32.mrb[94].mxu0  ;;  %v7237_v58 = vpop.f32.mrb[92].mxu1  ;;  %v8062_v23 = vld [vmem:[#allocation7 + $0x100] sm:$0xff]   ;;  %7440 = vmatpush3.bf16.msra.mxu0 %v8063_v15 }
 0x21c   : > { %v7129_v20 = vpop.f32.mrb[95].mxu0  ;;  %v7238_v4 = vpop.f32.mrb[93].mxu1  ;;  %7540 = vmatpush3.bf16.msra.mxu1 %v8062_v23 }
 0x21d   : > { %v3476_v41 = vadd.f32 %v7127_v1, %v9877_v32  ;;  %v7130_v43 = vadd.f32 %v7129_v20, %v7128_v44  ;;  %v7239_v61 = vadd.f32 %v7238_v4, %v7237_v58  ;;  %v7240_v16 = vpop.f32.mrb[94].mxu1  ;;  %v8064_v32 = vld [vmem:[#allocation7 + $0xf8] sm:$0xff]  }
 0x21e   : > { %v7241_v7 = vpop.f32.mrb[95].mxu1  ;;  %7441 = vmatprep.subr.bf16.mxu0 %v8064_v32 }
 0x21f   : > { %v3479_v37 = vadd.f32 %v7130_v43, %v9879_v17  ;;  %v7242_v48 = vadd.f32 %v7241_v7, %v7240_v16  ;;  %v9999_v44 = vadd.f32 %v7239_v61, %v3476_v41  ;;  %v8065_v17 = vld [vmem:[#allocation7 + $0xb8] sm:$0xff]  }
 0x220   : > { %7442 = vmatpush3.bf16.msra.mxu0 %v8065_v17 }
 0x221   : > { %v7131_v45 = vpop.f32.mrb[96].mxu0  ;;  %v10002_v54 = vadd.f32 %v7242_v48, %v3479_v37 }
 0x222   : > { %v7132_v5 = vpop.f32.mrb[97].mxu0 }
 0x223   : > { %v7133_v51 = vadd.f32 %v7132_v5, %v7131_v45  ;;  %v7134_v1 = vpop.f32.mrb[98].mxu0  ;;  %v7243_v58 = vpop.f32.mrb[96].mxu1 }
 0x224   : > { %v7135_v20 = vpop.f32.mrb[99].mxu0  ;;  %v7244_v27 = vpop.f32.mrb[97].mxu1 }
 0x225   : > { %v3484_v38 = vadd.f32 %v7133_v51, %v9889_v52  ;;  %v7136_v43 = vadd.f32 %v7135_v20, %v7134_v1  ;;  %v7245_v16 = vadd.f32 %v7244_v27, %v7243_v58  ;;  %v7246_v45 = vpop.f32.mrb[98].mxu1  ;;  %v8066_v51 = vld [vmem:[#allocation7 + $0x148] sm:$0xff]  }
 0x226   : > { %v7247_v61 = vpop.f32.mrb[99].mxu1  ;;  %7541 = vmatprep.subr.bf16.mxu1 %v8066_v51 }
 0x227   : > { %v3487_v4 = vadd.f32 %v7136_v43, %v9891_v13  ;;  %v7248_v15 = vadd.f32 %v7247_v61, %v7246_v45  ;;  %v10005_v23 = vadd.f32 %v7245_v16, %v3484_v38  ;;  %v8067_v13 = vld [vmem:[#allocation7 + $0x108] sm:$0xff]  }
 0x228   : > { %7542 = vmatpush3.bf16.msra.mxu1 %v8067_v13 }
 0x229   : > { %v7137_v41 = vpop.f32.mrb[100].mxu0  ;;  %v10008_v48 = vadd.f32 %v7248_v15, %v3487_v4 }
 0x22a   : > { %v7138_v46 = vpop.f32.mrb[101].mxu0 }
 0x22b   : > { %v7139_v7 = vadd.f32 %v7138_v46, %v7137_v41  ;;  %v7140_v5 = vpop.f32.mrb[102].mxu0  ;;  %v7249_v1 = vpop.f32.mrb[100].mxu1 }
 0x22c   : > { %v7141_v32 = vpop.f32.mrb[103].mxu0  ;;  %v7250_v20 = vpop.f32.mrb[101].mxu1 }
 0x22d   : > { %v3492_v52 = vadd.f32 %v7139_v7, %v9901_v21  ;;  %v7142_v37 = vadd.f32 %v7141_v32, %v7140_v5  ;;  %v7251_v43 = vadd.f32 %v7250_v20, %v7249_v1  ;;  %v7252_v58 = vpop.f32.mrb[102].mxu1 }
 0x22e   : > { %v7253_v45 = vpop.f32.mrb[103].mxu1 }
 0x22f   : > { %v3495_v17 = vadd.f32 %v7142_v37, %v9903_v33  ;;  %v7254_v16 = vadd.f32 %v7253_v45, %v7252_v58  ;;  %v10011_v21 = vadd.f32 %v7251_v43, %v3492_v52 }
 0x231   : > { %v7143_v27 = vpop.f32.mrb[104].mxu0  ;;  %v10014_v7 = vadd.f32 %v7254_v16, %v3495_v17  ;;  %v8068_v16 = vld [vmem:[#allocation7 + $0x150] sm:$0xff]  }
 0x232   : > { %v7144_v38 = vpop.f32.mrb[105].mxu0  ;;  %7543 = vmatprep.subr.bf16.mxu1 %v8068_v16 }
 0x233   : > { %v7145_v41 = vadd.f32 %v7144_v38, %v7143_v27  ;;  %v7146_v61 = vpop.f32.mrb[106].mxu0  ;;  %v7255_v33 = vpop.f32.mrb[104].mxu1 }
 0x234   : > { %v7147_v4 = vpop.f32.mrb[107].mxu0  ;;  %v7256_v32 = vpop.f32.mrb[105].mxu1 }
 0x235   : > { %v3500_v46 = vadd.f32 %v7145_v41, %v9913_v9  ;;  %v7148_v15 = vadd.f32 %v7147_v4, %v7146_v61  ;;  %v7257_v37 = vadd.f32 %v7256_v32, %v7255_v33  ;;  %v7258_v51 = vpop.f32.mrb[106].mxu1  ;;  %v8069_v41 = vld [vmem:[#allocation7 + $0x110] sm:$0xff]  }
 0x236   : > { %v7259_v1 = vpop.f32.mrb[107].mxu1  ;;  %7544 = vmatpush3.bf16.msra.mxu1 %v8069_v41 }
 0x237   : > { %v3503_v5 = vadd.f32 %v7148_v15, %v9915_v29  ;;  %v7260_v58 = vadd.f32 %v7259_v1, %v7258_v51  ;;  %v10017_v52 = vadd.f32 %v7257_v37, %v3500_v46 }
 0x239   : > { %v7149_v13 = vpop.f32.mrb[108].mxu0  ;;  %v10020_v17 = vadd.f32 %v7260_v58, %v3503_v5 }
 0x23a   : > { %v7150_v20 = vpop.f32.mrb[109].mxu0 }
 0x23b   : > { %v7151_v27 = vadd.f32 %v7150_v20, %v7149_v13  ;;  %v7152_v45 = vpop.f32.mrb[110].mxu0  ;;  %v7261_v29 = vpop.f32.mrb[108].mxu1 }
 0x23c   : > { %v7153_v43 = vpop.f32.mrb[111].mxu0  ;;  %v7262_v4 = vpop.f32.mrb[109].mxu1 }
 0x23d   : > { %v3508_v9 = vadd.f32 %v7151_v27, %v9925_v50  ;;  %v7154_v38 = vadd.f32 %v7153_v43, %v7152_v45  ;;  %v7263_v15 = vadd.f32 %v7262_v4, %v7261_v29  ;;  %v7264_v33 = vpop.f32.mrb[110].mxu1 }
 0x23e   : > { %v7265_v51 = vpop.f32.mrb[111].mxu1 }
 0x23f   : > { %v3511_v61 = vadd.f32 %v7154_v38, %v9927_v2  ;;  %v7266_v37 = vadd.f32 %v7265_v51, %v7264_v33  ;;  %v10023_v50 = vadd.f32 %v7263_v15, %v3508_v9 }
 0x241   : > { %v7155_v32 = vpop.f32.mrb[112].mxu0  ;;  %v10026_v27 = vadd.f32 %v7266_v37, %v3511_v61  ;;  %v8070_v37 = vld [vmem:[#allocation7 + $0x158] sm:$0xff]  }
 0x242   : > { %v7156_v46 = vpop.f32.mrb[113].mxu0  ;;  %7545 = vmatprep.subr.bf16.mxu1 %v8070_v37 }
 0x243   : > { %v7157_v13 = vadd.f32 %v7156_v46, %v7155_v32  ;;  %v7158_v1 = vpop.f32.mrb[114].mxu0  ;;  %v7267_v2 = vpop.f32.mrb[112].mxu1 }
 0x244   : > { %v7159_v5 = vpop.f32.mrb[115].mxu0  ;;  %v7268_v43 = vpop.f32.mrb[113].mxu1 }
 0x245   : > { %v3516_v20 = vadd.f32 %v7157_v13, %v9932_v35  ;;  %v7160_v58 = vadd.f32 %v7159_v5, %v7158_v1  ;;  %v7269_v38 = vadd.f32 %v7268_v43, %v7267_v2  ;;  %v7270_v16 = vpop.f32.mrb[114].mxu1  ;;  %v8071_v13 = vld [vmem:[#allocation7 + $0x118] sm:$0xff]  }
 0x246   : > { %v7271_v29 = vpop.f32.mrb[115].mxu1  ;;  %7546 = vmatpush3.bf16.msra.mxu1 %v8071_v13 }
 0x247   : > { %v3519_v45 = vadd.f32 %v7160_v58, %v9934_v24  ;;  %v7272_v33 = vadd.f32 %v7271_v29, %v7270_v16  ;;  %v10029_v9 = vadd.f32 %v7269_v38, %v3516_v20 }
 0x249   : > { %v7161_v41 = vpop.f32.mrb[116].mxu0  ;;  %v10032_v61 = vadd.f32 %v7272_v33, %v3519_v45 }
 0x24a   : > { %v7162_v4 = vpop.f32.mrb[117].mxu0 }
 0x24b   : > { %v7163_v32 = vadd.f32 %v7162_v4, %v7161_v41  ;;  %v7164_v51 = vpop.f32.mrb[118].mxu0  ;;  %v7273_v24 = vpop.f32.mrb[116].mxu1 }
 0x24c   : > { %v7165_v15 = vpop.f32.mrb[119].mxu0  ;;  %v7274_v5 = vpop.f32.mrb[117].mxu1 }
 0x24d   : > { %v3524_v35 = vadd.f32 %v7163_v32, %v9938_v18  ;;  %v7166_v46 = vadd.f32 %v7165_v15, %v7164_v51  ;;  %v7275_v58 = vadd.f32 %v7274_v5, %v7273_v24  ;;  %v7276_v2 = vpop.f32.mrb[118].mxu1 }
 0x24e   : > { %v7277_v16 = vpop.f32.mrb[119].mxu1 }
 0x24f   : > { %v3527_v1 = vadd.f32 %v7166_v46, %v9940_v63  ;;  %v7278_v38 = vadd.f32 %v7277_v16, %v7276_v2  ;;  %v10035_v18 = vadd.f32 %v7275_v58, %v3524_v35 }
 0x251   : > { %v7167_v43 = vpop.f32.mrb[120].mxu0  ;;  %v10038_v32 = vadd.f32 %v7278_v38, %v3527_v1  ;;  %v8072_v38 = vld [vmem:[#allocation7 + $0x160] sm:$0xff]  }
 0x252   : > { %v7168_v20 = vpop.f32.mrb[121].mxu0  ;;  %7547 = vmatprep.subr.bf16.mxu1 %v8072_v38 }
 0x253   : > { %v7169_v41 = vadd.f32 %v7168_v20, %v7167_v43  ;;  %v7170_v29 = vpop.f32.mrb[122].mxu0  ;;  %v7279_v63 = vpop.f32.mrb[120].mxu1 }
 0x254   : > { %v7171_v45 = vpop.f32.mrb[123].mxu0  ;;  %v7280_v15 = vpop.f32.mrb[121].mxu1 }
 0x255   : > { %v3532_v4 = vadd.f32 %v7169_v41, %v9944_v22  ;;  %v7172_v33 = vadd.f32 %v7171_v45, %v7170_v29  ;;  %v7281_v46 = vadd.f32 %v7280_v15, %v7279_v63  ;;  %v7282_v37 = vpop.f32.mrb[122].mxu1  ;;  %v8073_v41 = vld [vmem:[#allocation7 + $0x1c0] sm:$0xff]  }
 0x256   : > { %v7283_v24 = vpop.f32.mrb[123].mxu1  ;;  %7651 = vmatprep.subr.bf16.mxu0 %v8073_v41 }
 0x257   : > { %v3535_v51 = vadd.f32 %v7172_v33, %v9946_v19  ;;  %v7284_v2 = vadd.f32 %v7283_v24, %v7282_v37  ;;  %v10041_v35 = vadd.f32 %v7281_v46, %v3532_v4  ;;  %v8074_v19 = vld [vmem:[#allocation7 + $0x120] sm:$0xff]  }
 0x258   : > { %7548 = vmatpush3.bf16.msra.mxu1 %v8074_v19 }
 0x259   : > { %v7173_v13 = vpop.f32.mrb[124].mxu0  ;;  %v10044_v1 = vadd.f32 %v7284_v2, %v3535_v51 }
 0x25a   : > { %v7174_v5 = vpop.f32.mrb[125].mxu0 }
 0x25b   : > { %v7175_v43 = vadd.f32 %v7174_v5, %v7173_v13  ;;  %v7176_v16 = vpop.f32.mrb[126].mxu0  ;;  %v7285_v29 = vpop.f32.mrb[124].mxu1 }
 0x25c   : > { %v7177_v58 = vpop.f32.mrb[127].mxu0  ;;  %v7286_v33 = vpop.f32.mrb[125].mxu1 }
 0x25d   : > { %v3540_v22 = vadd.f32 %v7175_v43, %v9950_v56  ;;  %v7178_v20 = vadd.f32 %v7177_v58, %v7176_v16  ;;  %v7287_v63 = vadd.f32 %v7286_v33, %v7285_v29  ;;  %v7288_v15 = vpop.f32.mrb[126].mxu1 }
 0x25e   : > { %v7289_v46 = vpop.f32.mrb[127].mxu1 }
 0x25f   : > { %v3543_v45 = vadd.f32 %v7178_v20, %v9952_v60  ;;  %v7290_v13 = vadd.f32 %v7289_v46, %v7288_v15  ;;  %v10049_v5 = vadd.f32 %v7287_v63, %v3540_v22 }
 0x261   : > { %v7805_v4 = vpop.f32.mrb[128].mxu0  ;;  %v10055_v20 = vadd.f32 %v7290_v13, %v3543_v45 }
 0x262   : > { %v3750_v37 = vadd.f32 %v7805_v4, %v9963_v57  ;;  %v3741_v56 = vpop.f32.mrb[129].mxu0 }
 0x263   : > { %v3742_v51 = vadd.f32 %v3741_v56, %v9956_v12  ;;  %v7806_v24 = vpop.f32.mrb[130].mxu0 }
 0x264   : > { %v3870_v2 = vmax.f32 %v3750_v37, 0.0  ;;  %v3753_v60 = vadd.f32 %v7806_v24, %v9966_v14  ;;  %v3744_v43 = vpop.f32.mrb[131].mxu0 }
 0x265   : > { %v10052_v16 = vmax.f32 %v3742_v51, 0.0  ;;  %v3745_v58 = vadd.f32 %v3744_v43, %v9959_v26 }
 0x266   : > { %v3871_v38 = vmax.f32 %v3753_v60, 0.0  ;;  %v3902_v41 = vrot.slane %v3870_v2, 7  ;;  %v4062_v19 = vrot.slane %v3870_v2, 1 }
 0x267   : > { %v3869_v57 = vmax.f32 %v3745_v58, 0.0  ;;  %v11341_v22 = vrot.slane %v10052_v16, 7  ;;  %v11345_v26 = vrot.slane %v10052_v16, 1 }
 0x268   : > { %v3903_v29 = vrot.slane %v3871_v38, 7  ;;  %v4063_v33 = vrot.slane %v3871_v38, 1  ;;  %v10057_v12 = vpack.c.bf16 %v3871_v38, %v3870_v2 }
 0x269   : > { %v3901_v63 = vrot.slane %v3869_v57, 7  ;;  %v4061_v15 = vrot.slane %v3869_v57, 1  ;;  %v7809_v14 = vpop.f32.mrb[132].mxu0  ;;  %v10061_v4 = vpack.c.bf16 %v3869_v57, %v10052_v16 }
 0x26a   : > { %v3766_v45 = vadd.f32 %v7809_v14, %v9975_v3  ;;  %v3757_v46 = vpop.f32.mrb[133].mxu0  ;;  %v3960_v37 = vsel %vm11733_vm7, %v3902_v41, %v3903_v29  ;;  %v4120_v56 = vsel %vm11734_vm14, %v4062_v19, %v4063_v33  ;;  %vm11738_vm7 = vmmov %vm11737_vm11 }
 0x26b   : > { %11732 = vst [vmem:[#allocation20_spill] sm:$0xff] %v10061_v4  ;;  %v3758_v13 = vadd.f32 %v3757_v46, %v9969_v55  ;;  %v7810_v51 = vpop.f32.mrb[134].mxu0  ;;  %5083 = vmatprep.mubr.bf16.mxu1 %v10061_v4  ;;  %v10075_v24 = vsel %vm11735_vm3, %v11341_v22, %v3901_v63  ;;  %v3961_v3 = vsel %vm11736_vm13, %v3901_v63, %v3902_v41  ;;  %v8076_v41 = vld [vmem:[#allocation7 + $0x168] sm:$0xff]   ;;  %vm11739_vm13 = vmmov %vm11735_vm3 }
 0x26c   : > { %v4121_v2 = vsel %vm11737_vm11, %v4061_v15, %v4062_v19  ;;  %v3874_v60 = vmax.f32 %v3766_v45, 0.0  ;;  %v3769_v43 = vadd.f32 %v7810_v51, %v9978_v49  ;;  %v3760_v58 = vpop.f32.mrb[135].mxu0  ;;  %v10082_v55 = vpack.c.bf16 %v3960_v37, %v3961_v3  ;;  %v8078_v22 = vld [vmem:[#allocation7 + $0x128] sm:$0xff]   ;;  %7549 = vmatprep.subr.bf16.mxu1 %v8076_v41  ;;  %vm11740_vm14 = vmmov %vm11738_vm7 }
 0x26d   : > { %v4122_v38 = vsel %vm11738_vm7, %v11345_v26, %v4061_v15  ;;  %v3872_v57 = vmax.f32 %v3758_v13, 0.0  ;;  %v3761_v14 = vadd.f32 %v3760_v58, %v9972_v59  ;;  %7550 = vmatpush3.bf16.msra.mxu1 %v8078_v22  ;;  %vm11741_vm11 = vmmov %vm11735_vm3 }
 0x26e   : > { %v10089_v46 = vpack.c.bf16 %v4121_v2, %v4122_v38  ;;  %v3875_v63 = vmax.f32 %v3769_v43, 0.0  ;;  %v3906_v19 = vrot.slane %v3874_v60, 7  ;;  %v4066_v37 = vrot.slane %v3874_v60, 1  ;;  %vm11742_vm3 = vmmov %vm11738_vm7 }
 0x26f   : > { %v3904_v45 = vrot.slane %v3872_v57, 7  ;;  %v4064_v4 = vrot.slane %v3872_v57, 1  ;;  %v3873_v49 = vmax.f32 %v3761_v14, 0.0  ;;  %vm11743_vm7 = vmmov %vm11741_vm11 }
 0x270   : > { %v3907_v51 = vrot.slane %v3875_v63, 7  ;;  %v4067_v3 = vrot.slane %v3875_v63, 1  ;;  %v10091_v36 = vpack.c.bf16 %v3875_v63, %v3874_v60 }
 0x271   : > { %v3905_v15 = vrot.slane %v3873_v49, 7  ;;  %v4065_v13 = vrot.slane %v3873_v49, 1  ;;  %v7813_v26 = vpop.f32.mrb[136].mxu0  ;;  %v10093_v59 = vpack.c.bf16 %v3873_v49, %v3872_v57  ;;  %v3959_v2 = vsel %vm11739_vm13, %v3903_v29, %v3904_v45  ;;  %vm11744_vm13 = vmmov %vm11743_vm7 }
 0x272   : > { %v3782_v43 = vadd.f32 %v7813_v26, %v9987_v10  ;;  %v3773_v58 = vpop.f32.mrb[137].mxu0  ;;  %v4119_v38 = vsel %vm11740_vm14, %v4063_v33, %v4064_v4  ;;  %v3956_v14 = vsel %vm11741_vm11, %v3906_v19, %v3907_v51  ;;  %v4116_v22 = vsel %vm11742_vm3, %v4066_v37, %v4067_v3  ;;  %vm11745_vm14 = vmmov %vm11742_vm3 }
 0x273   : > { %v3774_v60 = vadd.f32 %v3773_v58, %v9981_v62  ;;  %v7814_v41 = vpop.f32.mrb[138].mxu0  ;;  %v3958_v57 = vsel %vm11743_vm7, %v3904_v45, %v3905_v15  ;;  %v10107_v63 = vpack.c.bf16 %v4119_v38, %v4120_v56  ;;  %v3957_v10 = vsel %vm11744_vm13, %v3905_v15, %v3906_v19  ;;  %vm11746_vm11 = vmmov %vm11742_vm3 }
 0x274   : > { %v3878_v29 = vmax.f32 %v3782_v43, 0.0  ;;  %v3785_v33 = vadd.f32 %v7814_v41, %v9990_v30  ;;  %v3776_v26 = vpop.f32.mrb[139].mxu0  ;;  %v10112_v49 = vpack.c.bf16 %v3958_v57, %v3959_v2  ;;  %v10114_v47 = vpack.c.bf16 %v3956_v14, %v3957_v10  ;;  %vm11747_vm3 = vmmov %vm11743_vm7 }
 0x275   : > { %v3876_v11 = vmax.f32 %v3774_v60, 0.0  ;;  %v3777_v62 = vadd.f32 %v3776_v26, %v9984_v8  ;;  %v4117_v58 = vsel %vm11745_vm14, %v4065_v13, %v4066_v37  ;;  %v4118_v56 = vsel %vm11746_vm11, %v4064_v4, %v4065_v13  ;;  %vm11748_vm7 = vmmov %vm11746_vm11 }
 0x276   : > { %v3879_v45 = vmax.f32 %v3785_v33, 0.0  ;;  %v10121_v38 = vpack.c.bf16 %v4117_v58, %v4118_v56  ;;  %v3910_v19 = vrot.slane %v3878_v29, 7  ;;  %v4070_v2 = vrot.slane %v3878_v29, 1  ;;  %vm11749_vm13 = vmmov %vm11747_vm3 }
 0x277   : > { %v3908_v15 = vrot.slane %v3876_v11, 7  ;;  %v4068_v30 = vrot.slane %v3876_v11, 1  ;;  %v3877_v43 = vmax.f32 %v3777_v62, 0.0  ;;  %vm11750_vm14 = vmmov %vm11748_vm7 }
 0x278   : > { %v3911_v41 = vrot.slane %v3879_v45, 7  ;;  %v4071_v14 = vrot.slane %v3879_v45, 1  ;;  %v10123_v57 = vpack.c.bf16 %v3879_v45, %v3878_v29  ;;  %vm11751_vm11 = vmmov %vm11747_vm3 }
 0x279   : > { %v3909_v60 = vrot.slane %v3877_v43, 7  ;;  %v4069_v8 = vrot.slane %v3877_v43, 1  ;;  %v7817_v10 = vpop.f32.mrb[140].mxu0  ;;  %v10125_v26 = vpack.c.bf16 %v3877_v43, %v3876_v11  ;;  %v3955_v4 = vsel %vm11747_vm3, %v3907_v51, %v3908_v15 }
 0x27a   : > { %v3798_v37 = vadd.f32 %v7817_v10, %v9999_v44  ;;  %v3789_v13 = vpop.f32.mrb[141].mxu0  ;;  %v4115_v33 = vsel %vm11748_vm7, %v4067_v3, %v4068_v30  ;;  %v3952_v62 = vsel %vm11749_vm13, %v3910_v19, %v3911_v41  ;;  %v4112_v29 = vsel %vm11750_vm14, %v4070_v2, %v4071_v14  ;;  %vm11752_vm13 = vmmov %vm11748_vm7 }
 0x27b   : > { %v3790_v58 = vadd.f32 %v3789_v13, %v9993_v53  ;;  %v7818_v56 = vpop.f32.mrb[142].mxu0  ;;  %v3954_v11 = vsel %vm11751_vm11, %v3908_v15, %v3909_v60  ;;  %v10139_v45 = vpack.c.bf16 %v4115_v33, %v4116_v22  ;;  %v3953_v44 = vsel %vm11747_vm3, %v3909_v60, %v3910_v19  ;;  %v8080_v15 = vld [vmem:[#allocation7 + $0x170] sm:$0xff]   ;;  %vm11755_vm14 = vmmov %vm11747_vm3 }
 0x27c   : > { %v3882_v51 = vmax.f32 %v3798_v37, 0.0  ;;  %v3801_v3 = vadd.f32 %v7818_v56, %v10002_v54  ;;  %v3792_v43 = vpop.f32.mrb[143].mxu0  ;;  %v10144_v10 = vpack.c.bf16 %v3954_v11, %v3955_v4  ;;  %v10146_v40 = vpack.c.bf16 %v3952_v62, %v3953_v44  ;;  %v8082_v60 = vld [vmem:[#allocation7 + $0x130] sm:$0xff]   ;;  %7551 = vmatprep.subr.bf16.mxu1 %v8080_v15  ;;  %vm11756_vm11 = vmmov %vm11748_vm7 }
 0x27d   : > { %v3880_v34 = vmax.f32 %v3790_v58, 0.0  ;;  %v3793_v53 = vadd.f32 %v3792_v43, %v9996_v39  ;;  %v4113_v13 = vsel %vm11748_vm7, %v4069_v8, %v4070_v2  ;;  %v4114_v22 = vsel %vm11752_vm13, %v4068_v30, %v4069_v8  ;;  %7552 = vmatpush3.bf16.msra.mxu1 %v8082_v60  ;;  %vm11757_vm13 = vmmov %vm11747_vm3 }
 0x27e   : > { %v3883_v33 = vmax.f32 %v3801_v3, 0.0  ;;  %v10153_v19 = vpack.c.bf16 %v4113_v13, %v4114_v22  ;;  %v3914_v54 = vrot.slane %v3882_v51, 7  ;;  %v4074_v62 = vrot.slane %v3882_v51, 1 }
 0x27f   : > { %v3912_v37 = vrot.slane %v3880_v34, 7  ;;  %v4072_v4 = vrot.slane %v3880_v34, 1  ;;  %v3881_v56 = vmax.f32 %v3793_v53, 0.0 }
 0x280   : > { %11753 = vst [vmem:[#allocation25_spill] sm:$0xff] %v10153_v19  ;;  %v3915_v58 = vrot.slane %v3883_v33, 7  ;;  %v4075_v11 = vrot.slane %v3883_v33, 1  ;;  %v10155_v39 = vpack.c.bf16 %v3883_v33, %v3882_v51 }
 0x281   : > { %v3913_v2 = vrot.slane %v3881_v56, 7  ;;  %v4073_v44 = vrot.slane %v3881_v56, 1  ;;  %v7821_v43 = vpop.f32.mrb[144].mxu0  ;;  %v10157_v30 = vpack.c.bf16 %v3881_v56, %v3880_v34  ;;  %v3951_v8 = vsel %vm11755_vm14, %v3911_v41, %v3912_v37  ;;  %vm11758_vm14 = vmmov %vm11747_vm3 }
 0x282   : > { %11754 = vst [vmem:[#allocation18_spill] sm:$0xff] %v10155_v39  ;;  %v3814_v3 = vadd.f32 %v7821_v43, %v10011_v21  ;;  %v3805_v13 = vpop.f32.mrb[145].mxu0  ;;  %v4111_v53 = vsel %vm11756_vm11, %v4071_v14, %v4072_v4  ;;  %v3948_v22 = vsel %vm11747_vm3, %v3914_v54, %v3915_v58  ;;  %v4108_v51 = vsel %vm11748_vm7, %v4074_v62, %v4075_v11  ;;  %vm11759_vm11 = vmmov %vm11748_vm7 }
 0x283   : > { %v3806_v15 = vadd.f32 %v3805_v13, %v10005_v23  ;;  %v7822_v33 = vpop.f32.mrb[146].mxu0  ;;  %v3950_v34 = vsel %vm11757_vm13, %v3912_v37, %v3913_v2  ;;  %v10171_v60 = vpack.c.bf16 %v4111_v53, %v4112_v29  ;;  %v3949_v21 = vsel %vm11758_vm14, %v3913_v2, %v3914_v54  ;;  %vm11760_vm3 = vmmov %vm11748_vm7 }
 0x284   : > { %v3886_v41 = vmax.f32 %v3814_v3, 0.0  ;;  %v3817_v14 = vadd.f32 %v7822_v33, %v10014_v7  ;;  %v3808_v56 = vpop.f32.mrb[147].mxu0  ;;  %v10176_v43 = vpack.c.bf16 %v3950_v34, %v3951_v8  ;;  %v10178_v39 = vpack.c.bf16 %v3948_v22, %v3949_v21  ;;  %vm11763_vm7 = vmmov %vm11757_vm13 }
 0x285   : > { %v3884_v19 = vmax.f32 %v3806_v15, 0.0  ;;  %v3809_v23 = vadd.f32 %v3808_v56, %v10008_v48  ;;  %v4109_v13 = vsel %vm11759_vm11, %v4073_v44, %v4074_v62  ;;  %v4110_v29 = vsel %vm11760_vm3, %v4072_v4, %v4073_v44  ;;  %vm11764_vm13 = vmmov %vm11760_vm3 }
 0x286   : > { %v3887_v37 = vmax.f32 %v3817_v14, 0.0  ;;  %v10185_v53 = vpack.c.bf16 %v4109_v13, %v4110_v29  ;;  %v3918_v54 = vrot.slane %v3886_v41, 7  ;;  %v4078_v8 = vrot.slane %v3886_v41, 1  ;;  %vm11765_vm14 = vmmov %vm11763_vm7 }
 0x287   : > { %v3916_v2 = vrot.slane %v3884_v19, 7  ;;  %v4076_v7 = vrot.slane %v3884_v19, 1  ;;  %v3885_v3 = vmax.f32 %v3809_v23, 0.0  ;;  %vm11766_vm11 = vmmov %vm11760_vm3 }
 0x288   : > { %11761 = vst [vmem:[#allocation24_spill] sm:$0xff] %v10185_v53  ;;  %v3919_v33 = vrot.slane %v3887_v37, 7  ;;  %v4079_v22 = vrot.slane %v3887_v37, 1  ;;  %v10187_v34 = vpack.c.bf16 %v3887_v37, %v3886_v41  ;;  %vm11767_vm3 = vmmov %vm11763_vm7 }
 0x289   : > { %v3917_v15 = vrot.slane %v3885_v3, 7  ;;  %v4077_v48 = vrot.slane %v3885_v3, 1  ;;  %v7825_v21 = vpop.f32.mrb[148].mxu0  ;;  %v10189_v56 = vpack.c.bf16 %v3885_v3, %v3884_v19  ;;  %v3947_v4 = vsel %vm11763_vm7, %v3915_v58, %v3916_v2  ;;  %vm11768_vm7 = vmmov %vm11767_vm3 }
 0x28a   : > { %11762 = vst [vmem:[#allocation30_spill] sm:$0xff] %v10187_v34  ;;  %v3830_v62 = vadd.f32 %v7825_v21, %v10023_v50  ;;  %v3821_v44 = vpop.f32.mrb[149].mxu0  ;;  %v4107_v14 = vsel %vm11764_vm13, %v4075_v11, %v4076_v7  ;;  %v3944_v23 = vsel %vm11765_vm14, %v3918_v54, %v3919_v33  ;;  %v4104_v41 = vsel %vm11766_vm11, %v4078_v8, %v4079_v22  ;;  %vm11771_vm13 = vmmov %vm11766_vm11 }
 0x28b   : > { %v3822_v13 = vadd.f32 %v3821_v44, %v10017_v52  ;;  %v7826_v29 = vpop.f32.mrb[150].mxu0  ;;  %v3946_v19 = vsel %vm11767_vm3, %v3916_v2, %v3917_v15  ;;  %v10203_v37 = vpack.c.bf16 %v4107_v14, %v4108_v51  ;;  %v3945_v50 = vsel %vm11768_vm7, %v3917_v15, %v3918_v54  ;;  %vm11772_vm14 = vmmov %vm11766_vm11  ;;  %v8084_v2 = vld [vmem:[#allocation7 + $0x178] sm:$0xff]  }
 0x28c   : > { %v3890_v58 = vmax.f32 %v3830_v62, 0.0  ;;  %v3833_v11 = vadd.f32 %v7826_v29, %v10026_v27  ;;  %v3824_v3 = vpop.f32.mrb[151].mxu0  ;;  %v10208_v21 = vpack.c.bf16 %v3946_v19, %v3947_v4  ;;  %v10210_v34 = vpack.c.bf16 %v3944_v23, %v3945_v50  ;;  %v8086_v15 = vld [vmem:[#allocation7 + $0x138] sm:$0xff]   ;;  %7553 = vmatprep.subr.bf16.mxu1 %v8084_v2  ;;  %vm11776_vm11 = vmmov %vm11767_vm3 }
 0x28d   : > { %v3888_v53 = vmax.f32 %v3822_v13, 0.0  ;;  %v3825_v52 = vadd.f32 %v3824_v3, %v10020_v17  ;;  %v4105_v44 = vsel %vm11771_vm13, %v4077_v48, %v4078_v8  ;;  %v4106_v51 = vsel %vm11772_vm14, %v4076_v7, %v4077_v48  ;;  %7554 = vmatpush3.bf16.msra.mxu1 %v8086_v15  ;;  %vm11777_vm3 = vmmov %vm11771_vm13 }
 0x28e   : > { %11769 = vst [vmem:[#allocation22_spill] sm:$0xff] %v10208_v21  ;;  %11770 = vst [vmem:[#allocation29_spill] sm:$0xff] %v10210_v34  ;;  %v3891_v14 = vmax.f32 %v3833_v11, 0.0  ;;  %v10217_v54 = vpack.c.bf16 %v4105_v44, %v4106_v51  ;;  %v3922_v27 = vrot.slane %v3890_v58, 7  ;;  %v4082_v23 = vrot.slane %v3890_v58, 1 }
 0x28f   : > { %v3920_v62 = vrot.slane %v3888_v53, 7  ;;  %v4080_v4 = vrot.slane %v3888_v53, 1  ;;  %v3889_v29 = vmax.f32 %v3825_v52, 0.0  ;;  %vm11778_vm13 = vmmov %vm11777_vm3 }
 0x290   : > { %11773 = vst [vmem:[#allocation27_spill] sm:$0xff] %v10217_v54  ;;  %v3923_v13 = vrot.slane %v3891_v14, 7  ;;  %v4083_v19 = vrot.slane %v3891_v14, 1  ;;  %v10219_v17 = vpack.c.bf16 %v3891_v14, %v3890_v58  ;;  %vm11779_vm14 = vmmov %vm11768_vm7 }
 0x291   : > { %v3921_v8 = vrot.slane %v3889_v29, 7  ;;  %v4081_v50 = vrot.slane %v3889_v29, 1  ;;  %v7829_v3 = vpop.f32.mrb[152].mxu0  ;;  %v10221_v7 = vpack.c.bf16 %v3889_v29, %v3888_v53  ;;  %v3943_v48 = vsel %vm11776_vm11, %v3919_v33, %v3920_v62  ;;  %vm11780_vm11 = vmmov %vm11768_vm7 }
 0x292   : > { %11774 = vst [vmem:[#allocation32_spill] sm:$0xff] %v10219_v17  ;;  %v3846_v11 = vadd.f32 %v7829_v3, %v10035_v18  ;;  %v3837_v44 = vpop.f32.mrb[153].mxu0  ;;  %v4103_v52 = vsel %vm11777_vm3, %v4079_v22, %v4080_v4  ;;  %v3940_v51 = vsel %vm11768_vm7, %v3922_v27, %v3923_v13  ;;  %v4100_v58 = vsel %vm11778_vm13, %v4082_v23, %v4083_v19  ;;  %vm11781_vm7 = vmmov %vm11777_vm3 }
 0x293   : > { %11775 = vst [vmem:[#allocation38_spill] sm:$0xff] %v10221_v7  ;;  %v3838_v2 = vadd.f32 %v3837_v44, %v10029_v9  ;;  %v7830_v14 = vpop.f32.mrb[154].mxu0  ;;  %v3942_v53 = vsel %vm11779_vm14, %v3920_v62, %v3921_v8  ;;  %v10235_v15 = vpack.c.bf16 %v4103_v52, %v4104_v41  ;;  %v3941_v18 = vsel %vm11780_vm11, %v3921_v8, %v3922_v27  ;;  %vm11784_vm13 = vmmov %vm11780_vm11 }
 0x294   : > { %v3894_v33 = vmax.f32 %v3846_v11, 0.0  ;;  %v3849_v22 = vadd.f32 %v7830_v14, %v10038_v32  ;;  %v3840_v29 = vpop.f32.mrb[155].mxu0  ;;  %v10240_v3 = vpack.c.bf16 %v3942_v53, %v3943_v48  ;;  %v10242_v17 = vpack.c.bf16 %v3940_v51, %v3941_v18  ;;  %vm11785_vm14 = vmmov %vm11777_vm3 }
 0x295   : > { %v3892_v54 = vmax.f32 %v3838_v2, 0.0  ;;  %v3841_v9 = vadd.f32 %v3840_v29, %v10032_v61  ;;  %v4101_v44 = vsel %vm11777_vm3, %v4081_v50, %v4082_v23  ;;  %v4102_v41 = vsel %vm11781_vm7, %v4080_v4, %v4081_v50  ;;  %vm11786_vm7 = vmmov %vm11780_vm11 }
 0x296   : > { %v3895_v62 = vmax.f32 %v3849_v22, 0.0  ;;  %v10249_v52 = vpack.c.bf16 %v4101_v44, %v4102_v41  ;;  %v3926_v27 = vrot.slane %v3894_v33, 7  ;;  %v4086_v48 = vrot.slane %v3894_v33, 1 }
 0x297   : > { %v3924_v8 = vrot.slane %v3892_v54, 7  ;;  %v4084_v32 = vrot.slane %v3892_v54, 1  ;;  %v3893_v11 = vmax.f32 %v3841_v9, 0.0 }
 0x298   : > { %11782 = vst [vmem:[#allocation42_spill] sm:$0xff] %v10249_v52  ;;  %v3927_v14 = vrot.slane %v3895_v62, 7  ;;  %v4087_v51 = vrot.slane %v3895_v62, 1  ;;  %v10251_v53 = vpack.c.bf16 %v3895_v62, %v3894_v33 }
 0x299   : > { %v3925_v2 = vrot.slane %v3893_v11, 7  ;;  %v4085_v61 = vrot.slane %v3893_v11, 1  ;;  %v7833_v18 = vpop.f32.mrb[156].mxu0  ;;  %v10253_v29 = vpack.c.bf16 %v3893_v11, %v3892_v54  ;;  %v3939_v4 = vsel %vm11784_vm13, %v3923_v13, %v3924_v8  ;;  %vm11787_vm13 = vmmov %vm11786_vm7 }
 0x29a   : > { %11783 = vst [vmem:[#allocation14_spill] sm:$0xff] %v10251_v53  ;;  %v3862_v23 = vadd.f32 %v7833_v18, %v10049_v5  ;;  %v3853_v50 = vpop.f32.mrb[157].mxu0  ;;  %v4099_v22 = vsel %vm11785_vm14, %v4083_v19, %v4084_v32  ;;  %v3936_v9 = vsel %vm11780_vm11, %v3926_v27, %v3927_v14  ;;  %v4096_v33 = vsel %vm11777_vm3, %v4086_v48, %v4087_v51  ;;  %vm11790_vm14 = vmmov %vm11777_vm3 }
 0x29b   : > { %v3854_v44 = vadd.f32 %v3853_v50, %v10041_v35  ;;  %v7834_v41 = vpop.f32.mrb[158].mxu0  ;;  %v3938_v54 = vsel %vm11786_vm7, %v3924_v8, %v3925_v2  ;;  %v10267_v62 = vpack.c.bf16 %v4099_v22, %v4100_v58  ;;  %v3937_v5 = vsel %vm11787_vm13, %v3925_v2, %v3926_v27  ;;  %vm11791_vm11 = vmmov %vm11777_vm3  ;;  %v10281_v8 = vld [vmem:[#allocation7 + $0x200] sm:$0xff]  }
 0x29c   : > { %v3898_v13 = vmax.f32 %v3862_v23, 0.0  ;;  %v3865_v19 = vadd.f32 %v7834_v41, %v10055_v20  ;;  %v3856_v11 = vpop.f32.mrb[159].mxu0  ;;  %v10272_v18 = vpack.c.bf16 %v3938_v54, %v3939_v4  ;;  %v10274_v53 = vpack.c.bf16 %v3936_v9, %v3937_v5  ;;  %7835 = vmatprep.subr.bf16.mxu1 %v10281_v8  ;;  %vm11794_vm3 = vmmov %vm11786_vm7 }
 0x29d   : > { %v3896_v52 = vmax.f32 %v3854_v44, 0.0  ;;  %v3857_v35 = vadd.f32 %v3856_v11, %v10044_v1  ;;  %v4097_v50 = vsel %vm11790_vm14, %v4085_v61, %v4086_v48  ;;  %v4098_v58 = vsel %vm11791_vm11, %v4084_v32, %v4085_v61  ;;  %vm11796_vm7 = vmmov %vm11794_vm3 }
 0x29e   : > { %11788 = vst [vmem:[#allocation54_spill] sm:$0xff] %v10272_v18  ;;  %11789 = vst [vmem:[#allocation55_spill] sm:$0xff] %v10274_v53  ;;  %v3899_v27 = vmax.f32 %v3865_v19, 0.0  ;;  %v10283_v2 = vpack.c.bf16 %v4097_v50, %v4098_v58  ;;  %v3930_v20 = vrot.slane %v3898_v13, 7  ;;  %v4090_v9 = vrot.slane %v3898_v13, 1  ;;  %v8075_v50 = vld [vmem:[#allocation7 + $0x180] sm:$0xff]  }
 0x29f   : > { %v3928_v23 = vrot.slane %v3896_v52, 7  ;;  %v4088_v4 = vrot.slane %v3896_v52, 1  ;;  %v3897_v22 = vmax.f32 %v3857_v35, 0.0  ;;  %v11795_v61 = vrot.slane %v10052_v16, 7  ;;  %vm11797_vm13 = vmmov %vm11791_vm11 }
 0x2a0   : > { %v3931_v44 = vrot.slane %v3899_v27, 7  ;;  %v4091_v1 = vrot.slane %v3899_v27, 1  ;;  %v10286_v41 = vpack.c.bf16 %v3899_v27, %v3898_v13  ;;  %vm11798_vm14 = vmmov %vm11794_vm3 }
 0x2a1   : > { %v3929_v48 = vrot.slane %v3897_v22, 7  ;;  %v4089_v54 = vrot.slane %v3897_v22, 1  ;;  %v10288_v5 = vpack.c.bf16 %v3897_v22, %v3896_v52  ;;  %v3935_v32 = vsel %vm11794_vm3, %v3927_v14, %v3928_v23  ;;  %vm11799_vm5 = vmmov %vm11794_vm3  ;;  %v8077_v22 = vld [vmem:[#allocation7 + $0x1c8] sm:$0xff]  }
 0x2a2   : > { %11792 = vst [vmem:[#allocation56_spill] sm:$0xff] %v10286_v41  ;;  %v3963_v19 = vsel %vm11796_vm7, %v3931_v44, %v11795_v61  ;;  %v4095_v11 = vsel %vm11797_vm13, %v4087_v51, %v4088_v4  ;;  %v3932_v35 = vsel %vm11798_vm14, %v3930_v20, %v3931_v44  ;;  %v4092_v13 = vsel %vm11791_vm11, %v4090_v9, %v4091_v1  ;;  %vm11800_vm7 = vmmov %vm11791_vm11  ;;  %v11836_v41 = vld [vmem:[#allocation39_spill] sm:$0xff] }
 0x2a3   : > { %11793 = vst [vmem:[#allocation57_spill] sm:$0xff] %v10288_v5  ;;  %v6560_v52 = vpack.c.bf16 %v10075_v24, %v3963_v19  ;;  %v3934_v14 = vsel %vm11799_vm5, %v3928_v23, %v3929_v48  ;;  %v10305_v58 = vpack.c.bf16 %v4095_v11, %v4096_v33  ;;  %v3933_v27 = vsel %vm11794_vm3, %v3929_v48, %v3930_v20  ;;  %vm11801_vm13 = vmmov %vm11800_vm7  ;;  %v11803_v23 = vld [vmem:[#allocation15_spill] sm:$0xff]  ;;  %v8087_v19 = vld [vmem:[#allocation7 + $0x198] sm:$0xff]  }
 0x2a4   : > { %v10309_v61 = vpack.c.bf16 %v3934_v14, %v3935_v32  ;;  %v10311_v51 = vpack.c.bf16 %v3932_v35, %v3933_v27  ;;  %v4093_v44 = vsel %vm11800_vm7, %v4089_v54, %v4090_v9  ;;  %v4094_v24 = vsel %vm11801_vm13, %v4088_v4, %v4089_v54  ;;  %vm11806_vm11 = vmmov %vm11800_vm7  ;;  %v8079_v4 = vld [vmem:[#allocation7 + $0x188] sm:$0xff]   ;;  %v8081_v54 = vld [vmem:[#allocation7 + $0x1d0] sm:$0xff]  }
 0x2a5   : > { %vm11802_vm14 = vnez %v11414_v6  ;;  %vm11804_vm5 = vnez %v11803_v23  ;;  %v10321_v33 = vpack.c.bf16 %v4093_v44, %v4094_v24  ;;  %v11805_v20 = vrot.slane %v10052_v16, 1  ;;  %v8083_v32 = vld [vmem:[#allocation7 + $0x190] sm:$0xff]   ;;  %v8085_v16 = vld [vmem:[#allocation7 + $0x1d8] sm:$0xff]   ;;  %v8088_v11 = vld [vmem:[#allocation7 + $0x1e0] sm:$0xff]  }
 0x2a6   : > { %6561 = vmatmul.mubr.msk.bf16.gmra.mrb[132].mxu1 %vm11802_vm14, %v6560_v52  ;;  %6606 = vmatprep.mubr.msk.bf16.mxu0 %vm11804_vm5, %v6560_v52  ;;  %v8089_v35 = vld [vmem:[#allocation7 + $0x1a0] sm:$0xff]   ;;  %v8093_v14 = vld [vmem:[#allocation7 + $0x1f0] sm:$0xff]   ;;  %v8096_v24 = vld [vmem:[#allocation7 + $0x1b8] sm:$0xff]  }
 0x2a7   : > { %v4123_v48 = vsel %vm11806_vm11, %v4091_v1, %v11805_v20  ;;  %5091 = vmatprep.mubr.bf16.mxu1 %v10057_v12  ;;  %5237 = vmatmul.mubr.bf16.vlgmr.msra.gmra.mrb[160].mxu0 %v11729_v0  ;;  %v11808_v1 = vld [vmem:[#allocation16_spill] sm:$0xff]  ;;  %v11810_v52 = vld [vmem:[#allocation17_spill] sm:$0xff]  ;;  %v8094_v27 = vld [vmem:[#allocation7 + $0x1b0] sm:$0xff]  }
 0x2a8   : > { %v10329_v9 = vpack.c.bf16 %v4123_v48, %v4092_v13  ;;  %6609 = vmatprep.mubr.msk.bf16.mxu0 %vm11802_vm14, %v10082_v55  ;;  %7652 = vmatpush3.bf16.msra.mxu0 %v8075_v50  ;;  %vm11809_vm3 = vnez %v11808_v1  ;;  %v8090_v13 = vld [vmem:[#allocation7 + $0x1e8] sm:$0xff]   ;;  %vm11811_vm7 = vnez %v11810_v52  ;;  %v11812_v44 = vld [vmem:[#allocation19_spill] sm:$0xff] }
 0x2a9   : > { %7653 = vmatprep.subr.bf16.mxu0 %v8077_v22  ;;  %v8091_v50 = vld [vmem:[#allocation7 + $0x1a8] sm:$0xff]   ;;  %v8095_v22 = vld [vmem:[#allocation7 + $0x1f8] sm:$0xff]   ;;  %vm11813_vm13 = vnez %v11812_v44  ;;  %v11814_v20 = vld [vmem:[#allocation23_spill] sm:$0xff] }
 0x2aa   : > { %11807 = vst [vmem:[#allocation15_spill] sm:$0xff] %v10329_v9  ;;  %vm11815_vm11 = vnez %v11814_v20  ;;  %v11835_v0 = vld [vmem:[#allocation27_spill] sm:$0xff]  ;;  %v11871_v6 = vld [vmem:[#allocation22_spill] sm:$0xff] }
 0x2ac   : > { %7654 = vmatpush3.bf16.msra.mxu0 %v8079_v4  ;;  %v11817_v4 = vld [vmem:[#allocation28_spill] sm:$0xff] }
 0x2ad   : > { %7655 = vmatprep.subr.bf16.mxu0 %v8081_v54  ;;  %v11819_v54 = vld [vmem:[#allocation25_spill] sm:$0xff] }
 0x2ae   : > { %6564 = vmatmul.mubr.msk.bf16.gmra.mrb[136].mxu1 %vm11809_vm3, %v10082_v55 }
 0x2af   : > { %5099 = vmatprep.mubr.bf16.mxu1 %v10093_v59  ;;  %6612 = vmatmul.mubr.msk.bf16.gmra.mrb[164].mxu0 %vm8659_vm9, %v10089_v46 }
 0x2b0   : > { %6615 = vmatprep.mubr.msk.bf16.mxu0 %vm11809_vm3, %v10112_v49  ;;  %7656 = vmatpush3.bf16.msra.mxu0 %v8083_v32 }
 0x2b1   : > { %7657 = vmatprep.subr.bf16.mxu0 %v8085_v16  ;;  %v11821_v16 = vld [vmem:[#allocation33_spill] sm:$0xff] }
 0x2b4   : > { %7658 = vmatpush3.bf16.msra.mxu0 %v8087_v19  ;;  %v11823_v19 = vld [vmem:[#allocation18_spill] sm:$0xff] }
 0x2b5   : > { %7659 = vmatprep.subr.bf16.mxu0 %v8088_v11 }
 0x2b6   : > { %6567 = vmatmul.mubr.msk.bf16.gmra.mrb[140].mxu1 %vm11811_vm7, %v10112_v49 }
 0x2b7   : > { %5107 = vmatprep.mubr.bf16.mxu1 %v10091_v36  ;;  %6618 = vmatmul.mubr.msk.bf16.gmra.mrb[168].mxu0 %vm8694_vm12, %v10107_v63 }
 0x2b8   : > { %6621 = vmatprep.mubr.msk.bf16.mxu0 %vm11811_vm7, %v10114_v47  ;;  %7660 = vmatpush3.bf16.msra.mxu0 %v8089_v35  ;;  %vm11822_vm7 = vnez %v11821_v16  ;;  %v11825_v35 = vld [vmem:[#allocation35_spill] sm:$0xff] }
 0x2b9   : > { %7661 = vmatprep.subr.bf16.mxu0 %v8090_v13  ;;  %v11827_v13 = vld [vmem:[#allocation24_spill] sm:$0xff] }
 0x2ba   : > { %v7331_v28 = vpop.f32.mrb[128].mxu1 }
 0x2bb   : > { %v7332_v9 = vpop.f32.mrb[129].mxu1 }
 0x2bc   : > { %7662 = vmatpush3.bf16.msra.mxu0 %v8091_v50 }
 0x2bd   : > { %7663 = vmatprep.subr.bf16.mxu0 %v8093_v14  ;;  %v11829_v14 = vld [vmem:[#allocation37_spill] sm:$0xff] }
 0x2be   : > { %6570 = vmatmul.mubr.msk.bf16.gmra.mrb[144].mxu1 %vm11813_vm13, %v10114_v47 }
 0x2bf   : > { %5115 = vmatprep.mubr.bf16.mxu1 %v10125_v26  ;;  %6624 = vmatmul.mubr.msk.bf16.gmra.mrb[172].mxu0 %vm8768_vm2, %v10121_v38 }
 0x2c0   : > { %6627 = vmatprep.mubr.msk.bf16.mxu0 %vm11813_vm13, %v10144_v10  ;;  %7664 = vmatpush3.bf16.msra.mxu0 %v8094_v27  ;;  %vm11818_vm13 = vnez %v11817_v4  ;;  %v11831_v27 = vld [vmem:[#allocation30_spill] sm:$0xff] }
 0x2c1   : > { %7665 = vmatprep.subr.bf16.mxu0 %v8095_v22 }
 0x2c4   : > { %7666 = vmatpush3.bf16.msra.mxu0 %v8096_v24  ;;  %v11833_v24 = vld [vmem:[#allocation40_spill] sm:$0xff] }
 0x2c6   : > { %6573 = vmatmul.mubr.msk.bf16.gmra.mrb[148].mxu1 %vm11815_vm11, %v10144_v10 }
 0x2c7   : > { %5123 = vmatprep.mubr.bf16.mxu1 %v10123_v57  ;;  %6630 = vmatmul.mubr.msk.bf16.gmra.mrb[176].mxu0 %vm8860_vm1, %v10139_v45 }
 0x2c8   : > { %6633 = vmatprep.mubr.msk.bf16.mxu0 %vm11815_vm11, %v10146_v40  ;;  %vm11826_vm11 = vnez %v11825_v35  ;;  %v10424_v35 = vadd.f32 %v7332_v9, %v7331_v28  ;;  %v11843_v28 = vld [vmem:[#allocation45_spill] sm:$0xff]  ;;  %v11845_v9 = vld [vmem:[#allocation42_spill] sm:$0xff] }
 0x2ca   : > { %11837 = vst [vmem:[#allocation16_spill] sm:$0xff] %v10424_v35  ;;  %v11853_v35 = vld [vmem:[#allocation49_spill] sm:$0xff] }
 0x2ce   : > { %6576 = vmatmul.mubr.msk.bf16.gmra.mrb[152].mxu1 %vm11818_vm13, %v10146_v40 }
 0x2cf   : > { %5131 = vmatprep.mubr.bf16.mxu1 %v10157_v30  ;;  %6636 = vmatmul.mubr.msk.bf16.gmra.mrb[180].mxu0 %vm11686_vm15, %v11819_v54 }
 0x2d0   : > { %6639 = vmatprep.mubr.msk.bf16.mxu0 %vm11818_vm13, %v10176_v43  ;;  %vm11830_vm13 = vnez %v11829_v14  ;;  %v7334_v14 = vpop.f32.mrb[130].mxu1 }
 0x2d6   : > { %6579 = vmatmul.mubr.msk.bf16.gmra.mrb[156].mxu1 %vm11822_vm7, %v10176_v43 }
 0x2d7   : > { %5139 = vmatprep.mubr.bf16.mxu1 %v11823_v19  ;;  %6642 = vmatmul.mubr.msk.bf16.gmra.mrb[184].mxu0 %vm11692_vm8, %v10171_v60 }
 0x2d8   : > { %6645 = vmatprep.mubr.msk.bf16.mxu0 %vm11822_vm7, %v10178_v39  ;;  %vm11834_vm7 = vnez %v11833_v24 }
 0x2de   : > { %6582 = vmatmul.mubr.msk.bf16.gmra.mrb[160].mxu1 %vm11826_vm11, %v10178_v39 }
 0x2df   : > { %5147 = vmatprep.mubr.bf16.mxu1 %v10189_v56  ;;  %6648 = vmatmul.mubr.msk.bf16.gmra.mrb[188].mxu0 %vm11696_vm4, %v11827_v13 }
 0x2e0   : > { %6651 = vmatprep.mubr.msk.bf16.mxu0 %vm11826_vm11, %v10208_v21 }
 0x2e6   : > { %6585 = vmatmul.mubr.msk.bf16.gmra.mrb[164].mxu1 %vm11830_vm13, %v10208_v21  ;;  %v11842_v21 = vld [vmem:[#allocation41_spill] sm:$0xff] }
 0x2e7   : > { %5155 = vmatprep.mubr.bf16.mxu1 %v11831_v27  ;;  %6654 = vmatmul.mubr.msk.bf16.gmra.mrb[192].mxu0 %vm11700_vm10, %v10203_v37  ;;  %v7335_v27 = vpop.f32.mrb[131].mxu1 }
 0x2e8   : > { %6657 = vmatprep.mubr.msk.bf16.mxu0 %vm11830_vm13, %v10210_v34  ;;  %v10426_v16 = vadd.f32 %v7335_v27, %v7334_v14  ;;  %v11846_v14 = vld [vmem:[#allocation44_spill] sm:$0xff]  ;;  %v11848_v27 = vld [vmem:[#allocation47_spill] sm:$0xff] }
 0x2e9   : > { %vm11847_vm11 = vnez %v11846_v14 }
 0x2ea   : > { %11838 = vst [vmem:[#allocation17_spill] sm:$0xff] %v10426_v16  ;;  %v11851_v16 = vld [vmem:[#allocation46_spill] sm:$0xff] }
 0x2ee   : > { %6588 = vmatmul.mubr.msk.bf16.gmra.mrb[168].mxu1 %vm11834_vm7, %v10210_v34  ;;  %v11839_v34 = vld [vmem:[#allocation43_spill] sm:$0xff] }
 0x2ef   : > { %5163 = vmatprep.mubr.bf16.mxu1 %v10221_v7  ;;  %6660 = vmatmul.mubr.msk.bf16.gmra.mrb[196].mxu0 %vm11730_vm0, %v11835_v0  ;;  %vm11840_vm13 = vnez %v11839_v34  ;;  %v11841_v7 = vld [vmem:[#allocation32_spill] sm:$0xff]  ;;  %v11850_v34 = vld [vmem:[#allocation14_spill] sm:$0xff] }
 0x2f0   : > { %6663 = vmatprep.mubr.msk.bf16.mxu0 %vm11834_vm7, %v10240_v3  ;;  %vm11844_vm7 = vnez %v11843_v28  ;;  %v11855_v28 = vld [vmem:[#allocation48_spill] sm:$0xff] }
 0x2f6   : > { %6591 = vmatmul.mubr.msk.bf16.gmra.mrb[172].mxu1 %vm11840_vm13, %v10240_v3 }
 0x2f7   : > { %5171 = vmatprep.mubr.bf16.mxu1 %v11841_v7  ;;  %6666 = vmatmul.mubr.msk.bf16.gmra.mrb[200].mxu0 %vm11710_vm6, %v10235_v15  ;;  %vm11849_vm6 = vnez %v11848_v27  ;;  %v11859_v27 = vld [vmem:[#allocation50_spill] sm:$0xff] }
 0x2f8   : > { %6669 = vmatprep.mubr.msk.bf16.mxu0 %vm11840_vm13, %v10242_v17  ;;  %vm11852_vm13 = vnez %v11851_v16 }
 0x2fe   : > { %6594 = vmatmul.mubr.msk.bf16.gmra.mrb[176].mxu1 %vm11844_vm7, %v10242_v17 }
 0x2ff   : > { %5179 = vmatprep.mubr.bf16.mxu1 %v10253_v29  ;;  %6672 = vmatmul.mubr.msk.bf16.gmra.mrb[204].mxu0 %vm11847_vm11, %v11845_v9  ;;  %vm11854_vm11 = vnez %v11853_v35  ;;  %v11864_v35 = vld [vmem:[#allocation53_spill] sm:$0xff] }
 0x300   : > { %6675 = vmatprep.mubr.msk.bf16.mxu0 %vm11844_vm7, %v10272_v18  ;;  %vm11856_vm7 = vnez %v11855_v28 }
 0x306   : > { %6597 = vmatmul.mubr.msk.bf16.gmra.mrb[180].mxu1 %vm11849_vm6, %v10272_v18  ;;  %v11863_v18 = vld [vmem:[#allocation20_spill] sm:$0xff] }
 0x307   : > { %5187 = vmatprep.mubr.bf16.mxu1 %v11850_v34  ;;  %6678 = vmatmul.mubr.msk.bf16.gmra.mrb[208].mxu0 %vm11852_vm13, %v10267_v62  ;;  %v11857_v34 = vld [vmem:[#allocation51_spill] sm:$0xff] }
 0x308   : > { %6681 = vmatprep.mubr.msk.bf16.mxu0 %vm11849_vm6, %v10274_v53  ;;  %vm11858_vm13 = vnez %v11857_v34  ;;  %vm11860_vm6 = vnez %v11859_v27  ;;  %v8099_v34 = vld [vmem:[#allocation7 + $0x218] sm:$0xff]  }
 0x30e   : > { %6600 = vmatmul.mubr.msk.bf16.gmra.mrb[184].mxu1 %vm11854_vm11, %v10274_v53  ;;  %v11861_v53 = vld [vmem:[#allocation52_spill] sm:$0xff] }
 0x30f   : > { %5195 = vmatprep.mubr.bf16.mxu1 %v10288_v5  ;;  %6684 = vmatmul.mubr.msk.bf16.gmra.mrb[212].mxu0 %vm11856_vm7, %v10283_v2  ;;  %vm11862_vm0 = vnez %v11861_v53  ;;  %v8097_v5 = vld [vmem:[#allocation7 + $0x208] sm:$0xff]  }
 0x310   : > { %6687 = vmatprep.mubr.msk.bf16.mxu0 %vm11854_vm11, %v10309_v61  ;;  %vm11865_vm11 = vnez %v11864_v35 }
 0x316   : > { %6603 = vmatmul.mubr.msk.bf16.gmra.mrb[188].mxu1 %vm11858_vm13, %v10309_v61 }
 0x317   : > { %6690 = vmatmul.mubr.msk.bf16.gmra.mrb[216].mxu0 %vm11860_vm6, %v10305_v58  ;;  %6699 = vmatprep.mubr.msk.bf16.mxu1 %vm11862_vm0, %v10089_v46  ;;  %v8098_v46 = vld [vmem:[#allocation7 + $0x210] sm:$0xff]  }
 0x318   : > { %6693 = vmatprep.mubr.msk.bf16.mxu0 %vm11858_vm13, %v10311_v51  ;;  %vm11869_vm13 = vnez %v11817_v4 }
 0x31e   : > { %5398 = vmatmul.mubr.bf16.vlgmr.msra.gmra.mrb[192].mxu1 %v11863_v18  ;;  %v8100_v18 = vld [vmem:[#allocation7 + $0x220] sm:$0xff]  }
 0x31f   : > { %6696 = vmatmul.mubr.msk.bf16.gmra.mrb[220].mxu0 %vm11865_vm11, %v10321_v33  ;;  %6702 = vmatprep.mubr.msk.bf16.mxu1 %vm8659_vm9, %v10107_v63 }
 0x320   : > { %7836 = vmatpush3.bf16.msra.mxu1 %v10281_v8  ;;  %5558 = vmatprep.mubr.bf16.mxu0 %v10057_v12  ;;  %v8101_v8 = vld [vmem:[#allocation7 + $0x228] sm:$0xff]  }
 0x321   : > { %7837 = vmatprep.subr.bf16.mxu1 %v8097_v5 }
 0x324   : > { %7838 = vmatpush3.bf16.msra.mxu1 %v8097_v5 }
 0x325   : > { %7839 = vmatprep.subr.bf16.mxu1 %v8098_v46 }
 0x326   : > { %5406 = vmatmul.mubr.bf16.gmra.mrb[196].mxu1 %v10057_v12  ;;  %v8102_v12 = vld [vmem:[#allocation7 + $0x230] sm:$0xff]  }
 0x327   : > { %6705 = vmatprep.mubr.msk.bf16.mxu1 %vm8694_vm12, %v10121_v38  ;;  %6747 = vmatmul.mubr.msk.bf16.vlgmr.msra.gmra.mrb[224].mxu0 %vm11804_vm5, %v10082_v55  ;;  %v8103_v55 = vld [vmem:[#allocation7 + $0x238] sm:$0xff]   ;;  %vm11867_vm5 = vnez %v11812_v44 }
 0x328   : > { %5566 = vmatprep.mubr.bf16.mxu0 %v10093_v59  ;;  %7840 = vmatpush3.bf16.msra.mxu1 %v8098_v46  ;;  %v11887_v46 = vld [vmem:[#allocation54_spill] sm:$0xff] }
 0x329   : > { %7841 = vmatprep.subr.bf16.mxu1 %v8099_v34 }
 0x32c   : > { %7842 = vmatpush3.bf16.msra.mxu1 %v8099_v34  ;;  %v11888_v34 = vld [vmem:[#allocation43_spill] sm:$0xff] }
 0x32d   : > { %7843 = vmatprep.subr.bf16.mxu1 %v8100_v18 }
 0x32e   : > { %5414 = vmatmul.mubr.bf16.gmra.mrb[200].mxu1 %v10093_v59  ;;  %v11877_v59 = vld [vmem:[#allocation35_spill] sm:$0xff] }
 0x32f   : > { %6708 = vmatprep.mubr.msk.bf16.mxu1 %vm8768_vm2, %v10139_v45  ;;  %6750 = vmatmul.mubr.msk.bf16.gmra.mrb[228].mxu0 %vm11802_vm14, %v10112_v49  ;;  %vm11866_vm14 = vnez %v11810_v52  ;;  %v11879_v49 = vld [vmem:[#allocation38_spill] sm:$0xff] }
 0x330   : > { %5574 = vmatprep.mubr.bf16.mxu0 %v10091_v36  ;;  %7844 = vmatpush3.bf16.msra.mxu1 %v8100_v18 }
 0x331   : > { %7845 = vmatprep.subr.bf16.mxu1 %v8101_v8 }
 0x334   : > { %7846 = vmatpush3.bf16.msra.mxu1 %v8101_v8  ;;  %v11890_v8 = vld [vmem:[#allocation14_spill] sm:$0xff] }
 0x335   : > { %7847 = vmatprep.subr.bf16.mxu1 %v8102_v12 }
 0x336   : > { %5422 = vmatmul.mubr.bf16.gmra.mrb[204].mxu1 %v10091_v36  ;;  %v11874_v36 = vld [vmem:[#allocation30_spill] sm:$0xff] }
 0x337   : > { %6711 = vmatprep.mubr.msk.bf16.mxu1 %vm8860_vm1, %v11819_v54  ;;  %6753 = vmatmul.mubr.msk.bf16.gmra.mrb[232].mxu0 %vm11809_vm3, %v10114_v47  ;;  %vm11868_vm3 = vnez %v11814_v20  ;;  %v11872_v47 = vld [vmem:[#allocation33_spill] sm:$0xff] }
 0x338   : > { %5582 = vmatprep.mubr.bf16.mxu0 %v10125_v26  ;;  %7848 = vmatpush3.bf16.msra.mxu1 %v8102_v12  ;;  %v11886_v20 = vld [vmem:[#allocation17_spill] sm:$0xff] }
 0x339   : > { %7849 = vmatprep.subr.bf16.mxu1 %v8103_v55 }
 0x33c   : > { %7850 = vmatpush3.bf16.msra.mxu1 %v8103_v55 }
 0x33e   : > { %5430 = vmatmul.mubr.bf16.gmra.mrb[208].mxu1 %v10125_v26  ;;  %v10580_v26 = vld [vmem:[%s11191_s4] ss:$0 sm:$0xff] }
 0x33f   : > { %6714 = vmatprep.mubr.msk.bf16.mxu1 %vm11686_vm15, %v10171_v60  ;;  %6756 = vmatmul.mubr.msk.bf16.gmra.mrb[236].mxu0 %vm11866_vm14, %v10144_v10  ;;  %vm11870_vm14 = vnez %v11836_v41  ;;  %v5081_v4 = vadd.f32 %v11886_v20, %v10580_v26 }
 0x340   : > { %5590 = vmatprep.mubr.bf16.mxu0 %v10123_v57 }
 0x346   : > { %5438 = vmatmul.mubr.bf16.gmra.mrb[212].mxu1 %v10123_v57  ;;  %v11881_v57 = vld [vmem:[#allocation37_spill] sm:$0xff] }
 0x347   : > { %6717 = vmatprep.mubr.msk.bf16.mxu1 %vm11692_vm8, %v11827_v13  ;;  %6759 = vmatmul.mubr.msk.bf16.gmra.mrb[240].mxu0 %vm11867_vm5, %v10146_v40  ;;  %vm11873_vm5 = vnez %v11872_v47  ;;  %v11876_v40 = vld [vmem:[#allocation29_spill] sm:$0xff] }
 0x348   : > { %5598 = vmatprep.mubr.bf16.mxu0 %v10157_v30 }
 0x34e   : > { %5446 = vmatmul.mubr.bf16.gmra.mrb[216].mxu1 %v10157_v30 }
 0x34f   : > { %6720 = vmatprep.mubr.msk.bf16.mxu1 %vm11696_vm4, %v10203_v37  ;;  %6762 = vmatmul.mubr.msk.bf16.gmra.mrb[244].mxu0 %vm11868_vm3, %v10176_v43  ;;  %vm11875_vm3 = vnez %v11842_v21 }
 0x350   : > { %5606 = vmatprep.mubr.bf16.mxu0 %v11823_v19 }
 0x356   : > { %5454 = vmatmul.mubr.bf16.gmra.mrb[220].mxu1 %v11823_v19 }
 0x357   : > { %6723 = vmatprep.mubr.msk.bf16.mxu1 %vm11700_vm10, %v11835_v0  ;;  %6765 = vmatmul.mubr.msk.bf16.gmra.mrb[248].mxu0 %vm11869_vm13, %v10178_v39  ;;  %vm11878_vm13 = vnez %v11877_v59 }
 0x358   : > { %5614 = vmatprep.mubr.bf16.mxu0 %v10189_v56 }
 0x35e   : > { %5462 = vmatmul.mubr.bf16.gmra.mrb[224].mxu1 %v10189_v56 }
 0x35f   : > { %6726 = vmatprep.mubr.msk.bf16.mxu1 %vm11870_vm14, %v10235_v15  ;;  %6768 = vmatmul.mubr.msk.bf16.gmra.mrb[252].mxu0 %vm11873_vm5, %v11871_v6  ;;  %vm11880_vm14 = vnez %v11846_v14  ;;  %vm11882_vm5 = vnez %v11881_v57 }
 0x360   : > { %5622 = vmatprep.mubr.bf16.mxu0 %v11874_v36 }
 0x366   : > { %5470 = vmatmul.mubr.bf16.gmra.mrb[228].mxu1 %v11874_v36 }
 0x367   : > { %6729 = vmatprep.mubr.msk.bf16.mxu1 %vm11875_vm3, %v11845_v9  ;;  %6771 = vmatmul.mubr.msk.bf16.gmra.mrb[0].mxu0 %vm11878_vm13, %v11876_v40  ;;  %vm11883_vm3 = vnez %v11851_v16  ;;  %vm11884_vm13 = vnez %v11833_v24 }
 0x368   : > { %5630 = vmatprep.mubr.bf16.mxu0 %v11879_v49 }
 0x36e   : > { %5478 = vmatmul.mubr.bf16.gmra.mrb[232].mxu1 %v11879_v49 }
 0x36f   : > { %6732 = vmatprep.mubr.msk.bf16.mxu1 %vm11880_vm14, %v10267_v62  ;;  %6774 = vmatmul.mubr.msk.bf16.gmra.mrb[4].mxu0 %vm11882_vm5, %v10240_v3  ;;  %v11885_v3 = vld [vmem:[#allocation16_spill] sm:$0xff]  ;;  %vm11889_vm5 = vnez %v11888_v34 }
 0x370   : > { %5638 = vmatprep.mubr.bf16.mxu0 %v11841_v7  ;;  %v5078_v5 = vadd.f32 %v11885_v3, %v10580_v26  ;;  %v11891_v3 = vld [vmem:[#allocation55_spill] sm:$0xff] }
 0x376   : > { %5486 = vmatmul.mubr.bf16.gmra.mrb[236].mxu1 %v11841_v7 }
 0x377   : > { %6735 = vmatprep.mubr.msk.bf16.mxu1 %vm11883_vm3, %v10283_v2  ;;  %6777 = vmatmul.mubr.msk.bf16.gmra.mrb[8].mxu0 %vm11884_vm13, %v10242_v17 }
 0x378   : > { %5646 = vmatprep.mubr.bf16.mxu0 %v10253_v29 }
 0x379   : > { %v7337_v10 = vpop.f32.mrb[132].mxu1 }
 0x37a   : > { %v7338_v39 = vpop.f32.mrb[133].mxu1  ;;  %v7443_v30 = vpop.f32.mrb[160].mxu0 }
 0x37b   : > { %v7339_v43 = vadd.f32 %v7338_v39, %v7337_v10  ;;  %v7340_v56 = vpop.f32.mrb[134].mxu1  ;;  %v7444_v7 = vpop.f32.mrb[161].mxu0 }
 0x37c   : > { %v7445_v23 = vadd.f32 %v7444_v7, %v7443_v30  ;;  %v7341_v1 = vpop.f32.mrb[135].mxu1  ;;  %v7446_v52 = vpop.f32.mrb[162].mxu0 }
 0x37d   : > { %v7342_v17 = vadd.f32 %v7341_v1, %v7340_v56  ;;  %v7447_v44 = vpop.f32.mrb[163].mxu0 }
 0x37e   : > { %v10586_v19 = vadd.f32 %v7445_v23, %v5078_v5  ;;  %v7448_v24 = vadd.f32 %v7447_v44, %v7446_v52  ;;  %5494 = vmatmul.mubr.bf16.gmra.mrb[240].mxu1 %v10253_v29  ;;  %v5086_v29 = vadd.f32 %v7339_v43, %v10580_v26  ;;  %v11892_v5 = vld [vmem:[#allocation45_spill] sm:$0xff] }
 0x37f   : > { %6738 = vmatprep.mubr.msk.bf16.mxu1 %vm11856_vm7, %v10305_v58  ;;  %6780 = vmatmul.mubr.msk.bf16.gmra.mrb[12].mxu0 %vm11889_vm5, %v11887_v46  ;;  %v5089_v30 = vadd.f32 %v7342_v17, %v10580_v26  ;;  %vm11893_vm13 = vnez %v11892_v5  ;;  %v11894_v23 = vld [vmem:[#allocation57_spill] sm:$0xff] }
 0x380   : > { %v10595_v18 = vadd.f32 %v7448_v24, %v5081_v4  ;;  %5654 = vmatprep.mubr.bf16.mxu0 %v11890_v8 }
 0x381   : > { %v7343_v12 = vpop.f32.mrb[136].mxu1 }
 0x382   : > { %v7344_v55 = vpop.f32.mrb[137].mxu1  ;;  %v7449_v6 = vpop.f32.mrb[164].mxu0 }
 0x383   : > { %v7345_v47 = vadd.f32 %v7344_v55, %v7343_v12  ;;  %v7346_v36 = vpop.f32.mrb[138].mxu1  ;;  %v7450_v40 = vpop.f32.mrb[165].mxu0 }
 0x384   : > { %v7451_v59 = vadd.f32 %v7450_v40, %v7449_v6  ;;  %v7347_v49 = vpop.f32.mrb[139].mxu1  ;;  %v7452_v57 = vpop.f32.mrb[166].mxu0 }
 0x385   : > { %v7348_v10 = vadd.f32 %v7347_v49, %v7346_v36  ;;  %v7453_v39 = vpop.f32.mrb[167].mxu0  ;;  %v5094_v24 = vadd.f32 %v7345_v47, %v10580_v26  ;;  %v11898_v49 = vld [vmem:[#allocation56_spill] sm:$0xff] }
 0x386   : > { %v10600_v56 = vadd.f32 %v7451_v59, %v5086_v29  ;;  %v7454_v7 = vadd.f32 %v7453_v39, %v7452_v57  ;;  %5502 = vmatmul.mubr.bf16.gmra.mrb[244].mxu1 %v11890_v8  ;;  %v11895_v29 = vld [vmem:[#allocation15_spill] sm:$0xff] }
 0x387   : > { %6741 = vmatprep.mubr.msk.bf16.mxu1 %vm11860_vm6, %v10321_v33  ;;  %6783 = vmatmul.mubr.msk.bf16.gmra.mrb[16].mxu0 %vm11893_vm13, %v11891_v3  ;;  %v5097_v6 = vadd.f32 %v7348_v10, %v10580_v26  ;;  %v11896_v59 = vld [vmem:[#allocation47_spill] sm:$0xff] }
 0x388   : > { %v10609_v43 = vadd.f32 %v7454_v7, %v5089_v30  ;;  %5662 = vmatprep.mubr.bf16.mxu0 %v11894_v23  ;;  %vm11897_vm5 = vnez %v11896_v59 }
 0x389   : > { %v7349_v1 = vpop.f32.mrb[140].mxu1 }
 0x38a   : > { %v7350_v52 = vpop.f32.mrb[141].mxu1  ;;  %v7455_v17 = vpop.f32.mrb[168].mxu0 }
 0x38b   : > { %v7351_v44 = vadd.f32 %v7350_v52, %v7349_v1  ;;  %v7352_v20 = vpop.f32.mrb[142].mxu1  ;;  %v7456_v4 = vpop.f32.mrb[169].mxu0 }
 0x38c   : > { %v7457_v46 = vadd.f32 %v7456_v4, %v7455_v17  ;;  %v7353_v34 = vpop.f32.mrb[143].mxu1  ;;  %v7458_v8 = vpop.f32.mrb[170].mxu0 }
 0x38d   : > { %v7354_v12 = vadd.f32 %v7353_v34, %v7352_v20  ;;  %v7459_v55 = vpop.f32.mrb[171].mxu0  ;;  %v5102_v5 = vadd.f32 %v7351_v44, %v10580_v26 }
 0x38e   : > { %v10614_v36 = vadd.f32 %v7457_v46, %v5094_v24  ;;  %v7460_v40 = vadd.f32 %v7459_v55, %v7458_v8  ;;  %5510 = vmatmul.mubr.bf16.gmra.mrb[248].mxu1 %v11894_v23  ;;  %v11899_v24 = vld [vmem:[#allocation49_spill] sm:$0xff]  ;;  %v11901_v46 = vmov 0.0|0.0  }
 0x38f   : > { %6744 = vmatprep.mubr.msk.bf16.mxu1 %vm11865_vm11, %v11895_v29  ;;  %6786 = vmatmul.mubr.msk.bf16.gmra.mrb[20].mxu0 %vm11897_vm5, %v10309_v61  ;;  %v5105_v20 = vadd.f32 %v7354_v12, %v10580_v26  ;;  %vm11900_vm11 = vnez %v11899_v24 }
 0x390   : > { %v10623_v47 = vadd.f32 %v7460_v40, %v5097_v6  ;;  %5670 = vmatprep.mubr.bf16.mxu0 %v11898_v49 }
 0x391   : > { %v7355_v57 = vpop.f32.mrb[144].mxu1 }
 0x392   : > { %v7356_v39 = vpop.f32.mrb[145].mxu1  ;;  %v7461_v10 = vpop.f32.mrb[172].mxu0 }
 0x393   : > { %v7357_v30 = vadd.f32 %v7356_v39, %v7355_v57  ;;  %v7358_v7 = vpop.f32.mrb[146].mxu1  ;;  %v7462_v3 = vpop.f32.mrb[173].mxu0 }
 0x394   : > { %v7463_v23 = vadd.f32 %v7462_v3, %v7461_v10  ;;  %v7359_v1 = vpop.f32.mrb[147].mxu1  ;;  %v7464_v35 = vpop.f32.mrb[174].mxu0 }
 0x395   : > { %v7360_v52 = vadd.f32 %v7359_v1, %v7358_v7  ;;  %v7465_v17 = vpop.f32.mrb[175].mxu0  ;;  %v5110_v59 = vadd.f32 %v7357_v30, %v10580_v26 }
 0x396   : > { %v10628_v61 = vadd.f32 %v7463_v23, %v5102_v5  ;;  %v7466_v4 = vadd.f32 %v7465_v17, %v7464_v35  ;;  %5518 = vmatmul.mubr.bf16.gmra.mrb[252].mxu1 %v11898_v49 }
 0x397   : > { %6789 = vmatmul.mubr.msk.bf16.gmra.mrb[24].mxu0 %vm11900_vm11, %v10311_v51  ;;  %7851 = vmatprep.mubr.msk.bf16.mxu1 %vm11862_vm0, %v10107_v63  ;;  %v5113_v53 = vadd.f32 %v7360_v52, %v10580_v26 }
 0x398   : > { %v10637_v44 = vadd.f32 %v7466_v4, %v5105_v20  ;;  %5678 = vmatprep.mubr.bf16.mxu0 %v11901_v46 }
 0x399   : > { %v7361_v34 = vpop.f32.mrb[148].mxu1 }
 0x39a   : > { %v7362_v8 = vpop.f32.mrb[149].mxu1  ;;  %v7467_v12 = vpop.f32.mrb[176].mxu0 }
 0x39b   : > { %v7363_v55 = vadd.f32 %v7362_v8, %v7361_v34  ;;  %v7364_v6 = vpop.f32.mrb[150].mxu1  ;;  %v7468_v40 = vpop.f32.mrb[177].mxu0 }
 0x39c   : > { %v7469_v49 = vadd.f32 %v7468_v40, %v7467_v12  ;;  %v7365_v57 = vpop.f32.mrb[151].mxu1  ;;  %v7470_v39 = vpop.f32.mrb[178].mxu0 }
 0x39d   : > { %v7366_v51 = vadd.f32 %v7365_v57, %v7364_v6  ;;  %v7471_v10 = vpop.f32.mrb[179].mxu0  ;;  %v5118_v17 = vadd.f32 %v7363_v55, %v10580_v26 }
 0x39e   : > { %v10642_v63 = vadd.f32 %v7469_v49, %v5110_v59  ;;  %v7472_v7 = vadd.f32 %v7471_v10, %v7470_v39  ;;  %7852 = vmatmul.mubr.msk.bf16.vlgmr.msra.gmra.mrb[0].mxu1 %vm8659_vm9, %v10121_v38  ;;  %vm11902_vm9 = vnez %v11836_v41 }
 0x39f   : > { %5679 = vmatmul.mubr.bf16.gmra.mrb[28].mxu0 %v11901_v46  ;;  %7855 = vmatprep.mubr.msk.bf16.mxu1 %vm8694_vm12, %v10139_v45  ;;  %v5121_v34 = vadd.f32 %v7366_v51, %v10580_v26 }
 0x3a0   : > { %v10651_v30 = vadd.f32 %v7472_v7, %v5113_v53 }
 0x3a1   : > { %v7367_v3 = vpop.f32.mrb[152].mxu1 }
 0x3a2   : > { %v7368_v5 = vpop.f32.mrb[153].mxu1  ;;  %v7473_v23 = vpop.f32.mrb[180].mxu0 }
 0x3a3   : > { %v7369_v1 = vadd.f32 %v7368_v5, %v7367_v3  ;;  %v7370_v35 = vpop.f32.mrb[154].mxu1  ;;  %v7474_v52 = vpop.f32.mrb[181].mxu0 }
 0x3a4   : > { %v7475_v20 = vadd.f32 %v7474_v52, %v7473_v23  ;;  %v7371_v4 = vpop.f32.mrb[155].mxu1  ;;  %v7476_v25 = vpop.f32.mrb[182].mxu0 }
 0x3a5   : > { %v7372_v38 = vadd.f32 %v7371_v4, %v7370_v35  ;;  %v7477_v24 = vpop.f32.mrb[183].mxu0  ;;  %v5126_v57 = vadd.f32 %v7369_v1, %v10580_v26 }
 0x3a6   : > { %v10655_v8 = vadd.f32 %v7475_v20, %v5118_v17  ;;  %v7478_v42 = vadd.f32 %v7477_v24, %v7476_v25  ;;  %7856 = vmatmul.mubr.msk.bf16.gmra.mrb[4].mxu1 %vm8768_vm2, %v11819_v54 }
 0x3a7   : > { %7859 = vmatprep.mubr.msk.bf16.mxu1 %vm8860_vm1, %v10171_v60  ;;  %v5129_v54 = vadd.f32 %v7372_v38, %v10580_v26 }
 0x3a8   : > { %v10663_v45 = vadd.f32 %v7478_v42, %v5121_v34 }
 0x3a9   : > { %v7373_v12 = vpop.f32.mrb[156].mxu1 }
 0x3aa   : > { %v7374_v55 = vpop.f32.mrb[157].mxu1  ;;  %v7479_v6 = vpop.f32.mrb[184].mxu0 }
 0x3ab   : > { %v7375_v40 = vadd.f32 %v7374_v55, %v7373_v12  ;;  %v7376_v59 = vpop.f32.mrb[158].mxu1  ;;  %v7480_v49 = vpop.f32.mrb[185].mxu0 }
 0x3ac   : > { %v7481_v39 = vadd.f32 %v7480_v49, %v7479_v6  ;;  %v7377_v51 = vpop.f32.mrb[159].mxu1  ;;  %v7482_v10 = vpop.f32.mrb[186].mxu0 }
 0x3ad   : > { %v7378_v53 = vadd.f32 %v7377_v51, %v7376_v59  ;;  %v7483_v31 = vpop.f32.mrb[187].mxu0  ;;  %v5134_v17 = vadd.f32 %v7375_v40, %v10580_v26 }
 0x3ae   : > { %v10667_v7 = vadd.f32 %v7481_v39, %v5126_v57  ;;  %v7484_v60 = vadd.f32 %v7483_v31, %v7482_v10  ;;  %7860 = vmatmul.mubr.msk.bf16.gmra.mrb[8].mxu1 %vm11686_vm15, %v11827_v13 }
 0x3af   : > { %7863 = vmatprep.mubr.msk.bf16.mxu1 %vm11692_vm8, %v10203_v37  ;;  %v5137_v13 = vadd.f32 %v7378_v53, %v10580_v26 }
 0x3b0   : > { %v10675_v48 = vadd.f32 %v7484_v60, %v5129_v54 }
 0x3b1   : > { %v7379_v3 = vpop.f32.mrb[160].mxu1 }
 0x3b2   : > { %v7380_v5 = vpop.f32.mrb[161].mxu1  ;;  %v7485_v23 = vpop.f32.mrb[188].mxu0 }
 0x3b3   : > { %v7381_v1 = vadd.f32 %v7380_v5, %v7379_v3  ;;  %v7382_v35 = vpop.f32.mrb[162].mxu1  ;;  %v7486_v52 = vpop.f32.mrb[189].mxu0 }
 0x3b4   : > { %v7487_v20 = vadd.f32 %v7486_v52, %v7485_v23  ;;  %v7383_v4 = vpop.f32.mrb[163].mxu1  ;;  %v7488_v25 = vpop.f32.mrb[190].mxu0 }
 0x3b5   : > { %v7384_v38 = vadd.f32 %v7383_v4, %v7382_v35  ;;  %v7489_v32 = vpop.f32.mrb[191].mxu0  ;;  %v5142_v59 = vadd.f32 %v7381_v1, %v10580_v26 }
 0x3b6   : > { %v10679_v24 = vadd.f32 %v7487_v20, %v5134_v17  ;;  %v7490_v37 = vadd.f32 %v7489_v32, %v7488_v25  ;;  %7864 = vmatmul.mubr.msk.bf16.gmra.mrb[12].mxu1 %vm11696_vm4, %v11835_v0 }
 0x3b7   : > { %7867 = vmatprep.mubr.msk.bf16.mxu1 %vm11700_vm10, %v10235_v15  ;;  %v5145_v0 = vadd.f32 %v7384_v38, %v10580_v26  ;;  %vm11903_vm10 = vnez %v11842_v21 }
 0x3b8   : > { %v10687_v11 = vadd.f32 %v7490_v37, %v5137_v13 }
 0x3b9   : > { %v7385_v34 = vpop.f32.mrb[164].mxu1 }
 0x3ba   : > { %v7386_v42 = vpop.f32.mrb[165].mxu1  ;;  %v7491_v12 = vpop.f32.mrb[192].mxu0 }
 0x3bb   : > { %v7387_v55 = vadd.f32 %v7386_v42, %v7385_v34  ;;  %v7388_v6 = vpop.f32.mrb[166].mxu1  ;;  %v7492_v40 = vpop.f32.mrb[193].mxu0 }
 0x3bc   : > { %v7493_v49 = vadd.f32 %v7492_v40, %v7491_v12  ;;  %v7389_v57 = vpop.f32.mrb[167].mxu1  ;;  %v7494_v39 = vpop.f32.mrb[194].mxu0 }
 0x3bd   : > { %v7390_v51 = vadd.f32 %v7389_v57, %v7388_v6  ;;  %v7495_v50 = vpop.f32.mrb[195].mxu0  ;;  %v5150_v23 = vadd.f32 %v7387_v55, %v10580_v26 }
 0x3be   : > { %v10691_v10 = vadd.f32 %v7493_v49, %v5142_v59  ;;  %v7496_v15 = vadd.f32 %v7495_v50, %v7494_v39  ;;  %7868 = vmatmul.mubr.msk.bf16.gmra.mrb[16].mxu1 %vm11902_vm9, %v11845_v9 }
 0x3bf   : > { %7871 = vmatprep.mubr.msk.bf16.mxu1 %vm11903_vm10, %v10267_v62  ;;  %v5153_v9 = vadd.f32 %v7390_v51, %v10580_v26 }
 0x3c0   : > { %v10699_v22 = vadd.f32 %v7496_v15, %v5145_v0 }
 0x3c1   : > { %v7391_v53 = vpop.f32.mrb[168].mxu1 }
 0x3c2   : > { %v7392_v31 = vpop.f32.mrb[169].mxu1  ;;  %v7497_v54 = vpop.f32.mrb[196].mxu0 }
 0x3c3   : > { %v7393_v60 = vadd.f32 %v7392_v31, %v7391_v53  ;;  %v7394_v3 = vpop.f32.mrb[170].mxu1  ;;  %v7498_v5 = vpop.f32.mrb[197].mxu0 }
 0x3c4   : > { %v7499_v1 = vadd.f32 %v7498_v5, %v7497_v54  ;;  %v7395_v35 = vpop.f32.mrb[171].mxu1  ;;  %v7500_v52 = vpop.f32.mrb[198].mxu0 }
 0x3c5   : > { %v7396_v17 = vadd.f32 %v7395_v35, %v7394_v3  ;;  %v7501_v41 = vpop.f32.mrb[199].mxu0  ;;  %v5158_v34 = vadd.f32 %v7393_v60, %v10580_v26 }
 0x3c6   : > { %v10703_v20 = vadd.f32 %v7499_v1, %v5150_v23  ;;  %v7502_v21 = vadd.f32 %v7501_v41, %v7500_v52  ;;  %7872 = vmatmul.mubr.msk.bf16.gmra.mrb[20].mxu1 %vm11880_vm14, %v10283_v2 }
 0x3c7   : > { %7875 = vmatprep.mubr.msk.bf16.mxu1 %vm11883_vm3, %v10305_v58  ;;  %v5161_v2 = vadd.f32 %v7396_v17, %v10580_v26 }
 0x3c8   : > { %v10711_v62 = vadd.f32 %v7502_v21, %v5153_v9 }
 0x3c9   : > { %v7397_v4 = vpop.f32.mrb[172].mxu1 }
 0x3ca   : > { %v7398_v25 = vpop.f32.mrb[173].mxu1  ;;  %v7503_v38 = vpop.f32.mrb[200].mxu0 }
 0x3cb   : > { %v7399_v32 = vadd.f32 %v7398_v25, %v7397_v4  ;;  %v7400_v13 = vpop.f32.mrb[174].mxu1  ;;  %v7504_v37 = vpop.f32.mrb[201].mxu0 }
 0x3cc   : > { %v7505_v42 = vadd.f32 %v7504_v37, %v7503_v38  ;;  %v7401_v12 = vpop.f32.mrb[175].mxu1  ;;  %v7506_v55 = vpop.f32.mrb[202].mxu0 }
 0x3cd   : > { %v7402_v6 = vadd.f32 %v7401_v12, %v7400_v13  ;;  %v7507_v14 = vpop.f32.mrb[203].mxu0  ;;  %v5166_v0 = vadd.f32 %v7399_v32, %v10580_v26 }
 0x3ce   : > { %v10715_v40 = vadd.f32 %v7505_v42, %v5158_v34  ;;  %v7508_v58 = vadd.f32 %v7507_v14, %v7506_v55  ;;  %7876 = vmatmul.mubr.msk.bf16.gmra.mrb[24].mxu1 %vm11856_vm7, %v10321_v33 }
 0x3cf   : > { %7879 = vmatprep.mubr.msk.bf16.mxu1 %vm11860_vm6, %v11895_v29  ;;  %v5169_v33 = vadd.f32 %v7402_v6, %v10580_v26  ;;  %vm5889_vm6 = vcmask 1041408  }
 0x3d0   : > { %v10723_v16 = vadd.f32 %v7508_v58, %v5161_v2 }
 0x3d1   : > { %v7403_v59 = vpop.f32.mrb[176].mxu1 }
 0x3d2   : > { %v7404_v49 = vpop.f32.mrb[177].mxu1  ;;  %v7509_v57 = vpop.f32.mrb[204].mxu0 }
 0x3d3   : > { %v7405_v39 = vadd.f32 %v7404_v49, %v7403_v59  ;;  %v7406_v51 = vpop.f32.mrb[178].mxu1  ;;  %v7510_v50 = vpop.f32.mrb[205].mxu0 }
 0x3d4   : > { %v7511_v15 = vadd.f32 %v7510_v50, %v7509_v57  ;;  %v7407_v53 = vpop.f32.mrb[179].mxu1  ;;  %v7512_v31 = vpop.f32.mrb[206].mxu0 }
 0x3d5   : > { %v7408_v54 = vadd.f32 %v7407_v53, %v7406_v51  ;;  %v7513_v28 = vpop.f32.mrb[207].mxu0  ;;  %v5174_v17 = vadd.f32 %v7405_v39, %v10580_v26 }
 0x3d6   : > { %v10727_v60 = vadd.f32 %v7511_v15, %v5166_v0  ;;  %v7514_v27 = vadd.f32 %v7513_v28, %v7512_v31  ;;  %7880 = vmatmul.mubr.bf16.gmra.mrb[28].mxu1 %v11901_v46 }
 0x3d7   : > { %v5177_v38 = vadd.f32 %v7408_v54, %v10580_v26 }
 0x3d8   : > { %v10730_v29 = vadd.f32 %v7514_v27, %v5169_v33 }
 0x3d9   : > { %v7409_v3 = vpop.f32.mrb[180].mxu1 }
 0x3da   : > { %v7410_v5 = vpop.f32.mrb[181].mxu1  ;;  %v7515_v23 = vpop.f32.mrb[208].mxu0 }
 0x3db   : > { %v7411_v1 = vadd.f32 %v7410_v5, %v7409_v3  ;;  %v7412_v35 = vpop.f32.mrb[182].mxu1  ;;  %v7516_v52 = vpop.f32.mrb[209].mxu0 }
 0x3dc   : > { %v7517_v41 = vadd.f32 %v7516_v52, %v7515_v23  ;;  %v7413_v9 = vpop.f32.mrb[183].mxu1  ;;  %v7518_v21 = vpop.f32.mrb[210].mxu0 }
 0x3dd   : > { %v7414_v4 = vadd.f32 %v7413_v9, %v7412_v35  ;;  %v7519_v25 = vpop.f32.mrb[211].mxu0  ;;  %v5182_v14 = vadd.f32 %v7411_v1, %v10580_v26 }
 0x3de   : > { %v10734_v32 = vadd.f32 %v7517_v41, %v5174_v17  ;;  %v7520_v46 = vadd.f32 %v7519_v25, %v7518_v21 }
 0x3df   : > { %v5185_v39 = vadd.f32 %v7414_v4, %v10580_v26 }
 0x3e0   : > { %v10736_v13 = vadd.f32 %v7520_v46, %v5177_v38 }
 0x3e1   : > { %v7415_v37 = vpop.f32.mrb[184].mxu1 }
 0x3e2   : > { %v7416_v34 = vpop.f32.mrb[185].mxu1  ;;  %v7521_v42 = vpop.f32.mrb[212].mxu0 }
 0x3e3   : > { %v7417_v12 = vadd.f32 %v7416_v34, %v7415_v37  ;;  %v7418_v55 = vpop.f32.mrb[186].mxu1  ;;  %v7522_v6 = vpop.f32.mrb[213].mxu0 }
 0x3e4   : > { %v7523_v2 = vadd.f32 %v7522_v6, %v7521_v42  ;;  %v7419_v58 = vpop.f32.mrb[187].mxu1  ;;  %v7524_v59 = vpop.f32.mrb[214].mxu0 }
 0x3e5   : > { %v7420_v49 = vadd.f32 %v7419_v58, %v7418_v55  ;;  %v7525_v57 = vpop.f32.mrb[215].mxu0  ;;  %v5190_v27 = vadd.f32 %v7417_v12, %v10580_v26 }
 0x3e6   : > { %v10740_v51 = vadd.f32 %v7523_v2, %v5182_v14  ;;  %v7526_v50 = vadd.f32 %v7525_v57, %v7524_v59 }
 0x3e7   : > { %v5193_v52 = vadd.f32 %v7420_v49, %v10580_v26 }
 0x3e8   : > { %v10742_v0 = vadd.f32 %v7526_v50, %v5185_v39 }
 0x3e9   : > { %v7421_v15 = vpop.f32.mrb[188].mxu1 }
 0x3ea   : > { %v7422_v53 = vpop.f32.mrb[189].mxu1  ;;  %v7527_v31 = vpop.f32.mrb[216].mxu0 }
 0x3eb   : > { %v7423_v54 = vadd.f32 %v7422_v53, %v7421_v15  ;;  %v7424_v28 = vpop.f32.mrb[190].mxu1  ;;  %v7528_v33 = vpop.f32.mrb[217].mxu0 }
 0x3ec   : > { %v7529_v3 = vadd.f32 %v7528_v33, %v7527_v31  ;;  %v7425_v5 = vpop.f32.mrb[191].mxu1  ;;  %v7530_v23 = vpop.f32.mrb[218].mxu0 }
 0x3ed   : > { %v7426_v1 = vadd.f32 %v7425_v5, %v7424_v28  ;;  %v7531_v35 = vpop.f32.mrb[219].mxu0  ;;  %v5198_v34 = vadd.f32 %v7423_v54, %v10580_v26 }
 0x3ee   : > { %v10746_v17 = vadd.f32 %v7529_v3, %v5190_v27  ;;  %v7532_v41 = vadd.f32 %v7531_v35, %v7530_v23 }
 0x3ef   : > { %v5201_v58 = vadd.f32 %v7426_v1, %v10580_v26 }
 0x3f0   : > { %v10748_v9 = vadd.f32 %v7532_v41, %v5193_v52 }
 0x3f1   : > { %v7555_v21 = vpop.f32.mrb[192].mxu1 }
 0x3f2   : > { %v7533_v4 = vpop.f32.mrb[220].mxu0  ;;  %v7556_v25 = vpop.f32.mrb[193].mxu1 }
 0x3f3   : > { %v7557_v38 = vadd.f32 %v7556_v25, %v7555_v21  ;;  %v7534_v46 = vpop.f32.mrb[221].mxu0  ;;  %v7558_v37 = vpop.f32.mrb[194].mxu1 }
 0x3f4   : > { %v7535_v42 = vadd.f32 %v7534_v46, %v7533_v4  ;;  %v7536_v12 = vpop.f32.mrb[222].mxu0  ;;  %v7559_v55 = vpop.f32.mrb[195].mxu1 }
 0x3f5   : > { %v5400_v6 = vadd.f32 %v7557_v38, %v10586_v19  ;;  %v7560_v14 = vadd.f32 %v7559_v55, %v7558_v37  ;;  %v7537_v2 = vpop.f32.mrb[223].mxu0 }
 0x3f6   : > { %v10753_v59 = vadd.f32 %v7535_v42, %v5198_v34  ;;  %v7538_v49 = vadd.f32 %v7537_v2, %v7536_v12 }
 0x3f7   : > { %v5403_v57 = vadd.f32 %v7560_v14, %v10595_v18 }
 0x3f8   : > { %v10756_v39 = vadd.f32 %v7538_v49, %v5201_v58 }
 0x3f9   : > { %v7561_v50 = vpop.f32.mrb[196].mxu1 }
 0x3fa   : > { %v7562_v15 = vpop.f32.mrb[197].mxu1  ;;  %v7667_v53 = vpop.f32.mrb[224].mxu0 }
 0x3fb   : > { %v7563_v31 = vadd.f32 %v7562_v15, %v7561_v50  ;;  %v7564_v54 = vpop.f32.mrb[198].mxu1  ;;  %v7668_v28 = vpop.f32.mrb[225].mxu0 }
 0x3fc   : > { %v7669_v33 = vadd.f32 %v7668_v28, %v7667_v53  ;;  %v7565_v27 = vpop.f32.mrb[199].mxu1  ;;  %v7670_v19 = vpop.f32.mrb[226].mxu0 }
 0x3fd   : > { %v5408_v3 = vadd.f32 %v7563_v31, %v10600_v56  ;;  %v7566_v5 = vadd.f32 %v7565_v27, %v7564_v54  ;;  %v7671_v26 = vpop.f32.mrb[227].mxu0 }
 0x3fe   : > { %v7672_v23 = vadd.f32 %v7671_v26, %v7670_v19  ;;  %v10759_v1 = vadd.f32 %v7669_v33, %v5400_v6 }
 0x3ff   : > { %v5411_v18 = vadd.f32 %v7566_v5, %v10609_v43 }
 0x400   : > { %v10762_v35 = vadd.f32 %v7672_v23, %v5403_v57 }
 0x401   : > { %v7567_v52 = vpop.f32.mrb[200].mxu1 }
 0x402   : > { %v7568_v41 = vpop.f32.mrb[201].mxu1  ;;  %v7673_v21 = vpop.f32.mrb[228].mxu0 }
 0x403   : > { %v7569_v4 = vadd.f32 %v7568_v41, %v7567_v52  ;;  %v7570_v25 = vpop.f32.mrb[202].mxu1  ;;  %v7674_v38 = vpop.f32.mrb[229].mxu0 }
 0x404   : > { %v7675_v46 = vadd.f32 %v7674_v38, %v7673_v21  ;;  %v7571_v37 = vpop.f32.mrb[203].mxu1  ;;  %v7676_v34 = vpop.f32.mrb[230].mxu0 }
 0x405   : > { %v5416_v56 = vadd.f32 %v7569_v4, %v10614_v36  ;;  %v7572_v42 = vadd.f32 %v7571_v37, %v7570_v25  ;;  %v7677_v12 = vpop.f32.mrb[231].mxu0 }
 0x406   : > { %v7678_v55 = vadd.f32 %v7677_v12, %v7676_v34  ;;  %v10765_v6 = vadd.f32 %v7675_v46, %v5408_v3 }
 0x407   : > { %v5419_v43 = vadd.f32 %v7572_v42, %v10623_v47 }
 0x408   : > { %v10768_v14 = vadd.f32 %v7678_v55, %v5411_v18 }
 0x409   : > { %v7573_v2 = vpop.f32.mrb[204].mxu1 }
 0x40a   : > { %v7574_v58 = vpop.f32.mrb[205].mxu1  ;;  %v7679_v49 = vpop.f32.mrb[232].mxu0 }
 0x40b   : > { %v7575_v57 = vadd.f32 %v7574_v58, %v7573_v2  ;;  %v7576_v50 = vpop.f32.mrb[206].mxu1  ;;  %v7680_v15 = vpop.f32.mrb[233].mxu0 }
 0x40c   : > { %v7681_v53 = vadd.f32 %v7680_v15, %v7679_v49  ;;  %v7577_v31 = vpop.f32.mrb[207].mxu1  ;;  %v7682_v54 = vpop.f32.mrb[234].mxu0 }
 0x40d   : > { %v5424_v36 = vadd.f32 %v7575_v57, %v10628_v61  ;;  %v7578_v28 = vadd.f32 %v7577_v31, %v7576_v50  ;;  %v7683_v33 = vpop.f32.mrb[235].mxu0 }
 0x40e   : > { %v7684_v27 = vadd.f32 %v7683_v33, %v7682_v54  ;;  %v10771_v19 = vadd.f32 %v7681_v53, %v5416_v56 }
 0x40f   : > { %v5427_v47 = vadd.f32 %v7578_v28, %v10637_v44 }
 0x410   : > { %v10774_v3 = vadd.f32 %v7684_v27, %v5419_v43 }
 0x411   : > { %v7579_v5 = vpop.f32.mrb[208].mxu1 }
 0x412   : > { %v7580_v26 = vpop.f32.mrb[209].mxu1  ;;  %v7685_v23 = vpop.f32.mrb[236].mxu0 }
 0x413   : > { %v7581_v18 = vadd.f32 %v7580_v26, %v7579_v5  ;;  %v7582_v52 = vpop.f32.mrb[210].mxu1  ;;  %v7686_v41 = vpop.f32.mrb[237].mxu0 }
 0x414   : > { %v7687_v21 = vadd.f32 %v7686_v41, %v7685_v23  ;;  %v7583_v4 = vpop.f32.mrb[211].mxu1  ;;  %v7688_v25 = vpop.f32.mrb[238].mxu0 }
 0x415   : > { %v5432_v61 = vadd.f32 %v7581_v18, %v10642_v63  ;;  %v7584_v38 = vadd.f32 %v7583_v4, %v7582_v52  ;;  %v7689_v46 = vpop.f32.mrb[239].mxu0 }
 0x416   : > { %v7690_v37 = vadd.f32 %v7689_v46, %v7688_v25  ;;  %v10777_v34 = vadd.f32 %v7687_v21, %v5424_v36 }
 0x417   : > { %v5435_v44 = vadd.f32 %v7584_v38, %v10651_v30 }
 0x418   : > { %v10780_v56 = vadd.f32 %v7690_v37, %v5427_v47 }
 0x419   : > { %v7585_v42 = vpop.f32.mrb[212].mxu1 }
 0x41a   : > { %v7586_v12 = vpop.f32.mrb[213].mxu1  ;;  %v7691_v55 = vpop.f32.mrb[240].mxu0 }
 0x41b   : > { %v7587_v43 = vadd.f32 %v7586_v12, %v7585_v42  ;;  %v7588_v2 = vpop.f32.mrb[214].mxu1  ;;  %v7692_v58 = vpop.f32.mrb[241].mxu0 }
 0x41c   : > { %v7693_v49 = vadd.f32 %v7692_v58, %v7691_v55  ;;  %v7589_v57 = vpop.f32.mrb[215].mxu1  ;;  %v7694_v50 = vpop.f32.mrb[242].mxu0 }
 0x41d   : > { %v5440_v63 = vadd.f32 %v7587_v43, %v10655_v8  ;;  %v7590_v15 = vadd.f32 %v7589_v57, %v7588_v2  ;;  %v7695_v53 = vpop.f32.mrb[243].mxu0 }
 0x41e   : > { %v7696_v31 = vadd.f32 %v7695_v53, %v7694_v50  ;;  %v10783_v54 = vadd.f32 %v7693_v49, %v5432_v61 }
 0x41f   : > { %v5443_v30 = vadd.f32 %v7590_v15, %v10663_v45 }
 0x420   : > { %v10786_v36 = vadd.f32 %v7696_v31, %v5435_v44 }
 0x421   : > { %v7591_v28 = vpop.f32.mrb[216].mxu1 }
 0x422   : > { %v7592_v33 = vpop.f32.mrb[217].mxu1  ;;  %v7697_v27 = vpop.f32.mrb[244].mxu0 }
 0x423   : > { %v7593_v47 = vadd.f32 %v7592_v33, %v7591_v28  ;;  %v7594_v5 = vpop.f32.mrb[218].mxu1  ;;  %v7698_v26 = vpop.f32.mrb[245].mxu0 }
 0x424   : > { %v7699_v23 = vadd.f32 %v7698_v26, %v7697_v27  ;;  %v7595_v18 = vpop.f32.mrb[219].mxu1  ;;  %v7700_v52 = vpop.f32.mrb[246].mxu0 }
 0x425   : > { %v5448_v8 = vadd.f32 %v7593_v47, %v10667_v7  ;;  %v7596_v41 = vadd.f32 %v7595_v18, %v7594_v5  ;;  %v7701_v21 = vpop.f32.mrb[247].mxu0 }
 0x426   : > { %v7702_v4 = vadd.f32 %v7701_v21, %v7700_v52  ;;  %v10789_v25 = vadd.f32 %v7699_v23, %v5440_v63 }
 0x427   : > { %v5451_v45 = vadd.f32 %v7596_v41, %v10675_v48 }
 0x428   : > { %v10792_v61 = vadd.f32 %v7702_v4, %v5443_v30 }
 0x429   : > { %v7597_v38 = vpop.f32.mrb[220].mxu1 }
 0x42a   : > { %v7598_v46 = vpop.f32.mrb[221].mxu1  ;;  %v7703_v37 = vpop.f32.mrb[248].mxu0 }
 0x42b   : > { %v7599_v44 = vadd.f32 %v7598_v46, %v7597_v38  ;;  %v7600_v42 = vpop.f32.mrb[222].mxu1  ;;  %v7704_v12 = vpop.f32.mrb[249].mxu0 }
 0x42c   : > { %v7705_v55 = vadd.f32 %v7704_v12, %v7703_v37  ;;  %v7601_v43 = vpop.f32.mrb[223].mxu1  ;;  %v7706_v2 = vpop.f32.mrb[250].mxu0 }
 0x42d   : > { %v5456_v7 = vadd.f32 %v7599_v44, %v10679_v24  ;;  %v7602_v58 = vadd.f32 %v7601_v43, %v7600_v42  ;;  %v7707_v49 = vpop.f32.mrb[251].mxu0 }
 0x42e   : > { %v7708_v57 = vadd.f32 %v7707_v49, %v7706_v2  ;;  %v10795_v50 = vadd.f32 %v7705_v55, %v5448_v8 }
 0x42f   : > { %v5459_v48 = vadd.f32 %v7602_v58, %v10687_v11 }
 0x430   : > { %v10798_v63 = vadd.f32 %v7708_v57, %v5451_v45 }
 0x431   : > { %v7603_v15 = vpop.f32.mrb[224].mxu1 }
 0x432   : > { %v7604_v53 = vpop.f32.mrb[225].mxu1  ;;  %v7709_v31 = vpop.f32.mrb[252].mxu0 }
 0x433   : > { %v7605_v30 = vadd.f32 %v7604_v53, %v7603_v15  ;;  %v7606_v28 = vpop.f32.mrb[226].mxu1  ;;  %v7710_v33 = vpop.f32.mrb[253].mxu0 }
 0x434   : > { %v7711_v27 = vadd.f32 %v7710_v33, %v7709_v31  ;;  %v7607_v47 = vpop.f32.mrb[227].mxu1  ;;  %v7712_v5 = vpop.f32.mrb[254].mxu0 }
 0x435   : > { %v5464_v24 = vadd.f32 %v7605_v30, %v10691_v10  ;;  %v7608_v26 = vadd.f32 %v7607_v47, %v7606_v28  ;;  %v7713_v23 = vpop.f32.mrb[255].mxu0 }
 0x436   : > { %v7714_v18 = vadd.f32 %v7713_v23, %v7712_v5  ;;  %v10801_v52 = vadd.f32 %v7711_v27, %v5456_v7 }
 0x437   : > { %v5467_v11 = vadd.f32 %v7608_v26, %v10699_v22 }
 0x438   : > { %v10804_v8 = vadd.f32 %v7714_v18, %v5459_v48 }
 0x439   : > { %v7609_v41 = vpop.f32.mrb[228].mxu1 }
 0x43a   : > { %v7610_v21 = vpop.f32.mrb[229].mxu1  ;;  %v7715_v4 = vpop.f32.mrb[0].mxu0 }
 0x43b   : > { %v7611_v45 = vadd.f32 %v7610_v21, %v7609_v41  ;;  %v7612_v38 = vpop.f32.mrb[230].mxu1  ;;  %v7716_v46 = vpop.f32.mrb[1].mxu0 }
 0x43c   : > { %v7717_v37 = vadd.f32 %v7716_v46, %v7715_v4  ;;  %v7613_v44 = vpop.f32.mrb[231].mxu1  ;;  %v7718_v42 = vpop.f32.mrb[2].mxu0 }
 0x43d   : > { %v5472_v10 = vadd.f32 %v7611_v45, %v10703_v20  ;;  %v7614_v12 = vadd.f32 %v7613_v44, %v7612_v38  ;;  %v7719_v55 = vpop.f32.mrb[3].mxu0 }
 0x43e   : > { %v7720_v43 = vadd.f32 %v7719_v55, %v7718_v42  ;;  %v10807_v2 = vadd.f32 %v7717_v37, %v5464_v24 }
 0x43f   : > { %v5475_v22 = vadd.f32 %v7614_v12, %v10711_v62 }
 0x440   : > { %v10810_v7 = vadd.f32 %v7720_v43, %v5467_v11 }
 0x441   : > { %v7615_v58 = vpop.f32.mrb[232].mxu1 }
 0x442   : > { %v7616_v49 = vpop.f32.mrb[233].mxu1  ;;  %v7721_v57 = vpop.f32.mrb[4].mxu0 }
 0x443   : > { %v7617_v48 = vadd.f32 %v7616_v49, %v7615_v58  ;;  %v7618_v15 = vpop.f32.mrb[234].mxu1  ;;  %v7722_v53 = vpop.f32.mrb[5].mxu0 }
 0x444   : > { %v7723_v31 = vadd.f32 %v7722_v53, %v7721_v57  ;;  %v7619_v30 = vpop.f32.mrb[235].mxu1  ;;  %v7724_v28 = vpop.f32.mrb[6].mxu0 }
 0x445   : > { %v5480_v20 = vadd.f32 %v7617_v48, %v10715_v40  ;;  %v7620_v33 = vadd.f32 %v7619_v30, %v7618_v15  ;;  %v7725_v27 = vpop.f32.mrb[7].mxu0 }
 0x446   : > { %v7726_v47 = vadd.f32 %v7725_v27, %v7724_v28  ;;  %v10813_v5 = vadd.f32 %v7723_v31, %v5472_v10 }
 0x447   : > { %v5483_v62 = vadd.f32 %v7620_v33, %v10723_v16 }
 0x448   : > { %v10816_v24 = vadd.f32 %v7726_v47, %v5475_v22 }
 0x449   : > { %v7621_v26 = vpop.f32.mrb[236].mxu1 }
 0x44a   : > { %v7622_v23 = vpop.f32.mrb[237].mxu1  ;;  %v7727_v18 = vpop.f32.mrb[8].mxu0 }
 0x44b   : > { %v7623_v11 = vadd.f32 %v7622_v23, %v7621_v26  ;;  %v7624_v41 = vpop.f32.mrb[238].mxu1  ;;  %v7728_v21 = vpop.f32.mrb[9].mxu0 }
 0x44c   : > { %v7729_v4 = vadd.f32 %v7728_v21, %v7727_v18  ;;  %v7625_v45 = vpop.f32.mrb[239].mxu1  ;;  %v7730_v38 = vpop.f32.mrb[10].mxu0 }
 0x44d   : > { %v5488_v40 = vadd.f32 %v7623_v11, %v10727_v60  ;;  %v7626_v46 = vadd.f32 %v7625_v45, %v7624_v41  ;;  %v7731_v37 = vpop.f32.mrb[11].mxu0 }
 0x44e   : > { %v7732_v44 = vadd.f32 %v7731_v37, %v7730_v38  ;;  %v10819_v42 = vadd.f32 %v7729_v4, %v5480_v20 }
 0x44f   : > { %v5491_v16 = vadd.f32 %v7626_v46, %v10730_v29 }
 0x450   : > { %v10822_v10 = vadd.f32 %v7732_v44, %v5483_v62 }
 0x451   : > { %v7627_v12 = vpop.f32.mrb[240].mxu1 }
 0x452   : > { %v7628_v55 = vpop.f32.mrb[241].mxu1  ;;  %v7733_v43 = vpop.f32.mrb[12].mxu0 }
 0x453   : > { %v7629_v22 = vadd.f32 %v7628_v55, %v7627_v12  ;;  %v7630_v58 = vpop.f32.mrb[242].mxu1  ;;  %v7734_v49 = vpop.f32.mrb[13].mxu0 }
 0x454   : > { %v7735_v57 = vadd.f32 %v7734_v49, %v7733_v43  ;;  %v7631_v48 = vpop.f32.mrb[243].mxu1  ;;  %v7736_v15 = vpop.f32.mrb[14].mxu0 }
 0x455   : > { %v5496_v60 = vadd.f32 %v7629_v22, %v10734_v32  ;;  %v7632_v53 = vadd.f32 %v7631_v48, %v7630_v58  ;;  %v7737_v31 = vpop.f32.mrb[15].mxu0 }
 0x456   : > { %v7738_v30 = vadd.f32 %v7737_v31, %v7736_v15  ;;  %v10825_v28 = vadd.f32 %v7735_v57, %v5488_v40 }
 0x457   : > { %v5499_v29 = vadd.f32 %v7632_v53, %v10736_v13 }
 0x458   : > { %v10828_v20 = vadd.f32 %v7738_v30, %v5491_v16 }
 0x459   : > { %v7633_v33 = vpop.f32.mrb[244].mxu1 }
 0x45a   : > { %v7634_v27 = vpop.f32.mrb[245].mxu1  ;;  %v7739_v47 = vpop.f32.mrb[16].mxu0 }
 0x45b   : > { %v7635_v62 = vadd.f32 %v7634_v27, %v7633_v33  ;;  %v7636_v26 = vpop.f32.mrb[246].mxu1  ;;  %v7740_v23 = vpop.f32.mrb[17].mxu0 }
 0x45c   : > { %v7741_v18 = vadd.f32 %v7740_v23, %v7739_v47  ;;  %v7637_v11 = vpop.f32.mrb[247].mxu1  ;;  %v7742_v41 = vpop.f32.mrb[18].mxu0 }
 0x45d   : > { %v5504_v32 = vadd.f32 %v7635_v62, %v10740_v51  ;;  %v7638_v21 = vadd.f32 %v7637_v11, %v7636_v26  ;;  %v7743_v4 = vpop.f32.mrb[19].mxu0 }
 0x45e   : > { %v7744_v45 = vadd.f32 %v7743_v4, %v7742_v41  ;;  %v10831_v38 = vadd.f32 %v7741_v18, %v5496_v60 }
 0x45f   : > { %v5507_v13 = vadd.f32 %v7638_v21, %v10742_v0 }
 0x460   : > { %v10834_v40 = vadd.f32 %v7744_v45, %v5499_v29 }
 0x461   : > { %v7639_v46 = vpop.f32.mrb[248].mxu1 }
 0x462   : > { %v7640_v37 = vpop.f32.mrb[249].mxu1  ;;  %v7745_v44 = vpop.f32.mrb[20].mxu0 }
 0x463   : > { %v7641_v16 = vadd.f32 %v7640_v37, %v7639_v46  ;;  %v7642_v12 = vpop.f32.mrb[250].mxu1  ;;  %v7746_v55 = vpop.f32.mrb[21].mxu0 }
 0x464   : > { %v7747_v43 = vadd.f32 %v7746_v55, %v7745_v44  ;;  %v7643_v22 = vpop.f32.mrb[251].mxu1  ;;  %v7748_v58 = vpop.f32.mrb[22].mxu0 }
 0x465   : > { %v5512_v51 = vadd.f32 %v7641_v16, %v10746_v17  ;;  %v7644_v49 = vadd.f32 %v7643_v22, %v7642_v12  ;;  %v7749_v57 = vpop.f32.mrb[23].mxu0 }
 0x466   : > { %v7750_v48 = vadd.f32 %v7749_v57, %v7748_v58  ;;  %v10837_v15 = vadd.f32 %v7747_v43, %v5504_v32 }
 0x467   : > { %v5515_v0 = vadd.f32 %v7644_v49, %v10748_v9 }
 0x468   : > { %v10840_v60 = vadd.f32 %v7750_v48, %v5507_v13 }
 0x469   : > { %v7645_v53 = vpop.f32.mrb[252].mxu1 }
 0x46a   : > { %v7646_v31 = vpop.f32.mrb[253].mxu1  ;;  %v7751_v30 = vpop.f32.mrb[24].mxu0 }
 0x46b   : > { %v7647_v29 = vadd.f32 %v7646_v31, %v7645_v53  ;;  %v7648_v33 = vpop.f32.mrb[254].mxu1  ;;  %v7752_v27 = vpop.f32.mrb[25].mxu0 }
 0x46c   : > { %v7753_v47 = vadd.f32 %v7752_v27, %v7751_v30  ;;  %v7649_v62 = vpop.f32.mrb[255].mxu1  ;;  %v7754_v26 = vpop.f32.mrb[26].mxu0 }
 0x46d   : > { %v5520_v17 = vadd.f32 %v7647_v29, %v10753_v59  ;;  %v7650_v23 = vadd.f32 %v7649_v62, %v7648_v33  ;;  %v7755_v18 = vpop.f32.mrb[27].mxu0 }
 0x46e   : > { %v7756_v11 = vadd.f32 %v7755_v18, %v7754_v26  ;;  %v10843_v41 = vadd.f32 %v7753_v47, %v5512_v51 }
 0x46f   : > { %v5523_v9 = vadd.f32 %v7650_v23, %v10756_v39 }
 0x470   : > { %v10846_v32 = vadd.f32 %v7756_v11, %v5515_v0 }
 0x471   : > { %v7853_v21 = vpop.f32.mrb[0].mxu1 }
 0x472   : > { %v10849_v4 = vadd.f32 %v7853_v21, %v10765_v6  ;;  %v7757_v45 = vpop.f32.mrb[28].mxu0  ;;  %v5721_v13 = vpop.f32.mrb[1].mxu1 }
 0x473   : > { %v10852_v46 = vadd.f32 %v5721_v13, %v10759_v1  ;;  %v7758_v37 = vpop.f32.mrb[29].mxu0  ;;  %v7854_v59 = vpop.f32.mrb[2].mxu1 }
 0x474   : > { %v7759_v44 = vadd.f32 %v7758_v37, %v7757_v45  ;;  %v10855_v16 = vadd.f32 %v7854_v59, %v10768_v14  ;;  %v7760_v12 = vpop.f32.mrb[30].mxu0  ;;  %v5724_v55 = vpop.f32.mrb[3].mxu1 }
 0x475   : > { %v10858_v39 = vadd.f32 %v5724_v55, %v10762_v35  ;;  %v7761_v43 = vpop.f32.mrb[31].mxu0 }
 0x476   : > { %v7762_v22 = vadd.f32 %v7761_v43, %v7760_v12  ;;  %v10860_v6 = vadd.f32 %v7759_v44, %v5520_v17 }
 0x477   : > { %v5848_v58 = vadd.f32 %v10858_v39, %v10852_v46 }
 0x478   : > { %v10864_v1 = vadd.f32 %v7762_v22, %v5523_v9 }
 0x479   : > { %v5849_v51 = vadd.f32 %v5848_v58, %v10849_v4  ;;  %v7857_v49 = vpop.f32.mrb[4].mxu1 }
 0x47a   : > { %v10868_v14 = vadd.f32 %v7857_v49, %v10777_v34  ;;  %v5737_v57 = vpop.f32.mrb[5].mxu1 }
 0x47b   : > { %v10871_v48 = vadd.f32 %v5737_v57, %v10771_v19  ;;  %v5850_v35 = vadd.f32 %v5849_v51, %v10855_v16  ;;  %v7858_v0 = vpop.f32.mrb[6].mxu1 }
 0x47c   : > { %v10875_v53 = vadd.f32 %v7858_v0, %v10780_v56  ;;  %v5740_v31 = vpop.f32.mrb[7].mxu1 }
 0x47d   : > { %v5851_v30 = vadd.f32 %v5850_v35, %v10871_v48  ;;  %v10879_v29 = vadd.f32 %v5740_v31, %v10774_v3 }
 0x47f   : > { %v5852_v33 = vadd.f32 %v5851_v30, %v10879_v29 }
 0x481   : > { %v5853_v34 = vadd.f32 %v5852_v33, %v10868_v14  ;;  %v7861_v27 = vpop.f32.mrb[8].mxu1 }
 0x482   : > { %v10884_v19 = vadd.f32 %v7861_v27, %v10789_v25  ;;  %v5753_v47 = vpop.f32.mrb[9].mxu1 }
 0x483   : > { %v10887_v62 = vadd.f32 %v5753_v47, %v10783_v54  ;;  %v5854_v56 = vadd.f32 %v5853_v34, %v10875_v53  ;;  %v7862_v26 = vpop.f32.mrb[10].mxu1 }
 0x484   : > { %v10891_v17 = vadd.f32 %v7862_v26, %v10792_v61  ;;  %v5756_v3 = vpop.f32.mrb[11].mxu1 }
 0x485   : > { %v5855_v23 = vadd.f32 %v5854_v56, %v10887_v62  ;;  %v10895_v18 = vadd.f32 %v5756_v3, %v10786_v36 }
 0x487   : > { %v5856_v11 = vadd.f32 %v5855_v23, %v10895_v18 }
 0x489   : > { %v5857_v25 = vadd.f32 %v5856_v11, %v10884_v19  ;;  %v7865_v9 = vpop.f32.mrb[12].mxu1 }
 0x48a   : > { %v10900_v54 = vadd.f32 %v7865_v9, %v10801_v52  ;;  %v5769_v21 = vpop.f32.mrb[13].mxu1 }
 0x48b   : > { %v10903_v45 = vadd.f32 %v5769_v21, %v10795_v50  ;;  %v5858_v61 = vadd.f32 %v5857_v25, %v10891_v17  ;;  %v7866_v13 = vpop.f32.mrb[14].mxu1 }
 0x48c   : > { %v10907_v37 = vadd.f32 %v7866_v13, %v10804_v8  ;;  %v5772_v36 = vpop.f32.mrb[15].mxu1 }
 0x48d   : > { %v5859_v59 = vadd.f32 %v5858_v61, %v10903_v45  ;;  %v10911_v44 = vadd.f32 %v5772_v36, %v10798_v63 }
 0x48f   : > { %v5860_v12 = vadd.f32 %v5859_v59, %v10911_v44 }
 0x491   : > { %v5861_v52 = vadd.f32 %v5860_v12, %v10900_v54  ;;  %v7869_v55 = vpop.f32.mrb[16].mxu1 }
 0x492   : > { %v10916_v50 = vadd.f32 %v7869_v55, %v10813_v5  ;;  %v5785_v43 = vpop.f32.mrb[17].mxu1 }
 0x493   : > { %v10919_v22 = vadd.f32 %v5785_v43, %v10807_v2  ;;  %v5862_v8 = vadd.f32 %v5861_v52, %v10907_v37  ;;  %v7870_v58 = vpop.f32.mrb[18].mxu1 }
 0x494   : > { %v10923_v51 = vadd.f32 %v7870_v58, %v10816_v24  ;;  %v5788_v63 = vpop.f32.mrb[19].mxu1 }
 0x495   : > { %v5863_v49 = vadd.f32 %v5862_v8, %v10919_v22  ;;  %v10927_v57 = vadd.f32 %v5788_v63, %v10810_v7 }
 0x497   : > { %v5864_v35 = vadd.f32 %v5863_v49, %v10927_v57 }
 0x499   : > { %v5865_v5 = vadd.f32 %v5864_v35, %v10916_v50  ;;  %v7873_v0 = vpop.f32.mrb[20].mxu1 }
 0x49a   : > { %v10932_v2 = vadd.f32 %v7873_v0, %v10825_v28  ;;  %v5801_v31 = vpop.f32.mrb[21].mxu1 }
 0x49b   : > { %v10935_v30 = vadd.f32 %v5801_v31, %v10819_v42  ;;  %v5866_v24 = vadd.f32 %v5865_v5, %v10923_v51  ;;  %v7874_v33 = vpop.f32.mrb[22].mxu1 }
 0x49c   : > { %v10939_v34 = vadd.f32 %v7874_v33, %v10828_v20  ;;  %v5804_v7 = vpop.f32.mrb[23].mxu1  ;;  %v8308_v33 = vmov 0  }
 0x49d   : > { %v5867_v27 = vadd.f32 %v5866_v24, %v10935_v30  ;;  %v10943_v47 = vadd.f32 %v5804_v7, %v10822_v10  ;;  %7959 = vset.pattern.permute.xlu0 %v8308_v33  ;;  %v5893_v7 = vld [vmem:[%s11193_s6] sm:$0x3] }
 0x49f   : > { %v5868_v56 = vadd.f32 %v5867_v27, %v10943_v47 }
 0x4a1   : > { %v5869_v28 = vadd.f32 %v5868_v56, %v10932_v2  ;;  %v7877_v26 = vpop.f32.mrb[24].mxu1 }
 0x4a2   : > { %v10948_v42 = vadd.f32 %v7877_v26, %v10837_v15  ;;  %v5817_v3 = vpop.f32.mrb[25].mxu1  ;;  %v5896_v26 = vld [vmem:[%s11194_s7] sm:$0x3] }
 0x4a3   : > { %v10951_v23 = vadd.f32 %v5817_v3, %v10831_v38  ;;  %v5870_v20 = vadd.f32 %v5869_v28, %v10939_v34  ;;  %v7878_v11 = vpop.f32.mrb[26].mxu1 }
 0x4a4   : > { %v10955_v25 = vadd.f32 %v7878_v11, %v10840_v60  ;;  %v5820_v10 = vpop.f32.mrb[27].mxu1 }
 0x4a5   : > { %v5871_v9 = vadd.f32 %v5870_v20, %v10951_v23  ;;  %v10959_v21 = vadd.f32 %v5820_v10, %v10834_v40 }
 0x4a7   : > { %v5872_v61 = vadd.f32 %v5871_v9, %v10959_v21 }
 0x4a9   : > { %v5873_v15 = vadd.f32 %v5872_v61, %v10948_v42  ;;  %v7881_v13 = vpop.f32.mrb[28].mxu1 }
 0x4aa   : > { %v10964_v38 = vadd.f32 %v7881_v13, %v10860_v6  ;;  %v5833_v36 = vpop.f32.mrb[29].mxu1 }
 0x4ab   : > { %v10967_v59 = vadd.f32 %v5833_v36, %v10843_v41  ;;  %v5874_v60 = vadd.f32 %v5873_v15, %v10955_v25  ;;  %v7882_v12 = vpop.f32.mrb[30].mxu1  ;;  %v5910_v36 = vld [vmem:[%s11195_s8] sm:$0x1] }
 0x4ac   : > { %v10971_v52 = vadd.f32 %v7882_v12, %v10864_v1  ;;  %v5836_v40 = vpop.f32.mrb[31].mxu1  ;;  %v5887_v1 = vld [vmem:[%s11192_s5] sm:$0x3] }
 0x4ad   : > { %v5875_v55 = vadd.f32 %v5874_v60, %v10967_v59  ;;  %v10975_v43 = vadd.f32 %v5836_v40, %v10846_v32 }
 0x4af   : > { %v5876_v8 = vadd.f32 %v5875_v55, %v10975_v43 }
 0x4b1   : > { %v5877_v6 = vadd.f32 %v5876_v8, %v10964_v38 }
 0x4b3   : > { %v5878_v58 = vadd.f32 %v5877_v6, %v10971_v52  ;;  %v11904_v6 = vld [vmem:[#allocation13_spill] sm:$0xff] }
 0x4b5   : > { %v5879_v41 = vrot.slane %v5878_v58, 4 }
 0x4b7   : > { %v5880_v63 = vadd.f32 %v5879_v41, %v5878_v58  ;;  %v5920_v58 = vsub.s32 0, %v11904_v6  ;;  %v8123_v6 = vld [vmem:[%s8540_s22 + $0x70] sm:$0xff] }
 0x4b9   : > { %v5881_v49 = vrot.slane %v5880_v63, 2 }
 0x4bb   : > { %v5882_v35 = vadd.f32 %v5881_v49, %v5880_v63 }
 0x4bd   : > { %v5883_v5 = vrot.slane %v5882_v35, 1 }
 0x4bf   : > { %v5884_v0 = vadd.f32 %v5883_v5, %v5882_v35 }
 0x4c1   : > { %v5886_v31 = vmul.f32 0.00390625, %v5884_v0 }
 0x4c3   : > { %v5888_v32 = vmul.f32 %v5887_v1, %v5886_v31 }
 0x4c5   : > { %v5890_v24 = vsel %vm5889_vm6, %v5888_v32, 0.0 }
 0x4c6   : > { %5891 = vadd.xlane.f32.xlu0 %v5890_v24 }
 0x553   : > { %v5892_v27 = vpop.xlane.xlu0 %5891 }
 0x554   : > { %v5894_v56 = vadd.f32 %v5893_v7, %v5892_v27  ;;  %v8113_v27 = vld [vmem:[%s8540_s22 + $0x20] sm:$0xff] }
 0x556   : > { %v5895_v28 = vmax.f32 %v5894_v56, 0.0  ;;  %v8114_v56 = vld [vmem:[%s8540_s22 + $0x28] sm:$0xff] }
 0x558   : > { %5899 = vperm.xlu0 %7959, %v5895_v28  }
 0x5d7   : > { %v5900_v3 = vpop.permute.xlu0 %5899 }
 0x5d8   : > { %v5902_v20 = vmul.f32 %v5900_v3, %v5896_v26  ;;  %v8115_v26 = vld [vmem:[%s8540_s22 + $0x30] sm:$0xff]  ;;  %v8116_v3 = vld [vmem:[%s8540_s22 + $0x38] sm:$0xff] }
 0x5da   : > { %v5903_v11 = vsel %vm5889_vm6, %v5902_v20, 0.0 }
 0x5db   : > { %v5904_v10 = vrot.slane %v5903_v11, 4 }
 0x5dd   : > { %v5905_v9 = vadd.f32 %v5904_v10, %v5903_v11  ;;  %v8117_v11 = vld [vmem:[%s8540_s22 + $0x40] sm:$0xff] }
 0x5df   : > { %v5906_v61 = vrot.slane %v5905_v9, 2 }
 0x5e1   : > { %v5907_v15 = vadd.f32 %v5906_v61, %v5905_v9  ;;  %v8118_v9 = vld [vmem:[%s8540_s22 + $0x48] sm:$0xff] }
 0x5e3   : > { %v5908_v13 = vrot.slane %v5907_v15, 1 }
 0x5e5   : > { %v5909_v60 = vadd.f32 %v5908_v13, %v5907_v15  ;;  %v8119_v15 = vld [vmem:[%s8540_s22 + $0x50] sm:$0xff] }
 0x5e7   : > { %v5911_v12 = vadd.f32 %v5910_v36, %v5909_v60  ;;  %v8120_v36 = vld [vmem:[%s8540_s22 + $0x58] sm:$0xff] }
 0x5e9   : > { %v6835_v40 = vmul.f32 -1.442695, %v5911_v12  ;;  %v8121_v12 = vld [vmem:[%s8540_s22 + $0x60] sm:$0xff] }
 0x5eb   : > { %8104 = vpow2.f32 %v6835_v40 }
 0x5f5   : > { %v8105_v55 = vpop.eup %8104 }
 0x5f6   : > { %v5915_v8 = vadd.f32 1.0, %v8105_v55  ;;  %v8122_v55 = vld [vmem:[%s8540_s22 + $0x68] sm:$0xff] }
 0x5f8   : > { %8106 = vrcp.f32 %v5915_v8 }
 0x602   : > { %v8107_v41 = vpop.eup %8106 }
 0x603   : > { %v5921_v63 = vrot.slane %v8107_v41, %v5920_v58  ;;  %v8124_v41 = vld [vmem:[%s8540_s22 + $0x78] sm:$0xff] }
 0x605   : > { %v5922_v49 = vmul.f32 %v5921_v63, %v10852_v46  ;;  %v5923_v35 = vmul.f32 %v5921_v63, %v10858_v39  ;;  %v5924_v5 = vmul.f32 %v5921_v63, %v10849_v4  ;;  %v5925_v0 = vmul.f32 %v5921_v63, %v10855_v16 }
 0x606   : > { %v5926_v1 = vmul.f32 %v5921_v63, %v10871_v48  ;;  %v5927_v31 = vmul.f32 %v5921_v63, %v10879_v29  ;;  %v5928_v32 = vmul.f32 %v5921_v63, %v10868_v14  ;;  %v5929_v24 = vmul.f32 %v5921_v63, %v10875_v53 }
 0x607   : > { %v5930_v33 = vmul.f32 %v5921_v63, %v10887_v62  ;;  %v5931_v7 = vmul.f32 %v5921_v63, %v10895_v18  ;;  %v5932_v46 = vmul.f32 %v5921_v63, %v10884_v19  ;;  %v5933_v39 = vmul.f32 %v5921_v63, %v10891_v17 }
 0x608   : > { %v5934_v4 = vmul.f32 %v5921_v63, %v10903_v45  ;;  %v5935_v16 = vmul.f32 %v5921_v63, %v10911_v44  ;;  %v5936_v48 = vmul.f32 %v5921_v63, %v10900_v54  ;;  %v5937_v29 = vmul.f32 %v5921_v63, %v10907_v37 }
 0x609   : > { %v5938_v14 = vmul.f32 %v5921_v63, %v10919_v22  ;;  %v5939_v53 = vmul.f32 %v5921_v63, %v10927_v57  ;;  %v5940_v62 = vmul.f32 %v5921_v63, %v10916_v50  ;;  %v11013_v19 = vmul.f32 %v5921_v63, %v10923_v51 }
 0x60a   : > { %v11016_v17 = vmul.f32 %v5921_v63, %v10935_v30  ;;  %v11019_v18 = vmul.f32 %v5921_v63, %v10943_v47  ;;  %v11022_v54 = vmul.f32 %v5921_v63, %v10932_v2  ;;  %v11025_v45 = vmul.f32 %v5921_v63, %v10939_v34  ;;  %v8109_v34 = vld [vmem:[%s8540_s22] sm:$0xff] }
 0x60b   : > { %v11028_v37 = vmul.f32 %v5921_v63, %v10951_v23  ;;  %v11031_v44 = vmul.f32 %v5921_v63, %v10959_v21  ;;  %v11034_v50 = vmul.f32 %v5921_v63, %v10948_v42  ;;  %v11037_v22 = vmul.f32 %v5921_v63, %v10955_v25  ;;  %v8110_v42 = vld [vmem:[%s8540_s22 + $0x8] sm:$0xff]  ;;  %v8111_v25 = vld [vmem:[%s8540_s22 + $0x10] sm:$0xff] }
 0x60c   : > { %v11040_v51 = vmul.f32 %v5921_v63, %v10967_v59  ;;  %v11043_v57 = vmul.f32 %v5921_v63, %v10975_v43  ;;  %v11046_v2 = vmul.f32 %v5921_v63, %v10964_v38  ;;  %v11049_v30 = vmul.f32 %v5921_v63, %v10971_v52  ;;  %v8112_v59 = vld [vmem:[%s8540_s22 + $0x18] sm:$0xff] }
 0x60d   : > { %v5954_v47 = vadd.f32 %v8109_v34, %v5922_v49  ;;  %v5955_v23 = vadd.f32 %v8110_v42, %v5923_v35  ;;  %v5956_v21 = vadd.f32 %v8111_v25, %v5924_v5  ;;  %v5957_v43 = vadd.f32 %v8112_v59, %v5925_v0  ;;  %v8125_v49 = vld [vmem:[%s8540_s22 + $0x80] sm:$0xff]  ;;  %v8126_v5 = vld [vmem:[%s8540_s22 + $0x88] sm:$0xff]  ;;  %v8139_v34 = vld [vmem:[%s8540_s22 + $0xf0] sm:$0xff] }
 0x60e   : > { %v5958_v38 = vadd.f32 %v8113_v27, %v5926_v1  ;;  %v5959_v28 = vadd.f32 %v8114_v56, %v5927_v31  ;;  %v5960_v52 = vadd.f32 %v8115_v26, %v5928_v32  ;;  %v5961_v20 = vadd.f32 %v8116_v3, %v5929_v24  ;;  %v8127_v1 = vld [vmem:[%s8540_s22 + $0x90] sm:$0xff]  ;;  %v8128_v32 = vld [vmem:[%s8540_s22 + $0x98] sm:$0xff] }
 0x60f   : > { %v5962_v10 = vadd.f32 %v8117_v11, %v5930_v33  ;;  %v5963_v61 = vadd.f32 %v8118_v9, %v5931_v7  ;;  %v5964_v13 = vadd.f32 %v8119_v15, %v5932_v46  ;;  %v5965_v60 = vadd.f32 %v8120_v36, %v5933_v39  ;;  %5986 = vst [vmem:[%s11065_s14] sm:$0xff] %v5954_v47  ;;  %v8129_v33 = vld [vmem:[%s8540_s22 + $0xa0] sm:$0xff]  ;;  %v8130_v46 = vld [vmem:[%s8540_s22 + $0xa8] sm:$0xff]  ;;  %v8140_v42 = vld [vmem:[%s8540_s22 + $0xf8] sm:$0xff] }
 0x610   : > { %5987 = vst [vmem:[%s11065_s14 + $0x8] sm:$0xff] %v5955_v23  ;;  %5988 = vst [vmem:[%s11065_s14 + $0x10] sm:$0xff] %v5956_v21  ;;  %v5966_v40 = vadd.f32 %v8121_v12, %v5934_v4  ;;  %v5967_v8 = vadd.f32 %v8122_v55, %v5935_v16  ;;  %v5968_v58 = vadd.f32 %v8123_v6, %v5936_v48  ;;  %v8131_v4 = vld [vmem:[%s8540_s22 + $0xb0] sm:$0xff]  ;;  %v8132_v48 = vld [vmem:[%s8540_s22 + $0xb8] sm:$0xff] }
 0x611   : > { %5989 = vst [vmem:[%s11065_s14 + $0x18] sm:$0xff] %v5957_v43  ;;  %v5969_v63 = vadd.f32 %v8124_v41, %v5937_v29  ;;  %5990 = vst [vmem:[%s11065_s14 + $0x20] sm:$0xff] %v5958_v38  ;;  %v5970_v35 = vadd.f32 %v8125_v49, %v5938_v14  ;;  %v5971_v0 = vadd.f32 %v8126_v5, %v5939_v53  ;;  %v8133_v14 = vld [vmem:[%s8540_s22 + $0xc0] sm:$0xff] }
 0x612   : > { %5991 = vst [vmem:[%s11065_s14 + $0x28] sm:$0xff] %v5959_v28  ;;  %5992 = vst [vmem:[%s11065_s14 + $0x30] sm:$0xff] %v5960_v52  ;;  %v5972_v31 = vadd.f32 %v8127_v1, %v5940_v62  ;;  %v5973_v24 = vadd.f32 %v8128_v32, %v11013_v19  ;;  %v5974_v7 = vadd.f32 %v8129_v33, %v11016_v17  ;;  %v8134_v62 = vld [vmem:[%s8540_s22 + $0xc8] sm:$0xff]  ;;  %v8135_v17 = vld [vmem:[%s8540_s22 + $0xd0] sm:$0xff] }
 0x613   : > { %5993 = vst [vmem:[%s11065_s14 + $0x38] sm:$0xff] %v5961_v20  ;;  %5994 = vst [vmem:[%s11065_s14 + $0x40] sm:$0xff] %v5962_v10  ;;  %v5975_v39 = vadd.f32 %v8130_v46, %v11019_v18  ;;  %v5976_v16 = vadd.f32 %v8131_v4, %v11022_v54  ;;  %v5977_v29 = vadd.f32 %v8132_v48, %v11025_v45  ;;  %v8136_v54 = vld [vmem:[%s8540_s22 + $0xd8] sm:$0xff] }
 0x614   : > { %5995 = vst [vmem:[%s11065_s14 + $0x48] sm:$0xff] %v5963_v61  ;;  %5996 = vst [vmem:[%s11065_s14 + $0x50] sm:$0xff] %v5964_v13  ;;  %v5978_v53 = vadd.f32 %v8133_v14, %v11028_v37  ;;  %v5979_v19 = vadd.f32 %v8134_v62, %v11031_v44  ;;  %v5980_v18 = vadd.f32 %v8135_v17, %v11034_v50  ;;  %v8137_v37 = vld [vmem:[%s8540_s22 + $0xe0] sm:$0xff]  ;;  %v8138_v50 = vld [vmem:[%s8540_s22 + $0xe8] sm:$0xff]  ;;  %s8309_s22 = smov [#allocation8]  }
 0x615   : > { %5997 = vst [vmem:[%s11065_s14 + $0x58] sm:$0xff] %v5965_v60  ;;  %5998 = vst [vmem:[%s11065_s14 + $0x60] sm:$0xff] %v5966_v40  ;;  %v5981_v45 = vadd.f32 %v8136_v54, %v11037_v22  ;;  %v5982_v44 = vadd.f32 %v8137_v37, %v11040_v51  ;;  %v5983_v22 = vadd.f32 %v8138_v50, %v11043_v57  ;;  %s8231_s18 = sshll.u32 %s8309_s22, 4  ;;  %s8232_s18 = int_to_ptr.vmem [resolvable:$false] %s8231_s18 }
 0x616   : > { %5999 = vst [vmem:[%s11065_s14 + $0x68] sm:$0xff] %v5967_v8  ;;  %6000 = vst [vmem:[%s11065_s14 + $0x70] sm:$0xff] %v5968_v58  ;;  %v5984_v47 = vadd.f32 %v8139_v34, %v11046_v2  ;;  %v5985_v23 = vadd.f32 %v8140_v42, %v11049_v30  ;;  %s8233_s29 = scalar_lea.vmem %s8232_s18, 8192  ;;  %p8234_p7 = scmp.lt.s32.totalorder %s11123_s16, %s8232_s18 }
 0x617   : > { %6001 = vst [vmem:[%s11065_s14 + $0x78] sm:$0xff] %v5969_v63  ;;  %6002 = vst [vmem:[%s11065_s14 + $0x80] sm:$0xff] %v5970_v35  ;;  %p8235_p9 = scmp.lt.s32.totalorder %s8233_s29, %s8227_s25 }
 0x618   : > { %6003 = vst [vmem:[%s11065_s14 + $0x88] sm:$0xff] %v5971_v0  ;;  %6004 = vst [vmem:[%s11065_s14 + $0x90] sm:$0xff] %v5972_v31 }
 0x619   : > { %6005 = vst [vmem:[%s11065_s14 + $0x98] sm:$0xff] %v5973_v24  ;;  %6006 = vst [vmem:[%s11065_s14 + $0xa0] sm:$0xff] %v5974_v7  ;;  %p8236_p12 = por %p8235_p9, %p8234_p7 }
 0x61a   : > { %6007 = vst [vmem:[%s11065_s14 + $0xa8] sm:$0xff] %v5975_v39  ;;  %6008 = vst [vmem:[%s11065_s14 + $0xb0] sm:$0xff] %v5976_v16 }
 0x61b   : > { %6009 = vst [vmem:[%s11065_s14 + $0xb8] sm:$0xff] %v5977_v29  ;;  %6010 = vst [vmem:[%s11065_s14 + $0xc0] sm:$0xff] %v5978_v53  ;;  %p8237_p2 = pnand %p8236_p12, %p8230_p3 }
 0x61c   : > { %6011 = vst [vmem:[%s11065_s14 + $0xc8] sm:$0xff] %v5979_v19  ;;  %6012 = vst [vmem:[%s11065_s14 + $0xd0] sm:$0xff] %v5980_v18 }
 0x61d   : > { %6013 = vst [vmem:[%s11065_s14 + $0xd8] sm:$0xff] %v5981_v45  ;;  %6014 = vst [vmem:[%s11065_s14 + $0xe0] sm:$0xff] %v5982_v44 }
 0x61e   : > { %6015 = vst [vmem:[%s11065_s14 + $0xe8] sm:$0xff] %v5983_v22  ;;  %6016 = vst [vmem:[%s11065_s14 + $0xf0] sm:$0xff] %v5984_v47 }
 0x61f   : > { %6017 = vst [vmem:[%s11065_s14 + $0xf8] sm:$0xff] %v5985_v23 }
 0x620   : > { %8240 = shalt.err (!%p8237_p2)
}
 0x621   : > { %s8241_s15 = scalar_lea.hbm %s11119_s21, 4096  ;;  %s8245_s28 = scalar_lea.hbm %s11196_s9, 8192 }
 0x622   : > { %p8242_p13 = scmp.ne.s32.totalorder %s11119_s21, %s8241_s15  ;;  %p8246_p4 = scmp.lt.u32.totalorder %s11119_s21, %s11196_s9 }
 0x623   : > { %p8247_p5 = scmp.lt.u32.totalorder %s8245_s28, %s8241_s15  ;;  %p8249_p11 = scmp.lt.u32.totalorder %s8241_s15, %s11119_s21 }
 0x624   : > { %p8243_p6 = pnand %p8242_p13, %p11905_p0 }
 0x625   : > { %p8248_p8 = por %p8247_p5, %p8246_p4 }
 0x626   : > { %p8244_p10 = pneg %p8243_p6 }
 0x627   : > { %p8250_p1 = por %p8249_p11, %p8248_p8 }
 0x629   : > { %p8251_p3 = pnand %p8250_p1, %p8244_p10 }
 0x62b   : > { %8254 = shalt.err (!%p8251_p3)
}
 0x62c   : > { %s8310_s25 = smov 128   ;;  %s8311_s22 = smov 8  }
 0x62d   : > { %7893 = dma.vmem_to_hbm [thread:$0]  (%p11905_p0), %s11123_s16, 4096, %s11119_s21, %s6019_s13, %s8310_s25, %s8310_s25, %s8311_s22  }
 0x62e PF: > { %s11906_s18 = sld [smem:[#allocation12_spill]]  ;;  %s6047_s29 = sand.u32 1, %s8285_s30  }
 0x62f   : > { %p11908_p9 = scmp.ge.s32.totalorder %s8297_s12, 2  ;;  %s6048_s15 = scalar_lea.sflag [#allocation4], %s6047_s29 }
 0x634   : > { %p11907_p7 = scmp.ne.s32.totalorder %s11906_s18, 0 }
 0x636   : > { %p7907_p12 = pnand %p11908_p9, %p11907_p7 }
 0x638   : > { %8280 = dma.done.wait (!%p7907_p12), %s6048_s15, 4096  }
 0x639   : > { %8282 = vsyncadd (!%p7907_p12), %s6048_s15, 4294963200  ;;  %p23_p2 = scmp.ge.s32.totalorder %s8472_s24, 4   ;;  %s11909_s30 = smov %s8289_s10 }
 0x63a   : > { %s11910_s10 = smov %s8293_s11  ;;  %s11911_s11 = smov %s8488_s27 }
 0x63b   : > { %s11912_s12 = smov %s8472_s24  ;;  %25 = sbr.rel (!%p23_p2) target bundleno = 6 (0x6), region = 109 }
 0x642   :  { %6053 = vsyncpa [#allocation3], 1 }
 0x643   :  { %6055 = vsyncpa [#allocation3 + $0x1], 1 }
 0x644   :  { %6056 = vsyncpa [#allocation6], 1 }
 0x645   :  { %6057 = vsyncpa [#allocation4], 1 }
 0x646   :  { %6059 = vsyncpa [#allocation4 + $0x1], 1 }

</bundles_post_ra>
